<compile_context>
chip_gen: v7x
topology: tpu7x:2x2x1
jax: 0.10.0
libtpu: 0.0.40
codegen_flags: <defaults>
</compile_context>

<pallas_src>
import jax
import jax.numpy as jnp
from jax.experimental import pallas as pl
from jax.experimental.pallas import tpu as pltpu

_LANE = 128
_SUBLANE = 8
_TB_CAP = 256                 # rows per tile; ~0.5 MiB/input at E=512 f32
_SMALL_BATCH_FALLBACK = 64    # below this, fixed kernel overhead dominates


def _dura_quate_kernel(h_ref, r_ref, t_ref, out_ref):
    # h_ref/r_ref/t_ref: (tb, 4*D) tiles; out_ref: (1, tb, D) resident accumulator.
    @pl.when(pl.program_id(1) == 0)
    def _():
        out_ref[...] = jnp.zeros_like(out_ref)

    D = h_ref.shape[-1] // 4

    # Slice the ref, then cast: per-component lane-aligned loads (D % 128 == 0),
    # never materializing a full (tb, 4D) f32 copy of a bf16 input.
    def comp(ref, k):
        return ref[:, k * D:(k + 1) * D].astype(jnp.float32)

    h_a, h_b, h_c, h_d = (comp(h_ref, k) for k in range(4))
    r_a, r_b, r_c, r_d = (comp(r_ref, k) for k in range(4))
    t_a, t_b, t_c, t_d = (comp(t_ref, k) for k in range(4))

    # Normalize the rotation quaternion (unit quaternion, as in QuatE).
    inv_norm = jax.lax.rsqrt(r_a * r_a + r_b * r_b + r_c * r_c + r_d * r_d)
    r_a = r_a * inv_norm
    r_b = r_b * inv_norm
    r_c = r_c * inv_norm
    r_d = r_d * inv_norm

    # hr = quaternion_rotation(r, h, right=True):  h ⊗ r̂  (Hamilton product)
    hr_a = h_a * r_a - h_b * r_b - h_c * r_c - h_d * r_d
    hr_b = h_a * r_b + h_b * r_a + h_c * r_d - h_d * r_c
    hr_c = h_a * r_c - h_b * r_d + h_c * r_a + h_d * r_b
    hr_d = h_a * r_d + h_b * r_c - h_c * r_b + h_d * r_a

    # rt = quaternion_rotation(r, t, right=True, transpose=True):  t ⊗ conj(r̂)
    # (conjugation signs folded directly into the expressions)
    rt_a = t_a * r_a + t_b * r_b + t_c * r_c + t_d * r_d
    rt_b = t_b * r_a - t_a * r_b - t_c * r_d + t_d * r_c
    rt_c = t_c * r_a - t_a * r_c + t_b * r_d - t_d * r_b
    rt_d = t_d * r_a - t_a * r_d - t_b * r_c + t_c * r_b

    total = (hr_a * hr_a + hr_b * hr_b + hr_c * hr_c + hr_d * hr_d
             + rt_a * rt_a + rt_b * rt_b + rt_c * rt_c + rt_d * rt_d
             + h_a * h_a + h_b * h_b + h_c * h_c + h_d * h_d
             + t_a * t_a + t_b * t_b + t_c * t_c + t_d * t_d)

    # Pure elementwise accumulate into the lane-dense resident output block.
    out_ref[...] += total[None, :, :]


def _round_up(x, m):
    return ((x + m - 1) // m) * m


def _choose_tiling(B, tb_cap=_TB_CAP):
    """Pick (tb, ncore, steps_per_core, B_padded).

    Guarantees: tb multiple of 8, tb <= tb_cap, total step count even (so the
    leading 'parallel' axis is always 2 and v7x never idles a TensorCore), and
    B_padded = 2 * steps_per_core * tb >= B.
    """
    tb = min(tb_cap, _round_up(pl.cdiv(B, 2), _SUBLANE))
    steps = pl.cdiv(B, tb)
    if steps % 2 != 0:
        steps += 1
    b_padded = steps * tb
    return tb, 2, steps // 2, b_padded


def _dura_quate_jax(h, r, t, weight):
    """Pure-JAX path mirroring the PyTorch semantics (also the reference)."""
    B = h.shape[0]
    h_a, h_b, h_c, h_d = jnp.split(h.astype(jnp.float32), 4, axis=-1)
    t_a, t_b, t_c, t_d = jnp.split(t.astype(jnp.float32), 4, axis=-1)
    r_a, r_b, r_c, r_d = jnp.split(r.astype(jnp.float32), 4, axis=-1)
    n = jnp.sqrt(r_a**2 + r_b**2 + r_c**2 + r_d**2)
    r_a, r_b, r_c, r_d = r_a / n, r_b / n, r_c / n, r_d / n

    def right_mul(x_a, x_b, x_c, x_d, q_a, q_b, q_c, q_d):
        return (x_a*q_a - x_b*q_b - x_c*q_c - x_d*q_d,
                x_a*q_b + x_b*q_a + x_c*q_d - x_d*q_c,
                x_a*q_c - x_b*q_d + x_c*q_a + x_d*q_b,
                x_a*q_d + x_b*q_c - x_c*q_b + x_d*q_a)

    hr = right_mul(h_a, h_b, h_c, h_d, r_a, r_b, r_c, r_d)
    rt = right_mul(t_a, t_b, t_c, t_d, r_a, -r_b, -r_c, -r_d)
    hr = jnp.concatenate(hr, axis=-1)
    rt = jnp.concatenate(rt, axis=-1)
    norm = jnp.sum(hr**2 + rt**2
                   + h.astype(jnp.float32)**2 + t.astype(jnp.float32)**2)
    return weight * norm / B


def dura_quate(h, r, t, weight, *, tb_cap=_TB_CAP):
    """h, r, t: (B, 4*D) float arrays. Returns the scalar regularizer value."""
    B, E = h.shape
    assert E % 4 == 0, "embedding dim must be a multiple of 4 (quaternion)"
    assert r.shape == (B, E) and t.shape == (B, E)
    D = E // 4

    # Small batches: fixed per-step / launch overhead dominates -> fused XLA path.
    # Non-lane-aligned D: component slices would become XLU shuffles -> XLA path.
    if B < _SMALL_BATCH_FALLBACK or D % _LANE != 0:
        return _dura_quate_jax(h, r, t, weight)

    tb, ncore, spc, b_padded = _choose_tiling(B, tb_cap)

    # Pad so every tile is full. Padded rows: h = t = 0 and r = unit quaternion
    # (1, 0, 0, 0) so they contribute exactly 0 (and rsqrt never sees 0).
    pad_n = b_padded - B
    if pad_n:
        h = jnp.concatenate([h, jnp.zeros((pad_n, E), h.dtype)], axis=0)
        t = jnp.concatenate([t, jnp.zeros((pad_n, E), t.dtype)], axis=0)
        r_pad = jnp.zeros((pad_n, E), r.dtype).at[:, :D].set(
            jnp.ones((pad_n, D), r.dtype))
        r = jnp.concatenate([r, r_pad], axis=0)

    in_spec = pl.BlockSpec((tb, E), lambda i, j: (i * spc + j, 0))
    out_spec = pl.BlockSpec((1, tb, D), lambda i, j: (i, 0, 0))

    itemsize = jnp.dtype(h.dtype).itemsize
    cost = pl.CostEstimate(
        flops=100 * b_padded * D,
        transcendentals=b_padded * D,
        bytes_accessed=3 * b_padded * E * itemsize + ncore * tb * D * 4,
    )

    partial = pl.pallas_call(
        _dura_quate_kernel,
        out_shape=jax.ShapeDtypeStruct((ncore, tb, D), jnp.float32),
        grid_spec=pltpu.PrefetchScalarGridSpec(
            num_scalar_prefetch=0,
            grid=(ncore, spc),
            in_specs=[in_spec, in_spec, in_spec],
            out_specs=out_spec,
        ),
        compiler_params=pltpu.CompilerParams(
            dimension_semantics=("parallel", "arbitrary"),
            vmem_limit_bytes=32 * 1024 * 1024,
        ),
        cost_estimate=cost,
    )(h, r, t)

    # Tiny final reduction of the lane-dense partial sums; divide by the
    # ORIGINAL batch size (padded rows contribute 0 to the sum).
    return weight * jnp.sum(partial) / B


if __name__ == "__main__":
    key = jax.random.PRNGKey(0)
    weight = 0.05
    D = 128                   # embeddings are (B, 4*D) = (B, 512)

    def make(B, k):
        k1, k2, k3 = jax.random.split(k, 3)
        return (jax.random.normal(k1, (B, 4 * D), dtype=jnp.float32),
                jax.random.normal(k2, (B, 4 * D), dtype=jnp.float32),
                jax.random.normal(k3, (B, 4 * D), dtype=jnp.float32))

    keys = jax.random.split(key, 3)

    # 1) Pallas path, batch divides evenly across the 2-core split.
    h, r, t = make(256, keys[0])
    out = jax.block_until_ready(dura_quate(h, r, t, weight))
    ref = _dura_quate_jax(h, r, t, weight)
    assert jnp.allclose(out, ref, rtol=1e-5, atol=1e-3), (out, ref)

    # 2) Pallas path with batch padding (B not a multiple of the tile).
    h, r, t = make(200, keys[1])
    out = jax.block_until_ready(dura_quate(h, r, t, weight))
    ref = _dura_quate_jax(h, r, t, weight)
    assert jnp.allclose(out, ref, rtol=1e-5, atol=1e-3), (out, ref)

    # 3) Small-batch fallback path (pure JAX, no pallas_call).
    h, r, t = make(32, keys[2])
    out = jax.block_until_ready(dura_quate(h, r, t, weight))
    ref = _dura_quate_jax(h, r, t, weight)
    assert jnp.allclose(out, ref, rtol=1e-5, atol=1e-3), (out, ref)

    print("KERNEL_OK")
</pallas_src>

<mosaic_0001>
module attributes {stable_mosaic.version = 11 : i64} {
  func.func @_dura_quate_kernel(%arg0: i32, %arg1: i32, %arg2: memref<128x512xf32, #tpu.memory_space<vmem>>, %arg3: memref<128x512xf32, #tpu.memory_space<vmem>>, %arg4: memref<128x512xf32, #tpu.memory_space<vmem>>, %arg5: memref<1x128x128xf32, #tpu.memory_space<vmem>>) attributes {dimension_semantics = [#tpu.dimension_semantics<parallel>, #tpu.dimension_semantics<arbitrary>], iteration_bounds = array<i64: 2, 1>, scalar_prefetch = 0 : i64, scratch_operands = 0 : i64, tpu.core_type = #tpu.core_type<tc>, window_params = [{transform_indices = @transform_0, window_bounds = array<i64: 128, 512>}, {transform_indices = @transform_1, window_bounds = array<i64: 128, 512>}, {transform_indices = @transform_2, window_bounds = array<i64: 128, 512>}, {transform_indices = @transform_3, window_bounds = array<i64: 1, 128, 128>}]} {
    %c0_i32 = arith.constant 0 : i32
    %0 = arith.cmpi eq, %arg1, %c0_i32 : i32
    %1 = arith.extui %0 : i1 to i32
    %c0_i32_0 = arith.constant 0 : i32
    %2 = arith.cmpi ne, %1, %c0_i32_0 : i32
    scf.if %2 {
      %cst = arith.constant 0.000000e+00 : f32
      %118 = vector.broadcast %cst : f32 to vector<1x128x128xf32>
      %c0_27 = arith.constant 0 : index
      %c0_28 = arith.constant 0 : index
      %c0_29 = arith.constant 0 : index
      %119 = vector.load %arg5[%c0_27, %c0_28, %c0_29] : memref<1x128x128xf32, #tpu.memory_space<vmem>>, vector<1x128x128xf32>
      tpu.vector_store %arg5[%c0_27, %c0_28, %c0_29], %118 {strides = array<i32>} : memref<1x128x128xf32, #tpu.memory_space<vmem>>, vector<1x128x128xf32>,
    } else {
    }
    %c0 = arith.constant 0 : index
    %c0_1 = arith.constant 0 : index
    %3 = vector.load %arg2[%c0, %c0_1] : memref<128x512xf32, #tpu.memory_space<vmem>>, vector<128x128xf32>
    %c0_2 = arith.constant 0 : index
    %c128 = arith.constant 128 : index
    %4 = vector.load %arg2[%c0_2, %c128] : memref<128x512xf32, #tpu.memory_space<vmem>>, vector<128x128xf32>
    %c0_3 = arith.constant 0 : index
    %c256 = arith.constant 256 : index
    %5 = vector.load %arg2[%c0_3, %c256] : memref<128x512xf32, #tpu.memory_space<vmem>>, vector<128x128xf32>
    %c0_4 = arith.constant 0 : index
    %c384 = arith.constant 384 : index
    %6 = vector.load %arg2[%c0_4, %c384] : memref<128x512xf32, #tpu.memory_space<vmem>>, vector<128x128xf32>
    %c0_5 = arith.constant 0 : index
    %c0_6 = arith.constant 0 : index
    %7 = vector.load %arg3[%c0_5, %c0_6] : memref<128x512xf32, #tpu.memory_space<vmem>>, vector<128x128xf32>
    %c0_7 = arith.constant 0 : index
    %c128_8 = arith.constant 128 : index
    %8 = vector.load %arg3[%c0_7, %c128_8] : memref<128x512xf32, #tpu.memory_space<vmem>>, vector<128x128xf32>
    %c0_9 = arith.constant 0 : index
    %c256_10 = arith.constant 256 : index
    %9 = vector.load %arg3[%c0_9, %c256_10] : memref<128x512xf32, #tpu.memory_space<vmem>>, vector<128x128xf32>
    %c0_11 = arith.constant 0 : index
    %c384_12 = arith.constant 384 : index
    %10 = vector.load %arg3[%c0_11, %c384_12] : memref<128x512xf32, #tpu.memory_space<vmem>>, vector<128x128xf32>
    %c0_13 = arith.constant 0 : index
    %c0_14 = arith.constant 0 : index
    %11 = vector.load %arg4[%c0_13, %c0_14] : memref<128x512xf32, #tpu.memory_space<vmem>>, vector<128x128xf32>
    %c0_15 = arith.constant 0 : index
    %c128_16 = arith.constant 128 : index
    %12 = vector.load %arg4[%c0_15, %c128_16] : memref<128x512xf32, #tpu.memory_space<vmem>>, vector<128x128xf32>
    %c0_17 = arith.constant 0 : index
    %c256_18 = arith.constant 256 : index
    %13 = vector.load %arg4[%c0_17, %c256_18] : memref<128x512xf32, #tpu.memory_space<vmem>>, vector<128x128xf32>
    %c0_19 = arith.constant 0 : index
    %c384_20 = arith.constant 384 : index
    %14 = vector.load %arg4[%c0_19, %c384_20] : memref<128x512xf32, #tpu.memory_space<vmem>>, vector<128x128xf32>
    %15 = arith.mulf %7, %7 : vector<128x128xf32>
    %16 = arith.mulf %8, %8 : vector<128x128xf32>
    %17 = arith.addf %15, %16 : vector<128x128xf32>
    %18 = arith.mulf %9, %9 : vector<128x128xf32>
    %19 = arith.addf %17, %18 : vector<128x128xf32>
    %20 = arith.mulf %10, %10 : vector<128x128xf32>
    %21 = arith.addf %19, %20 : vector<128x128xf32>
    %22 = math.rsqrt %21 : vector<128x128xf32>
    %23 = arith.mulf %7, %22 : vector<128x128xf32>
    %24 = arith.mulf %8, %22 : vector<128x128xf32>
    %25 = arith.mulf %9, %22 : vector<128x128xf32>
    %26 = arith.mulf %10, %22 : vector<128x128xf32>
    %27 = arith.mulf %3, %23 : vector<128x128xf32>
    %28 = arith.mulf %4, %24 : vector<128x128xf32>
    %29 = arith.subf %27, %28 : vector<128x128xf32>
    %30 = arith.mulf %5, %25 : vector<128x128xf32>
    %31 = arith.subf %29, %30 : vector<128x128xf32>
    %32 = arith.mulf %6, %26 : vector<128x128xf32>
    %33 = arith.subf %31, %32 : vector<128x128xf32>
    %34 = arith.mulf %3, %24 : vector<128x128xf32>
    %35 = arith.mulf %4, %23 : vector<128x128xf32>
    %36 = arith.addf %34, %35 : vector<128x128xf32>
    %37 = arith.mulf %5, %26 : vector<128x128xf32>
    %38 = arith.addf %36, %37 : vector<128x128xf32>
    %39 = arith.mulf %6, %25 : vector<128x128xf32>
    %40 = arith.subf %38, %39 : vector<128x128xf32>
    %41 = arith.mulf %3, %25 : vector<128x128xf32>
    %42 = arith.mulf %4, %26 : vector<128x128xf32>
    %43 = arith.subf %41, %42 : vector<128x128xf32>
    %44 = arith.mulf %5, %23 : vector<128x128xf32>
    %45 = arith.addf %43, %44 : vector<128x128xf32>
    %46 = arith.mulf %6, %24 : vector<128x128xf32>
    %47 = arith.addf %45, %46 : vector<128x128xf32>
    %48 = arith.mulf %3, %26 : vector<128x128xf32>
    %49 = arith.mulf %4, %25 : vector<128x128xf32>
    %50 = arith.addf %48, %49 : vector<128x128xf32>
    %51 = arith.mulf %5, %24 : vector<128x128xf32>
    %52 = arith.subf %50, %51 : vector<128x128xf32>
    %53 = arith.mulf %6, %23 : vector<128x128xf32>
    %54 = arith.addf %52, %53 : vector<128x128xf32>
    %55 = arith.mulf %11, %23 : vector<128x128xf32>
    %56 = arith.mulf %12, %24 : vector<128x128xf32>
    %57 = arith.addf %55, %56 : vector<128x128xf32>
    %58 = arith.mulf %13, %25 : vector<128x128xf32>
    %59 = arith.addf %57, %58 : vector<128x128xf32>
    %60 = arith.mulf %14, %26 : vector<128x128xf32>
    %61 = arith.addf %59, %60 : vector<128x128xf32>
    %62 = arith.mulf %12, %23 : vector<128x128xf32>
    %63 = arith.mulf %11, %24 : vector<128x128xf32>
    %64 = arith.subf %62, %63 : vector<128x128xf32>
    %65 = arith.mulf %13, %26 : vector<128x128xf32>
    %66 = arith.subf %64, %65 : vector<128x128xf32>
    %67 = arith.mulf %14, %25 : vector<128x128xf32>
    %68 = arith.addf %66, %67 : vector<128x128xf32>
    %69 = arith.mulf %13, %23 : vector<128x128xf32>
    %70 = arith.mulf %11, %25 : vector<128x128xf32>
    %71 = arith.subf %69, %70 : vector<128x128xf32>
    %72 = arith.mulf %12, %26 : vector<128x128xf32>
    %73 = arith.addf %71, %72 : vector<128x128xf32>
    %74 = arith.mulf %14, %24 : vector<128x128xf32>
    %75 = arith.subf %73, %74 : vector<128x128xf32>
    %76 = arith.mulf %14, %23 : vector<128x128xf32>
    %77 = arith.mulf %11, %26 : vector<128x128xf32>
    %78 = arith.subf %76, %77 : vector<128x128xf32>
    %79 = arith.mulf %12, %25 : vector<128x128xf32>
    %80 = arith.subf %78, %79 : vector<128x128xf32>
    %81 = arith.mulf %13, %24 : vector<128x128xf32>
    %82 = arith.addf %80, %81 : vector<128x128xf32>
    %83 = arith.mulf %33, %33 : vector<128x128xf32>
    %84 = arith.mulf %40, %40 : vector<128x128xf32>
    %85 = arith.addf %83, %84 : vector<128x128xf32>
    %86 = arith.mulf %47, %47 : vector<128x128xf32>
    %87 = arith.addf %85, %86 : vector<128x128xf32>
    %88 = arith.mulf %54, %54 : vector<128x128xf32>
    %89 = arith.addf %87, %88 : vector<128x128xf32>
    %90 = arith.mulf %61, %61 : vector<128x128xf32>
    %91 = arith.addf %89, %90 : vector<128x128xf32>
    %92 = arith.mulf %68, %68 : vector<128x128xf32>
    %93 = arith.addf %91, %92 : vector<128x128xf32>
    %94 = arith.mulf %75, %75 : vector<128x128xf32>
    %95 = arith.addf %93, %94 : vector<128x128xf32>
    %96 = arith.mulf %82, %82 : vector<128x128xf32>
    %97 = arith.addf %95, %96 : vector<128x128xf32>
    %98 = arith.mulf %3, %3 : vector<128x128xf32>
    %99 = arith.addf %97, %98 : vector<128x128xf32>
    %100 = arith.mulf %4, %4 : vector<128x128xf32>
    %101 = arith.addf %99, %100 : vector<128x128xf32>
    %102 = arith.mulf %5, %5 : vector<128x128xf32>
    %103 = arith.addf %101, %102 : vector<128x128xf32>
    %104 = arith.mulf %6, %6 : vector<128x128xf32>
    %105 = arith.addf %103, %104 : vector<128x128xf32>
    %106 = arith.mulf %11, %11 : vector<128x128xf32>
    %107 = arith.addf %105, %106 : vector<128x128xf32>
    %108 = arith.mulf %12, %12 : vector<128x128xf32>
    %109 = arith.addf %107, %108 : vector<128x128xf32>
    %110 = arith.mulf %13, %13 : vector<128x128xf32>
    %111 = arith.addf %109, %110 : vector<128x128xf32>
    %112 = arith.mulf %14, %14 : vector<128x128xf32>
    %113 = arith.addf %111, %112 : vector<128x128xf32>
    %c0_21 = arith.constant 0 : index
    %c0_22 = arith.constant 0 : index
    %c0_23 = arith.constant 0 : index
    %114 = vector.load %arg5[%c0_21, %c0_22, %c0_23] : memref<1x128x128xf32, #tpu.memory_space<vmem>>, vector<1x128x128xf32>
    %115 = vector.shape_cast %113 : vector<128x128xf32> to vector<1x128x128xf32>
    %116 = arith.addf %114, %115 : vector<1x128x128xf32>
    %c0_24 = arith.constant 0 : index
    %c0_25 = arith.constant 0 : index
    %c0_26 = arith.constant 0 : index
    %117 = vector.load %arg5[%c0_24, %c0_25, %c0_26] : memref<1x128x128xf32, #tpu.memory_space<vmem>>, vector<1x128x128xf32>
    tpu.vector_store %arg5[%c0_24, %c0_25, %c0_26], %116 {strides = array<i32>} : memref<1x128x128xf32, #tpu.memory_space<vmem>>, vector<1x128x128xf32>,
    return
  }
  func.func @transform_0(%arg0: i32, %arg1: i32) -> (i32, i32) {
    %c1_i32 = arith.constant 1 : i32
    %0 = arith.muli %arg0, %c1_i32 : i32
    %1 = arith.addi %0, %arg1 : i32
    %c0_i32 = arith.constant 0 : i32
    %c0_i32_0 = arith.constant 0 : i32
    return %1, %c0_i32 : i32, i32
  }
  func.func @transform_1(%arg0: i32, %arg1: i32) -> (i32, i32) {
    %c1_i32 = arith.constant 1 : i32
    %0 = arith.muli %arg0, %c1_i32 : i32
    %1 = arith.addi %0, %arg1 : i32
    %c0_i32 = arith.constant 0 : i32
    %c0_i32_0 = arith.constant 0 : i32
    return %1, %c0_i32 : i32, i32
  }
  func.func @transform_2(%arg0: i32, %arg1: i32) -> (i32, i32) {
    %c1_i32 = arith.constant 1 : i32
    %0 = arith.muli %arg0, %c1_i32 : i32
    %1 = arith.addi %0, %arg1 : i32
    %c0_i32 = arith.constant 0 : i32
    %c0_i32_0 = arith.constant 0 : i32
    return %1, %c0_i32 : i32, i32
  }
  func.func @transform_3(%arg0: i32, %arg1: i32) -> (i32, i32, i32) {
    %c0_i32 = arith.constant 0 : i32
    %c0_i32_0 = arith.constant 0 : i32
    %c0_i32_1 = arith.constant 0 : i32
    return %arg0, %c0_i32, %c0_i32_0 : i32, i32, i32
  }
}

</mosaic_0001>

<bundles_post_ra>
// kernel: tpu_custom_call.1
= control target key start
LH: loop header
LB: loop body
LE: loop exit
PB: predicated region body
PF: predicated region fallthrough
CT: control target
= control target key end

     0   :  { %s5016_s0 = inlined_call_operand.hbm [shape: f32[256,512], index: 0, kind: input, shape index: {}]   ;;  %s5017_s1 = inlined_call_operand.hbm [shape: f32[256,512], index: 1, kind: input, shape index: {}]   ;;  %s5018_s2 = inlined_call_operand.hbm [shape: f32[256,512], index: 2, kind: input, shape index: {}]   ;;  %s5019_s3 = inlined_call_operand.hbm [shape: f32[2,128,128], index: 3, kind: output, shape index: {}]  }
   0x1   :  { %5041 = sst [smem:[#allocation43_spill]] %s5017_s1 }
   0x2   :  { %8 = vsyncpa [#allocation3], 0 }
   0x3   :  { %10 = vsyncpa [#allocation3 + $0x1], 0 }
   0x4   :  { %11 = vsyncpa [#allocation6], 0 }
   0x5   :  { %13 = vsyncpa [#allocation6 + $0x1], 0 }
   0x6   :  { %14 = vsyncpa [#allocation4], 0 }
   0x7   :  { %16 = vsyncpa [#allocation4 + $0x1], 0  ;;  %s2629_s12 = smov 0   ;;  %s2631_s13 = smov 0  }
   0x8   :  { %s2633_s14 = smov 0   ;;  %s2635_s15 = smov 0  }
   0x9   :  { %s2637_s16 = smov 0   ;;  %s2639_s17 = smov 0  }
   0xa LB: > { %5042 = sst [smem:[#allocation12_spill]] %s2595_s16  ;;  %s2660_s18 = sadd.s32 4294967295, %s2599_s17   ;;  %s2599_s17 = sphi %s2639_s17, %s22_s17   ;;  %s2595_s16 = sphi %s2637_s16, %s5125_s16   ;;  %s2591_s15 = sphi %s2635_s15, %s5120_s15   ;;  %s2587_s14 = sphi %s2633_s14, %s5124_s14   ;;  %s2583_s13 = sphi %s2631_s13, %s5123_s13   ;;  %s2579_s12 = sphi %s2629_s12, %s5122_s12  }
   0xb   : > { %s2282_s19 = sadd.s32 4294967294, %s2599_s17   ;;  %s34_s20 = sadd.s32 1, %s2595_s16 }
   0xc   : > { %s43_s21 = sadd.s32 1, %s2587_s14  ;;  %p36_p0 = scmp.ge.s32.totalorder %s34_s20, 2 }
   0xd   : > { %p50_p1 = scmp.ne.s32.totalorder %s2587_s14, %s2583_s13  ;;  %p51_p2 = scmp.eq.s32.totalorder %s2599_s17, 0 }
   0xe   : > { %p56_p3 = scmp.ne.s32.totalorder %s2583_s13, %s2579_s12  ;;  %s5127_s20 = smov (%p36_p0, %s34_s20), 0 }
   0xf   : > { %5043 = sst [smem:[#allocation13_spill]] %s5127_s20  ;;  %p2672_p4 = por %p51_p2, %p50_p1 }
  0x10   : > { %p57_p5 = scmp.eq.s32.totalorder %s2660_s18, 0  ;;  %s40_s23 = ssub.s32 %s2595_s16, %s5127_s20 }
  0x11   : > { %p136_p6 = scmp.eq.s32.totalorder %s2660_s18, 1  ;;  %p41_p7 = scmp.eq.s32.totalorder %s40_s23, 0 }
  0x12   : > { %p2680_p8 = por %p57_p5, %p56_p3  ;;  %p142_p10 = scmp.eq.s32.totalorder %s2282_s19, 1 }
  0x13   : > { %p2684_p9 = por %p136_p6, %p50_p1  ;;  %p2336_p13 = scmp.lt.s32.totalorder %s2599_s17, 2 }
  0x14   : > { %s5045_s24 = scalar_select %p2680_p8, 1, 0 }
  0x15   : > { %s5046_s25 = scalar_select %p2684_p9, 1, 0 }
  0x16   : > { %s2689_s26 = scalar_select %p41_p7, %s2587_s14, %s43_s21  }
  0x17   : > { %p2691_p11 = por %p142_p10, %p56_p3  ;;  %s5022_s28 = sand.u32 1, %s2587_s14  }
  0x18   : > { %5047 = sst [smem:[#allocation14_spill]] %s2689_s26  ;;  %s2700_s29 = sshll.u32 %s5022_s28, 9 }
  0x19   : > { %s5048_s27 = scalar_select %p2691_p11, 1, 0 }
  0x1a   : > { %s2703_s30 = sshll.u32 %s2595_s16, 13  ;;  %p2707_p0 = pnand %p2336_p13, %p2672_p4 }
  0x1b   : > { %s185_s5 = sand.u32 1, %s2599_s17   ;;  %s5050_s1 = sld [smem:[#allocation43_spill]] }
  0x1c   : > { %s189_s9 = scalar_lea.vmem [#allocation5], %s2700_s29  ;;  %s2723_s11 = scalar_lea.sflag [#allocation6], %s185_s5 }
  0x1d   : > { %s198_s10 = sshll.u32 %s189_s9, 4  ;;  %p2729_p4 = pneg %p2707_p0  ;;  %s2720_s10 = int_to_ptr.vmem [resolvable:$true] %s198_s10 }
  0x21   : > { %s2716_s8 = scalar_lea.hbm %s5050_s1, %s2703_s30  ;;  %s2428_s6 = scalar_lea.hbm %s5050_s1, 16384 }
  0x22   : > { %s2423_s19 = scalar_lea.hbm %s2716_s8, 8192  ;;  %p2429_p7 = scmp.lt.u32.totalorder %s2716_s8, %s5050_s1 }
  0x23   : > { %p2424_p3 = scmp.ne.s32.totalorder %s2716_s8, %s2423_s19  ;;  %p2430_p10 = scmp.lt.u32.totalorder %s2428_s6, %s2423_s19 }
  0x24   : > { %p2432_p12 = scmp.lt.u32.totalorder %s2423_s19, %s2716_s8 }
  0x25   : > { %p2426_p5 = pnand %p2729_p4, %p2424_p3  ;;  %p2431_p13 = por %p2430_p10, %p2429_p7 }
  0x27   : > { %p2427_p6 = pneg %p2426_p5  ;;  %p2433_p1 = por %p2432_p12, %p2431_p13 }
  0x29   : > { %p2434_p2 = pnand %p2433_p1, %p2427_p6 }
  0x2b   : > { %2437 = shalt.err (!%p2434_p2)
}
  0x2c   : > { %s2438_s5 = scalar_lea.vmem %s2720_s10, 8192  ;;  %s2601_s22 = smov [#allocation5]  }
  0x2d   : > { %p2439_p3 = scmp.ne.s32.totalorder %s2720_s10, %s2438_s5  ;;  %s2443_s23 = sshll.u32 %s2601_s22, 4  ;;  %s2444_s23 = int_to_ptr.vmem [resolvable:$false] %s2443_s23 }
  0x2e   : > { %s2445_s7 = scalar_lea.vmem %s2444_s23, 16384  ;;  %p2446_p9 = scmp.lt.s32.totalorder %s2720_s10, %s2444_s23 }
  0x2f   : > { %p2441_p5 = pnand %p2439_p3, %p2729_p4  ;;  %p2447_p8 = scmp.lt.s32.totalorder %s2445_s7, %s2438_s5 }
  0x31   : > { %p2442_p11 = pneg %p2441_p5  ;;  %p2448_p7 = por %p2447_p8, %p2446_p9 }
  0x33   : > { %p2449_p10 = pnand %p2448_p7, %p2442_p11 }
  0x35   : > { %2452 = shalt.err (!%p2449_p10)
}
  0x36   : > { %s5023_s19 = smov 512   ;;  %s5025_s6 = smov 32  }
  0x37   : > { %2328 = dma.hbm_to_vmem [thread:$0]  (!%p2707_p0), %s2716_s8, 8192, %s2720_s10, %s2723_s11, %s5023_s19, %s5023_s19, %s5025_s6  }
  0x38   : > { %p5052_p8 = scmp.lt.s32.totalorder %s2599_s17, 3  ;;  %p5053_p9 = scmp.ge.s32.totalorder %s2599_s17, 1 }
  0x39   : > { %s2768_s23 = scalar_lea.hbm %s5016_s0, %s2703_s30  ;;  %s166_s7 = scalar_lea.vmem [#allocation2], %s2700_s29 }
  0x3a   : > { %p2760_p11 = pnand %p5053_p9, %p5052_p8  ;;  %s175_s28 = sshll.u32 %s166_s7, 4  ;;  %s2771_s28 = int_to_ptr.vmem [resolvable:$true] %s175_s28 }
  0x3b   : > { %s2777_s19 = scalar_lea.hbm %s5018_s2, %s2703_s30  ;;  %s5055_s6 = sand.u32 1, %s2587_s14  }
  0x3c   : > { %s5054_s9 = scalar_select %p2760_p11, 1, 0 }
  0x3d   : > { %s2781_s1 = scalar_lea.sflag [#allocation3], %s5055_s6  ;;  %s2453_s20 = scalar_lea.hbm %s2768_s23, 8192 }
  0x3e   : > { %p2454_p12 = scmp.ne.s32.totalorder %s2768_s23, %s2453_s20  ;;  %s2458_s16 = scalar_lea.hbm %s5016_s0, 16384 }
  0x3f   : > { %p2459_p6 = scmp.lt.u32.totalorder %s2768_s23, %s5016_s0  ;;  %p2460_p13 = scmp.lt.u32.totalorder %s2458_s16, %s2453_s20 }
  0x40   : > { %p2456_p1 = pnand %p2454_p12, %p2729_p4  ;;  %p2462_p5 = scmp.lt.u32.totalorder %s2453_s20, %s2768_s23 }
  0x41   : > { %p2461_p3 = por %p2460_p13, %p2459_p6 }
  0x42   : > { %p2457_p2 = pneg %p2456_p1 }
  0x43   : > { %p2463_p7 = por %p2462_p5, %p2461_p3 }
  0x45   : > { %p2464_p10 = pnand %p2463_p7, %p2457_p2 }
  0x47   : > { %2467 = shalt.err (!%p2464_p10)
}
  0x48   : > { %s2468_s30 = scalar_lea.vmem %s2771_s28, 8192  ;;  %s2604_s6 = smov [#allocation2]  }
  0x49   : > { %p2469_p8 = scmp.ne.s32.totalorder %s2771_s28, %s2468_s30  ;;  %s2473_s8 = sshll.u32 %s2604_s6, 4  ;;  %s2474_s8 = int_to_ptr.vmem [resolvable:$false] %s2473_s8 }
  0x4a   : > { %s2475_s26 = scalar_lea.vmem %s2474_s8, 16384  ;;  %p2476_p1 = scmp.lt.s32.totalorder %s2771_s28, %s2474_s8 }
  0x4b   : > { %p2471_p9 = pnand %p2469_p8, %p2729_p4  ;;  %p2477_p11 = scmp.lt.s32.totalorder %s2475_s26, %s2468_s30 }
  0x4d   : > { %p2472_p12 = pneg %p2471_p9  ;;  %p2478_p6 = por %p2477_p11, %p2476_p1 }
  0x4f   : > { %p2479_p13 = pnand %p2478_p6, %p2472_p12 }
  0x51   : > { %2482 = shalt.err (!%p2479_p13)
}
  0x52   : > { %s5056_s16 = smov 32   ;;  %s5057_s20 = smov 512  }
  0x53   : > { %2325 = dma.hbm_to_vmem [thread:$0]  (!%p2707_p0), %s2768_s23, 8192, %s2771_s28, %s2781_s1, %s5057_s20, %s5057_s20, %s5056_s16  }
  0x54   : > { %s212_s10 = scalar_lea.vmem [#allocation7], %s2700_s29  ;;  %s2483_s22 = scalar_lea.hbm %s2777_s19, 8192 }
  0x55   : > { %s221_s5 = sshll.u32 %s212_s10, 4  ;;  %p2484_p11 = scmp.ne.s32.totalorder %s2777_s19, %s2483_s22  ;;  %s2809_s5 = int_to_ptr.vmem [resolvable:$true] %s221_s5 }
  0x56   : > { %s2488_s6 = scalar_lea.hbm %s5018_s2, 16384  ;;  %p2489_p5 = scmp.lt.u32.totalorder %s2777_s19, %s5018_s2 }
  0x57   : > { %p2486_p2 = pnand %p2484_p11, %p2729_p4  ;;  %p2490_p7 = scmp.lt.u32.totalorder %s2488_s6, %s2483_s22 }
  0x58   : > { %p2492_p8 = scmp.lt.u32.totalorder %s2483_s22, %s2777_s19 }
  0x59   : > { %p2487_p3 = pneg %p2486_p2  ;;  %p2491_p10 = por %p2490_p7, %p2489_p5 }
  0x5b   : > { %p2493_p9 = por %p2492_p8, %p2491_p10 }
  0x5d   : > { %p2494_p12 = pnand %p2493_p9, %p2487_p3 }
  0x5f   : > { %2497 = shalt.err (!%p2494_p12)
}
  0x60   : > { %s2498_s1 = scalar_lea.vmem %s2809_s5, 8192  ;;  %s2605_s28 = smov [#allocation7]  }
  0x61   : > { %p2499_p1 = scmp.ne.s32.totalorder %s2809_s5, %s2498_s1  ;;  %s2503_s29 = sshll.u32 %s2605_s28, 4  ;;  %s2504_s29 = int_to_ptr.vmem [resolvable:$false] %s2503_s29 }
  0x62   : > { %s2505_s23 = scalar_lea.vmem %s2504_s29, 16384  ;;  %p2506_p11 = scmp.lt.s32.totalorder %s2809_s5, %s2504_s29 }
  0x63   : > { %p2501_p6 = pnand %p2499_p1, %p2729_p4  ;;  %p2507_p2 = scmp.lt.s32.totalorder %s2505_s23, %s2498_s1 }
  0x65   : > { %p2502_p13 = pneg %p2501_p6  ;;  %p2508_p5 = por %p2507_p2, %p2506_p11 }
  0x67   : > { %p2509_p7 = pnand %p2508_p5, %p2502_p13 }
  0x69   : > { %2512 = shalt.err (!%p2509_p7)
}
  0x6a   : > { %2331 = dma.hbm_to_vmem [thread:$0]  (!%p2707_p0), %s2777_s19, 8192, %s2809_s5, %s2723_s11, %s5057_s20, %s5057_s20, %s5056_s16  }
  0x6b   : > { %p5058_p4 = scmp.ne.s32.totalorder %s5054_s9, 0 }
  0x6d   : > { %233 = sbr.rel (%p5058_p4) target bundleno = 567 (0x237), region = 32 }
  0x74   : > { %s2839_s21 = sand.u32 1, %s2583_s13   ;;  %p5059_p3 = scmp.ne.s32.totalorder %s5045_s24, 0 }
  0x75   : > { %s2842_s10 = sshll.u32 %s2839_s21, 9  ;;  %s236_s4 = scalar_lea.sflag [#allocation3], %s2839_s21 }
  0x76   : > { %s2846_s22 = scalar_lea.vmem [#allocation2], %s2842_s10 }
  0x77   : > { %2566 = dma.done.wait (%p5059_p3), %s236_s4, 8192  }
  0x78   : > { %2568 = vsyncadd (%p5059_p3), %s236_s4, 4294959104  ;;  %s244_s11 = sand.u32 1, %s2660_s18   ;;  %s2854_s9 = scalar_lea.vmem [#allocation5], %s2842_s10 }
  0x79   : > { %s245_s19 = scalar_lea.sflag [#allocation6], %s244_s11 }
  0x7a   : > { %2570 = dma.done.wait (%p5059_p3), %s245_s19, 16384  }
  0x7b   : > { %2572 = vsyncadd (%p5059_p3), %s245_s19, 4294950912  ;;  %v2861_v0 = vld [vmem:[%s2854_s9] sm:$0xff]  ;;  %v2864_v1 = vld [vmem:[%s2854_s9 + $0x8] sm:$0xff]  ;;  %s2931_s18 = scalar_lea.vmem [#allocation7], %s2842_s10  ;;  %s2301_s24 = sshll.u32 %s2839_s21, 7 }
  0x7c   : > { %v2867_v2 = vld [vmem:[%s2854_s9 + $0x10] sm:$0xff]  ;;  %v2870_v3 = vld [vmem:[%s2854_s9 + $0x18] sm:$0xff]  ;;  %v508_v4 = vmul.f32 %v2861_v0, %v2861_v0  ;;  %v524_v5 = vmul.f32 %v2864_v1, %v2864_v1  ;;  %v2881_v9 = vld [vmem:[%s2854_s9 + $0x20] sm:$0xff]  ;;  %s3265_s16 = scalar_lea.vmem [#allocation8], %s2301_s24  ;;  %s2313_s20 = sshll.u32 %s2591_s15, 11 }
  0x7d   : > { %v556_v6 = vmul.f32 %v2867_v2, %v2867_v2  ;;  %v588_v8 = vmul.f32 %v2870_v3, %v2870_v3  ;;  %v2884_v10 = vld [vmem:[%s2854_s9 + $0x28] sm:$0xff]  ;;  %v2887_v12 = vld [vmem:[%s2854_s9 + $0x30] sm:$0xff]  ;;  %v509_v13 = vmul.f32 %v2881_v9, %v2881_v9  ;;  %v2896_v17 = vld [vmem:[%s2854_s9 + $0x38] sm:$0xff]  ;;  %s2154_s5 = sshll.u32 %s3265_s16, 4  ;;  %s4964_s6 = scalar_lea.hbm %s5019_s3, %s2313_s20  ;;  %s4966_s5 = int_to_ptr.vmem [resolvable:$true] %s2154_s5 }
  0x7e   : > { %v540_v7 = vadd.f32 %v524_v5, %v508_v4  ;;  %v525_v14 = vmul.f32 %v2884_v10, %v2884_v10  ;;  %v557_v15 = vmul.f32 %v2887_v12, %v2887_v12  ;;  %v2899_v19 = vld [vmem:[%s2854_s9 + $0x40] sm:$0xff]  ;;  %v2902_v20 = vld [vmem:[%s2854_s9 + $0x48] sm:$0xff]  ;;  %v2908_v22 = vld [vmem:[%s2854_s9 + $0x50] sm:$0xff]  ;;  %v589_v30 = vmul.f32 %v2896_v17, %v2896_v17  ;;  %s2141_s8 = scalar_lea.sflag [#allocation4], %s2839_s21  ;;  %s2513_s26 = scalar_lea.vmem %s4966_s5, 2048 }
  0x7f   : > { %v2905_v21 = vld [vmem:[%s2846_s22] sm:$0xff]  ;;  %v2911_v23 = vld [vmem:[%s2854_s9 + $0x58] sm:$0xff]  ;;  %v510_v24 = vmul.f32 %v2899_v19, %v2899_v19  ;;  %v526_v25 = vmul.f32 %v2902_v20, %v2902_v20  ;;  %v2918_v26 = vld [vmem:[%s2846_s22 + $0x8] sm:$0xff]  ;;  %v558_v31 = vmul.f32 %v2908_v22, %v2908_v22  ;;  %p2514_p0 = scmp.ne.s32.totalorder %s4966_s5, %s2513_s26  ;;  %p5116_p10 = scmp.ne.s32.totalorder %s5046_s25, 0 }
  0x80   : > { %v572_v11 = vadd.f32 %v556_v6, %v540_v7  ;;  %v541_v18 = vadd.f32 %v525_v14, %v509_v13  ;;  %v2921_v27 = vld [vmem:[%s2846_s22 + $0x10] sm:$0xff]  ;;  %v2924_v28 = vld [vmem:[%s2846_s22 + $0x18] sm:$0xff]  ;;  %v2934_v32 = vld [vmem:[%s2931_s18] sm:$0xff]  ;;  %v2944_v35 = vmul.f32 %v2905_v21, %v2905_v21  ;;  %v590_v37 = vmul.f32 %v2911_v23, %v2911_v23  ;;  %s2606_s15 = smov [#allocation8]  }
  0x81   : > { %v2937_v33 = vld [vmem:[%s2931_s18 + $0x8] sm:$0xff]  ;;  %v2940_v34 = vld [vmem:[%s2931_s18 + $0x10] sm:$0xff]  ;;  %v542_v36 = vadd.f32 %v526_v25, %v510_v24  ;;  %v2949_v38 = vld [vmem:[%s2931_s18 + $0x18] sm:$0xff]  ;;  %v2953_v39 = vmul.f32 %v2918_v26, %v2918_v26  ;;  %v2957_v40 = vmul.f32 %v2921_v27, %v2921_v27  ;;  %v2961_v41 = vmul.f32 %v2924_v28, %v2924_v28  ;;  %p2515_p8 = pnand %p2514_p0, %p5116_p10  ;;  %s2517_s1 = sshll.u32 %s2606_s15, 4  ;;  %s2518_s1 = int_to_ptr.vmem [resolvable:$false] %s2517_s1 }
  0x82   : > { %v604_v16 = vadd.f32 %v588_v8, %v572_v11  ;;  %v573_v29 = vadd.f32 %v557_v15, %v541_v18  ;;  %v2965_v42 = vmul.f32 %v2934_v32, %v2934_v32  ;;  %v2968_v43 = vld [vmem:[%s2854_s9 + $0x60] sm:$0xff]  ;;  %v2971_v44 = vld [vmem:[%s2854_s9 + $0x68] sm:$0xff]  ;;  %v2975_v45 = vmul.f32 %v2937_v33, %v2937_v33  ;;  %v2981_v48 = vld [vmem:[%s2854_s9 + $0x70] sm:$0xff]  ;;  %s2519_s28 = scalar_lea.vmem %s2518_s1, 4096  ;;  %p2520_p12 = scmp.lt.s32.totalorder %s4966_s5, %s2518_s1 }
  0x83   : > { %5060 = vst [vmem:[#allocation15_spill] sm:$0xff] %v2968_v43  ;;  %5061 = vst [vmem:[#allocation16_spill] sm:$0xff] %v2971_v44  ;;  %v2978_v46 = vld [vmem:[%s2846_s22 + $0x20] sm:$0xff]  ;;  %v574_v47 = vadd.f32 %v558_v31, %v542_v36  ;;  %v2984_v49 = vld [vmem:[%s2854_s9 + $0x78] sm:$0xff]  ;;  %v511_v50 = vmul.f32 %v2968_v43, %v2968_v43  ;;  %v527_v51 = vmul.f32 %v2971_v44, %v2971_v44  ;;  %p2516_p9 = pneg %p2515_p8  ;;  %p2521_p1 = scmp.lt.s32.totalorder %s2519_s28, %s2513_s26 }
  0x84   : > { %2391 = vrsqrt.f32 %v604_v16  ;;  %5062 = vst [vmem:[#allocation17_spill] sm:$0xff] %v2981_v48  ;;  %5063 = vst [vmem:[#allocation18_spill] sm:$0xff] %v2984_v49  ;;  %v2992_v52 = vmul.f32 %v2940_v34, %v2940_v34  ;;  %v2996_v53 = vmul.f32 %v2949_v38, %v2949_v38  ;;  %v2999_v54 = vld [vmem:[%s2846_s22 + $0x28] sm:$0xff]  ;;  %v3002_v55 = vld [vmem:[%s2846_s22 + $0x30] sm:$0xff]  ;;  %v605_v57 = vadd.f32 %v589_v30, %v573_v29 }
  0x85   : > { %v3005_v56 = vld [vmem:[%s2846_s22 + $0x38] sm:$0xff]  ;;  %v559_v58 = vmul.f32 %v2981_v48, %v2981_v48  ;;  %v3010_v59 = vld [vmem:[%s2931_s18 + $0x20] sm:$0xff]  ;;  %v3013_v60 = vld [vmem:[%s2931_s18 + $0x28] sm:$0xff]  ;;  %v3020_v62 = vmul.f32 %v2978_v46, %v2978_v46  ;;  %v606_v63 = vadd.f32 %v590_v37, %v574_v47  ;;  %v543_v4 = vadd.f32 %v527_v51, %v511_v50  ;;  %p2522_p6 = por %p2521_p1, %p2520_p12 }
  0x86   : > { %5064 = vst [vmem:[#allocation19_spill] sm:$0xff] %v2992_v52  ;;  %5065 = vst [vmem:[#allocation20_spill] sm:$0xff] %v2996_v53  ;;  %v3016_v61 = vld [vmem:[%s2931_s18 + $0x30] sm:$0xff]  ;;  %v591_v5 = vmul.f32 %v2984_v49, %v2984_v49  ;;  %v3025_v6 = vld [vmem:[%s2931_s18 + $0x38] sm:$0xff]  ;;  %v3029_v7 = vmul.f32 %v2999_v54, %v2999_v54  ;;  %v3033_v8 = vmul.f32 %v3002_v55, %v3002_v55  ;;  %2393 = vrsqrt.f32 %v605_v57 }
  0x87   : > { %5066 = vst [vmem:[#allocation21_spill] sm:$0xff] %v3020_v62  ;;  %v3037_v11 = vmul.f32 %v3005_v56, %v3005_v56  ;;  %v3041_v13 = vmul.f32 %v3010_v59, %v3010_v59  ;;  %v3044_v14 = vld [vmem:[%s2846_s22 + $0x40] sm:$0xff]  ;;  %v3047_v15 = vld [vmem:[%s2846_s22 + $0x48] sm:$0xff]  ;;  %v3051_v16 = vmul.f32 %v3013_v60, %v3013_v60  ;;  %v3055_v18 = vmul.f32 %v3016_v61, %v3016_v61  ;;  %v3062_v25 = vld [vmem:[%s2846_s22 + $0x50] sm:$0xff]  ;;  %p2523_p13 = pnand %p2522_p6, %p2516_p9 }
  0x88   : > { %5067 = vst [vmem:[#allocation22_spill] sm:$0xff] %v3029_v7  ;;  %5068 = vst [vmem:[#allocation23_spill] sm:$0xff] %v3033_v8  ;;  %v3059_v24 = vmul.f32 %v3025_v6, %v3025_v6  ;;  %v3065_v29 = vld [vmem:[%s2846_s22 + $0x58] sm:$0xff]  ;;  %v3068_v30 = vld [vmem:[%s2931_s18 + $0x40] sm:$0xff]  ;;  %v575_v31 = vadd.f32 %v559_v58, %v543_v4  ;;  %v3072_v36 = vmul.f32 %v3044_v14, %v3044_v14  ;;  %2395 = vrsqrt.f32 %v606_v63 }
  0x89   : > { %5069 = vst [vmem:[#allocation24_spill] sm:$0xff] %v3037_v11  ;;  %5070 = vst [vmem:[#allocation25_spill] sm:$0xff] %v3041_v13  ;;  %v3076_v37 = vmul.f32 %v3047_v15, %v3047_v15  ;;  %v3080_v47 = vmul.f32 %v3062_v25, %v3062_v25  ;;  %v3083_v50 = vld [vmem:[%s2854_s9 + $0x80] sm:$0xff]  ;;  %v3086_v51 = vld [vmem:[%s2854_s9 + $0x88] sm:$0xff]  ;;  %v3093_v57 = vmul.f32 %v3065_v29, %v3065_v29 }
  0x8a   : > { %5071 = vst [vmem:[#allocation26_spill] sm:$0xff] %v3051_v16  ;;  %5072 = vst [vmem:[#allocation27_spill] sm:$0xff] %v3055_v18  ;;  %v3097_v4 = vmul.f32 %v3068_v30, %v3068_v30  ;;  %v3105_v63 = vmul.f32 %v3083_v50, %v3083_v50 }
  0x8b   : > { %5073 = vst [vmem:[#allocation28_spill] sm:$0xff] %v3059_v24  ;;  %5074 = vst [vmem:[#allocation29_spill] sm:$0xff] %v3065_v29  ;;  %v3089_v24 = vld [vmem:[%s2854_s9 + $0x90] sm:$0xff] }
  0x8c   : > { %5075 = vst [vmem:[#allocation30_spill] sm:$0xff] %v3068_v30  ;;  %5076 = vst [vmem:[#allocation31_spill] sm:$0xff] %v3072_v36 }
  0x8d   : > { %5077 = vst [vmem:[#allocation32_spill] sm:$0xff] %v3076_v37  ;;  %5078 = vst [vmem:[#allocation33_spill] sm:$0xff] %v3080_v47  ;;  %v607_v37 = vadd.f32 %v591_v5, %v575_v31  ;;  %v3113_v5 = vmul.f32 %v3089_v24, %v3089_v24 }
  0x8e   : > { %5079 = vst [vmem:[#allocation34_spill] sm:$0xff] %v3083_v50  ;;  %5080 = vst [vmem:[#allocation35_spill] sm:$0xff] %v3086_v51  ;;  %v2392_v58 = vpop.eup %2391 }
  0x8f   : > { %5081 = vst [vmem:[#allocation36_spill] sm:$0xff] %v3089_v24  ;;  %5082 = vst [vmem:[#allocation37_spill] sm:$0xff] %v3093_v57  ;;  %v636_v36 = vmul.f32 %v2392_v58, %v2861_v0  ;;  %v652_v47 = vmul.f32 %v2392_v58, %v2864_v1  ;;  %v668_v18 = vmul.f32 %v2392_v58, %v2867_v2  ;;  %2397 = vrsqrt.f32 %v607_v37 }
  0x90   : > { %5083 = vst [vmem:[#allocation38_spill] sm:$0xff] %v3097_v4  ;;  %v684_v16 = vmul.f32 %v2392_v58, %v2870_v3  ;;  %5084 = vst [vmem:[#allocation39_spill] sm:$0xff] %v3105_v63  ;;  %v3109_v57 = vmul.f32 %v3086_v51, %v3086_v51  ;;  %v2394_v62 = vpop.eup %2393 }
  0x91   : > { %5086 = vst [vmem:[#allocation41_spill] sm:$0xff] %v3113_v5  ;;  %v700_v0 = vmul.f32 %v636_v36, %v2905_v21  ;;  %v716_v1 = vmul.f32 %v652_v47, %v2918_v26  ;;  %v748_v2 = vmul.f32 %v668_v18, %v2921_v27  ;;  %v812_v31 = vmul.f32 %v652_v47, %v2905_v21 }
  0x92   : > { %5085 = vst [vmem:[#allocation40_spill] sm:$0xff] %v3109_v57  ;;  %v780_v3 = vmul.f32 %v684_v16, %v2924_v28  ;;  %v828_v37 = vmul.f32 %v636_v36, %v2918_v26  ;;  %v860_v58 = vmul.f32 %v684_v16, %v2921_v27  ;;  %v892_v51 = vmul.f32 %v668_v18, %v2924_v28 }
  0x93   : > { %v732_v50 = vsub.f32 %v700_v0, %v716_v1  ;;  %v924_v24 = vmul.f32 %v668_v18, %v2905_v21  ;;  %v940_v4 = vmul.f32 %v684_v16, %v2918_v26  ;;  %v972_v5 = vmul.f32 %v636_v36, %v2921_v27 }
  0x94   : > { %v844_v57 = vadd.f32 %v828_v37, %v812_v31  ;;  %v1004_v63 = vmul.f32 %v652_v47, %v2924_v28  ;;  %v1036_v49 = vmul.f32 %v684_v16, %v2905_v21  ;;  %v1052_v13 = vmul.f32 %v668_v18, %v2918_v26  ;;  %v3135_v26 = vpop.eup %2395 }
  0x95   : > { %v764_v48 = vsub.f32 %v732_v50, %v748_v2  ;;  %v956_v44 = vsub.f32 %v924_v24, %v940_v4  ;;  %v1084_v43 = vmul.f32 %v652_v47, %v2921_v27  ;;  %v1116_v11 = vmul.f32 %v636_v36, %v2924_v28 }
  0x96   : > { %v876_v0 = vadd.f32 %v860_v58, %v844_v57  ;;  %v1068_v1 = vadd.f32 %v1052_v13, %v1036_v49  ;;  %v1148_v8 = vmul.f32 %v636_v36, %v2934_v32  ;;  %v1164_v7 = vmul.f32 %v652_v47, %v2937_v33 }
  0x97   : > { %v796_v31 = vsub.f32 %v764_v48, %v780_v3  ;;  %v988_v37 = vadd.f32 %v972_v5, %v956_v44  ;;  %v1196_v30 = vmul.f32 %v668_v18, %v2940_v34  ;;  %v1228_v21 = vmul.f32 %v684_v16, %v2949_v38 }
  0x98   : > { %v908_v24 = vsub.f32 %v876_v0, %v892_v51  ;;  %v1100_v50 = vsub.f32 %v1068_v1, %v1084_v43  ;;  %v1180_v27 = vadd.f32 %v1164_v7, %v1148_v8  ;;  %v1260_v28 = vmul.f32 %v636_v36, %v2937_v33 }
  0x99   : > { %v1020_v57 = vadd.f32 %v1004_v63, %v988_v37  ;;  %v1276_v49 = vmul.f32 %v652_v47, %v2934_v32  ;;  %v1308_v13 = vmul.f32 %v684_v16, %v2940_v34  ;;  %v1340_v4 = vmul.f32 %v668_v18, %v2949_v38  ;;  %v3141_v48 = vpop.eup %2397 }
  0x9a   : > { %5087 = vst [vmem:[#allocation42_spill] sm:$0xff] %v3141_v48  ;;  %v1132_v44 = vadd.f32 %v1116_v11, %v1100_v50  ;;  %v1212_v5 = vadd.f32 %v1196_v30, %v1180_v27  ;;  %v1372_v2 = vmul.f32 %v636_v36, %v2940_v34  ;;  %v1388_v3 = vmul.f32 %v668_v18, %v2934_v32 }
  0x9b   : > { %v1292_v51 = vsub.f32 %v1260_v28, %v1276_v49  ;;  %v1420_v43 = vmul.f32 %v684_v16, %v2937_v33  ;;  %v1452_v7 = vmul.f32 %v652_v47, %v2949_v38  ;;  %v1484_v8 = vmul.f32 %v636_v36, %v2949_v38 }
  0x9c   : > { %v1244_v63 = vadd.f32 %v1228_v21, %v1212_v5  ;;  %v1404_v58 = vsub.f32 %v1372_v2, %v1388_v3  ;;  %v1500_v0 = vmul.f32 %v684_v16, %v2934_v32  ;;  %v1532_v1 = vmul.f32 %v668_v18, %v2937_v33 }
  0x9d   : > { %v1324_v37 = vsub.f32 %v1292_v51, %v1308_v13  ;;  %v1564_v11 = vmul.f32 %v652_v47, %v2940_v34  ;;  %v1596_v30 = vmul.f32 %v796_v31, %v796_v31  ;;  %v1612_v50 = vmul.f32 %v908_v24, %v908_v24 }
  0x9e   : > { %v1436_v27 = vadd.f32 %v1420_v43, %v1404_v58  ;;  %v1516_v48 = vsub.f32 %v1484_v8, %v1500_v0  ;;  %v1644_v28 = vmul.f32 %v1020_v57, %v1020_v57  ;;  %v1676_v49 = vmul.f32 %v1132_v44, %v1132_v44 }
  0x9f   : > { %v1356_v53 = vadd.f32 %v1340_v4, %v1324_v37  ;;  %v1628_v52 = vadd.f32 %v1612_v50, %v1596_v30  ;;  %v1708_v29 = vmul.f32 %v1244_v63, %v1244_v63  ;;  %v637_v38 = vmul.f32 %v2394_v62, %v2881_v9 }
  0xa0   : > { %v1468_v36 = vsub.f32 %v1436_v27, %v1452_v7  ;;  %v1548_v21 = vsub.f32 %v1516_v48, %v1532_v1  ;;  %v3153_v32 = vmul.f32 %v2394_v62, %v2884_v10  ;;  %v669_v33 = vmul.f32 %v2394_v62, %v2887_v12 }
  0xa1   : > { %v1660_v16 = vadd.f32 %v1644_v28, %v1628_v52  ;;  %v1740_v34 = vmul.f32 %v1356_v53, %v1356_v53  ;;  %v685_v18 = vmul.f32 %v2394_v62, %v2896_v17  ;;  %v701_v47 = vmul.f32 %v637_v38, %v2978_v46 }
  0xa2   : > { %v1580_v31 = vadd.f32 %v1564_v11, %v1548_v21  ;;  %v1772_v24 = vmul.f32 %v1468_v36, %v1468_v36  ;;  %v717_v57 = vmul.f32 %v3153_v32, %v2999_v54  ;;  %v749_v9 = vmul.f32 %v669_v33, %v3002_v55 }
  0xa3   : > { %v1692_v13 = vadd.f32 %v1676_v49, %v1660_v16  ;;  %v781_v4 = vmul.f32 %v685_v18, %v3005_v56  ;;  %v813_v10 = vmul.f32 %v3153_v32, %v2978_v46  ;;  %v829_v12 = vmul.f32 %v637_v38, %v2999_v54 }
  0xa4   : > { %v1804_v52 = vmul.f32 %v1580_v31, %v1580_v31  ;;  %v733_v53 = vsub.f32 %v701_v47, %v717_v57  ;;  %v861_v17 = vmul.f32 %v685_v18, %v3002_v55  ;;  %v893_v62 = vmul.f32 %v669_v33, %v3005_v56 }
  0xa5   : > { %v1724_v48 = vadd.f32 %v1708_v29, %v1692_v13  ;;  %v845_v44 = vadd.f32 %v829_v12, %v813_v10  ;;  %v925_v5 = vmul.f32 %v669_v33, %v2978_v46  ;;  %v941_v2 = vmul.f32 %v685_v18, %v2999_v54 }
  0xa6   : > { %v765_v3 = vsub.f32 %v733_v53, %v749_v9  ;;  %v973_v51 = vmul.f32 %v637_v38, %v3002_v55  ;;  %v1005_v43 = vmul.f32 %v3153_v32, %v3005_v56  ;;  %v1037_v7 = vmul.f32 %v685_v18, %v2978_v46 }
  0xa7   : > { %v1756_v8 = vadd.f32 %v1740_v34, %v1724_v48  ;;  %v877_v63 = vadd.f32 %v861_v17, %v845_v44  ;;  %v957_v58 = vsub.f32 %v925_v5, %v941_v2  ;;  %v1053_v0 = vmul.f32 %v669_v33, %v2999_v54 }
  0xa8   : > { %v797_v1 = vsub.f32 %v765_v3, %v781_v4  ;;  %v1085_v29 = vmul.f32 %v3153_v32, %v3002_v55  ;;  %v1117_v37 = vmul.f32 %v637_v38, %v3005_v56  ;;  %v1149_v11 = vmul.f32 %v637_v38, %v3010_v59 }
  0xa9   : > { %v1788_v30 = vadd.f32 %v1772_v24, %v1756_v8  ;;  %v909_v50 = vsub.f32 %v877_v63, %v893_v62  ;;  %v989_v27 = vadd.f32 %v973_v51, %v957_v58  ;;  %v1069_v28 = vadd.f32 %v1053_v0, %v1037_v7 }
  0xaa   : > { %v1165_v46 = vmul.f32 %v3153_v32, %v3013_v60  ;;  %v1197_v49 = vmul.f32 %v669_v33, %v3016_v61  ;;  %v1229_v36 = vmul.f32 %v685_v18, %v3025_v6  ;;  %v1261_v54 = vmul.f32 %v637_v38, %v3013_v60 }
  0xab   : > { %v1820_v21 = vadd.f32 %v1804_v52, %v1788_v30  ;;  %v1021_v16 = vadd.f32 %v1005_v43, %v989_v27  ;;  %v1101_v55 = vsub.f32 %v1069_v28, %v1085_v29  ;;  %v1277_v56 = vmul.f32 %v3153_v32, %v3010_v59  ;;  %v5088_v30 = vld [vmem:[#allocation29_spill] sm:$0xff] }
  0xac   : > { %v1181_v34 = vadd.f32 %v1165_v46, %v1149_v11  ;;  %v1309_v47 = vmul.f32 %v685_v18, %v3016_v61  ;;  %v1341_v31 = vmul.f32 %v669_v33, %v3025_v6  ;;  %v1373_v24 = vmul.f32 %v637_v38, %v3016_v61 }
  0xad   : > { %v1852_v57 = vadd.f32 %v2944_v35, %v1820_v21  ;;  %v1133_v9 = vadd.f32 %v1117_v37, %v1101_v55  ;;  %v1293_v13 = vsub.f32 %v1261_v54, %v1277_v56  ;;  %v1389_v4 = vmul.f32 %v669_v33, %v3010_v59 }
  0xae   : > { %v1213_v10 = vadd.f32 %v1197_v49, %v1181_v34  ;;  %v1421_v12 = vmul.f32 %v685_v18, %v3013_v60  ;;  %v1453_v52 = vmul.f32 %v3153_v32, %v3025_v6  ;;  %v1485_v53 = vmul.f32 %v637_v38, %v3025_v6  ;;  %v5089_v49 = vld [vmem:[#allocation19_spill] sm:$0xff] }
  0xaf   : > { %v1884_v17 = vadd.f32 %v2953_v39, %v1852_v57  ;;  %v1325_v62 = vsub.f32 %v1293_v13, %v1309_v47  ;;  %v1405_v48 = vsub.f32 %v1373_v24, %v1389_v4  ;;  %v1501_v44 = vmul.f32 %v685_v18, %v3010_v59  ;;  %v5090_v47 = vld [vmem:[#allocation20_spill] sm:$0xff] }
  0xb0   : > { %v1245_v5 = vadd.f32 %v1229_v36, %v1213_v10  ;;  %v1533_v35 = vmul.f32 %v669_v33, %v3013_v60  ;;  %v1565_v2 = vmul.f32 %v3153_v32, %v3016_v61  ;;  %v1597_v3 = vmul.f32 %v797_v1, %v797_v1  ;;  %v3249_v4 = vld [vmem:[%s2931_s18 + $0x48] sm:$0xff]  ;;  %v3252_v10 = vld [vmem:[%s2931_s18 + $0x50] sm:$0xff] }
  0xb1   : > { %v1916_v51 = vadd.f32 %v2957_v40, %v1884_v17  ;;  %v1357_v43 = vadd.f32 %v1341_v31, %v1325_v62  ;;  %v1437_v7 = vadd.f32 %v1421_v12, %v1405_v48  ;;  %v1517_v8 = vsub.f32 %v1485_v53, %v1501_v44  ;;  %v3255_v12 = vld [vmem:[%s2931_s18 + $0x58] sm:$0xff] }
  0xb2   : > { %v1613_v63 = vmul.f32 %v909_v50, %v909_v50  ;;  %v1645_v6 = vmul.f32 %v1021_v16, %v1021_v16  ;;  %v1677_v38 = vmul.f32 %v1133_v9, %v1133_v9  ;;  %v1709_v39 = vmul.f32 %v1245_v5, %v1245_v5 }
  0xb3   : > { %v1948_v58 = vadd.f32 %v2961_v41, %v1916_v51  ;;  %v1469_v0 = vsub.f32 %v1437_v7, %v1453_v52  ;;  %v1549_v59 = vsub.f32 %v1517_v8, %v1533_v35  ;;  %v1741_v18 = vmul.f32 %v1357_v43, %v1357_v43 }
  0xb4   : > { %v1629_v29 = vadd.f32 %v1613_v63, %v1597_v3  ;;  %v3203_v60 = vmul.f32 %v3135_v26, %v2899_v19  ;;  %v3207_v40 = vmul.f32 %v3135_v26, %v2902_v20  ;;  %v3211_v61 = vmul.f32 %v3135_v26, %v2908_v22 }
  0xb5   : > { %v1980_v32 = vadd.f32 %v2965_v42, %v1948_v58  ;;  %v1581_v41 = vadd.f32 %v1565_v2, %v1549_v59  ;;  %v1773_v33 = vmul.f32 %v1469_v0, %v1469_v0  ;;  %v3216_v1 = vmul.f32 %v3135_v26, %v2911_v23  ;;  %v5091_v2 = vld [vmem:[#allocation30_spill] sm:$0xff]  ;;  %v5092_v59 = vld [vmem:[#allocation21_spill] sm:$0xff] }
  0xb6   : > { %v1661_v37 = vadd.f32 %v1645_v6, %v1629_v29  ;;  %v702_v19 = vmul.f32 %v3203_v60, %v3044_v14  ;;  %v718_v20 = vmul.f32 %v3207_v40, %v3047_v15  ;;  %v750_v22 = vmul.f32 %v3211_v61, %v3062_v25 }
  0xb7   : > { %v2012_v11 = vadd.f32 %v2975_v45, %v1980_v32  ;;  %v1805_v42 = vmul.f32 %v1581_v41, %v1581_v41  ;;  %v782_v50 = vmul.f32 %v3216_v1, %v5088_v30  ;;  %v814_v23 = vmul.f32 %v3207_v40, %v3044_v14 }
  0xb8   : > { %v1693_v26 = vadd.f32 %v1677_v38, %v1661_v37  ;;  %v734_v27 = vsub.f32 %v702_v19, %v718_v20  ;;  %v830_v28 = vmul.f32 %v3203_v60, %v3047_v15  ;;  %v862_v46 = vmul.f32 %v3216_v1, %v3062_v25 }
  0xb9   : > { %v2044_v45 = vadd.f32 %v5089_v49, %v2012_v11  ;;  %v894_v36 = vmul.f32 %v3211_v61, %v5088_v30  ;;  %v926_v54 = vmul.f32 %v3211_v61, %v3044_v14  ;;  %v942_v21 = vmul.f32 %v3216_v1, %v3047_v15 }
  0xba   : > { %v1725_v16 = vadd.f32 %v1709_v39, %v1693_v26  ;;  %v766_v55 = vsub.f32 %v734_v27, %v750_v22  ;;  %v846_v56 = vadd.f32 %v830_v28, %v814_v23  ;;  %v974_v34 = vmul.f32 %v3203_v60, %v3062_v25  ;;  %v5093_v22 = vld [vmem:[#allocation22_spill] sm:$0xff] }
  0xbb   : > { %v2076_v31 = vadd.f32 %v5090_v47, %v2044_v45  ;;  %v958_v24 = vsub.f32 %v926_v54, %v942_v21  ;;  %v1006_v57 = vmul.f32 %v3207_v40, %v5088_v30  ;;  %v1038_v9 = vmul.f32 %v3216_v1, %v3044_v14  ;;  %v3297_v23 = vld [vmem:[%s2854_s9 + $0x98] sm:$0xff] }
  0xbc   : > { %v1757_v13 = vadd.f32 %v1741_v18, %v1725_v16  ;;  %v798_v52 = vsub.f32 %v766_v55, %v782_v50  ;;  %v878_v53 = vadd.f32 %v862_v46, %v846_v56  ;;  %v1054_v17 = vmul.f32 %v3211_v61, %v3047_v15  ;;  %v5094_v46 = vld [vmem:[#allocation23_spill] sm:$0xff]  ;;  %v5095_v56 = vld [vmem:[#allocation24_spill] sm:$0xff] }
  0xbd   : > { %v990_v62 = vadd.f32 %v974_v34, %v958_v24  ;;  %v1086_v48 = vmul.f32 %v3207_v40, %v3062_v25  ;;  %v1118_v44 = vmul.f32 %v3203_v60, %v5088_v30  ;;  %v1150_v3 = vmul.f32 %v3203_v60, %v5091_v2  ;;  %2124 = vst [vmem:[%s3265_s16] sm:$0xff] %v2076_v31  ;;  %v3310_v31 = vld [vmem:[%s2846_s22 + $0x60] sm:$0xff]  ;;  %v3313_v24 = vld [vmem:[%s2846_s22 + $0x68] sm:$0xff] }
  0xbe   : > { %v1789_v14 = vadd.f32 %v1773_v33, %v1757_v13  ;;  %v910_v5 = vsub.f32 %v878_v53, %v894_v36  ;;  %v1070_v35 = vadd.f32 %v1054_v17, %v1038_v9  ;;  %v1166_v15 = vmul.f32 %v3207_v40, %v3249_v4  ;;  %v5096_v13 = vld [vmem:[#allocation15_spill] sm:$0xff]  ;;  %v5098_v17 = vld [vmem:[#allocation16_spill] sm:$0xff] }
  0xbf   : > { %v1022_v51 = vadd.f32 %v1006_v57, %v990_v62  ;;  %v1198_v25 = vmul.f32 %v3211_v61, %v3252_v10  ;;  %v1230_v43 = vmul.f32 %v3216_v1, %v3255_v12  ;;  %v1262_v63 = vmul.f32 %v3203_v60, %v3249_v4  ;;  %v3316_v57 = vld [vmem:[%s2846_s22 + $0x70] sm:$0xff] }
  0xc0   : > { %v1821_v7 = vadd.f32 %v1805_v42, %v1789_v14  ;;  %v1102_v8 = vsub.f32 %v1070_v35, %v1086_v48  ;;  %v1278_v6 = vmul.f32 %v3207_v40, %v5091_v2  ;;  %v1182_v38 = vadd.f32 %v1166_v15, %v1150_v3  ;;  %v5099_v48 = vld [vmem:[#allocation17_spill] sm:$0xff]  ;;  %v5101_v3 = vld [vmem:[#allocation18_spill] sm:$0xff] }
  0xc1   : > { %v1310_v39 = vmul.f32 %v3216_v1, %v3252_v10  ;;  %v1342_v58 = vmul.f32 %v3211_v61, %v3255_v12  ;;  %v1374_v0 = vmul.f32 %v3203_v60, %v3252_v10  ;;  %v1390_v41 = vmul.f32 %v3211_v61, %v5091_v2  ;;  %v5100_v14 = vld [vmem:[#allocation25_spill] sm:$0xff] }
  0xc2   : > { %v1853_v18 = vadd.f32 %v5092_v59, %v1821_v7  ;;  %v1134_v29 = vadd.f32 %v1118_v44, %v1102_v8  ;;  %v1294_v32 = vsub.f32 %v1262_v63, %v1278_v6  ;;  %v1214_v33 = vadd.f32 %v1198_v25, %v1182_v38  ;;  %v3336_v25 = vld [vmem:[%s2846_s22 + $0x78] sm:$0xff] }
  0xc3   : > { %v1422_v37 = vmul.f32 %v3216_v1, %v3249_v4  ;;  %v1454_v19 = vmul.f32 %v3207_v40, %v3255_v12  ;;  %v1486_v20 = vmul.f32 %v3203_v60, %v3255_v12  ;;  %v1406_v30 = vsub.f32 %v1374_v0, %v1390_v41  ;;  %v5102_v63 = vld [vmem:[#allocation26_spill] sm:$0xff] }
  0xc4   : > { %v1885_v11 = vadd.f32 %v5093_v22, %v1853_v18  ;;  %v1326_v42 = vsub.f32 %v1294_v32, %v1310_v39  ;;  %v1502_v50 = vmul.f32 %v3216_v1, %v5091_v2  ;;  %v1246_v26 = vadd.f32 %v1230_v43, %v1214_v33  ;;  %v5103_v32 = vld [vmem:[#allocation27_spill] sm:$0xff] }
  0xc5   : > { %v1534_v27 = vmul.f32 %v3211_v61, %v3249_v4  ;;  %v1566_v28 = vmul.f32 %v3207_v40, %v3252_v10  ;;  %v1598_v60 = vmul.f32 %v798_v52, %v798_v52  ;;  %v1438_v36 = vadd.f32 %v1422_v37, %v1406_v30  ;;  %v5097_v52 = vld [vmem:[#allocation42_spill] sm:$0xff]  ;;  %v5104_v30 = vld [vmem:[#allocation28_spill] sm:$0xff] }
  0xc6   : > { %v1917_v49 = vadd.f32 %v5094_v46, %v1885_v11  ;;  %v1358_v45 = vadd.f32 %v1342_v58, %v1326_v42  ;;  %v1518_v54 = vsub.f32 %v1486_v20, %v1502_v50  ;;  %v1614_v21 = vmul.f32 %v910_v5, %v910_v5 }
  0xc7   : > { %v1646_v1 = vmul.f32 %v1022_v51, %v1022_v51  ;;  %v1678_v16 = vmul.f32 %v1134_v29, %v1134_v29  ;;  %v3306_v55 = vmul.f32 %v3297_v23, %v3297_v23  ;;  %v1470_v34 = vsub.f32 %v1438_v36, %v1454_v19 }
  0xc8   : > { %v1949_v61 = vadd.f32 %v5095_v56, %v1917_v49  ;;  %v1550_v47 = vsub.f32 %v1518_v54, %v1534_v27  ;;  %v1710_v40 = vmul.f32 %v1246_v26, %v1246_v26  ;;  %v1630_v9 = vadd.f32 %v1614_v21, %v1598_v60  ;;  %v3362_v26 = vld [vmem:[%s2931_s18 + $0x60] sm:$0xff]  ;;  %v3369_v49 = vld [vmem:[%s2931_s18 + $0x68] sm:$0xff] }
  0xc9   : > { %v3320_v53 = vmul.f32 %v5097_v52, %v5096_v13  ;;  %v3324_v62 = vmul.f32 %v5097_v52, %v5098_v17  ;;  %v3328_v44 = vmul.f32 %v5097_v52, %v5099_v48  ;;  %v1742_v2 = vmul.f32 %v1358_v45, %v1358_v45  ;;  %v3372_v45 = vld [vmem:[%s2931_s18 + $0x70] sm:$0xff]  ;;  %v5105_v56 = vld [vmem:[#allocation39_spill] sm:$0xff] }
  0xca   : > { %v1981_v5 = vadd.f32 %v5100_v14, %v1949_v61  ;;  %v1582_v35 = vadd.f32 %v1566_v28, %v1550_v47  ;;  %v3333_v51 = vmul.f32 %v5097_v52, %v5101_v3  ;;  %v1662_v15 = vadd.f32 %v1646_v1, %v1630_v9  ;;  %v5106_v61 = vld [vmem:[#allocation40_spill] sm:$0xff]  ;;  %v3386_v52 = vld [vmem:[%s2931_s18 + $0x78] sm:$0xff] }
  0xcb   : > { %v703_v43 = vmul.f32 %v3320_v53, %v3310_v31  ;;  %v719_v7 = vmul.f32 %v3324_v62, %v3313_v24  ;;  %v751_v8 = vmul.f32 %v3328_v44, %v3316_v57  ;;  %v1774_v38 = vmul.f32 %v1470_v34, %v1470_v34 }
  0xcc   : > { %v2013_v6 = vadd.f32 %v5102_v63, %v1981_v5  ;;  %v1806_v39 = vmul.f32 %v1582_v35, %v1582_v35  ;;  %v815_v58 = vmul.f32 %v3324_v62, %v3310_v31  ;;  %v1694_v0 = vadd.f32 %v1678_v16, %v1662_v15 }
  0xcd   : > { %v735_v59 = vsub.f32 %v703_v43, %v719_v7  ;;  %v831_v18 = vmul.f32 %v3320_v53, %v3313_v24  ;;  %v863_v29 = vmul.f32 %v3333_v51, %v3316_v57  ;;  %v783_v33 = vmul.f32 %v3333_v51, %v3336_v25 }
  0xce   : > { %v2045_v41 = vadd.f32 %v5103_v32, %v2013_v6  ;;  %v927_v37 = vmul.f32 %v3328_v44, %v3310_v31  ;;  %v943_v19 = vmul.f32 %v3333_v51, %v3313_v24  ;;  %v1726_v20 = vadd.f32 %v1710_v40, %v1694_v0  ;;  %v5107_v6 = vld [vmem:[#allocation31_spill] sm:$0xff] }
  0xcf   : > { %v767_v22 = vsub.f32 %v735_v59, %v751_v8  ;;  %v847_v11 = vadd.f32 %v831_v18, %v815_v58  ;;  %v975_v42 = vmul.f32 %v3320_v53, %v3316_v57  ;;  %v895_v27 = vmul.f32 %v3328_v44, %v3336_v25 }
  0xd0   : > { %v2077_v50 = vadd.f32 %v5104_v30, %v2045_v41  ;;  %v959_v28 = vsub.f32 %v927_v37, %v943_v19  ;;  %v1039_v60 = vmul.f32 %v3333_v51, %v3310_v31  ;;  %v1758_v46 = vadd.f32 %v1742_v2, %v1726_v20  ;;  %v5108_v41 = vld [vmem:[#allocation32_spill] sm:$0xff]  ;;  %v5109_v30 = vld [vmem:[#allocation41_spill] sm:$0xff] }
  0xd1   : > { %v879_v36 = vadd.f32 %v863_v29, %v847_v11  ;;  %v1007_v54 = vmul.f32 %v3324_v62, %v3336_v25  ;;  %v1055_v21 = vmul.f32 %v3328_v44, %v3313_v24  ;;  %v1087_v16 = vmul.f32 %v3324_v62, %v3316_v57 }
  0xd2   : > { %v991_v1 = vadd.f32 %v975_v42, %v959_v28  ;;  %v544_v34 = vadd.f32 %v5106_v61, %v5105_v56  ;;  %v1790_v47 = vadd.f32 %v1774_v38, %v1758_v46  ;;  %v799_v40 = vsub.f32 %v767_v22, %v783_v33  ;;  %2125 = vst [vmem:[%s3265_s16 + $0x8] sm:$0xff] %v2077_v50  ;;  %v5110_v28 = vld [vmem:[#allocation33_spill] sm:$0xff] }
  0xd3   : > { %v1071_v9 = vadd.f32 %v1055_v21, %v1039_v60  ;;  %v1151_v13 = vmul.f32 %v3320_v53, %v3362_v26  ;;  %v911_v17 = vsub.f32 %v879_v36, %v895_v27  ;;  %v1119_v48 = vmul.f32 %v3320_v53, %v3336_v25  ;;  %v3420_v27 = vld [vmem:[%s2854_s9 + $0xa0] sm:$0xff] }
  0xd4   : > { %v1167_v14 = vmul.f32 %v3324_v62, %v3369_v49  ;;  %v1199_v5 = vmul.f32 %v3328_v44, %v3372_v45  ;;  %v1822_v35 = vadd.f32 %v1806_v39, %v1790_v47  ;;  %v1023_v2 = vadd.f32 %v1007_v54, %v991_v1  ;;  %v5111_v1 = vld [vmem:[#allocation37_spill] sm:$0xff] }
  0xd5   : > { %v1263_v3 = vmul.f32 %v3320_v53, %v3369_v49  ;;  %v1279_v15 = vmul.f32 %v3324_v62, %v3362_v26  ;;  %v1103_v43 = vsub.f32 %v1071_v9, %v1087_v16  ;;  %v1311_v8 = vmul.f32 %v3333_v51, %v3372_v45 }
  0xd6   : > { %v1183_v7 = vadd.f32 %v1167_v14, %v1151_v13  ;;  %v1375_v63 = vmul.f32 %v3320_v53, %v3372_v45  ;;  %v1854_v38 = vadd.f32 %v5107_v6, %v1822_v35  ;;  %v1231_v39 = vmul.f32 %v3333_v51, %v3386_v52  ;;  %v3443_v35 = vld [vmem:[%s2854_s9 + $0xb8] sm:$0xff] }
  0xd7   : > { %v1295_v58 = vsub.f32 %v1263_v3, %v1279_v15  ;;  %v1391_v0 = vmul.f32 %v3328_v44, %v3362_v26  ;;  %v1343_v18 = vmul.f32 %v3328_v44, %v3386_v52  ;;  %v1423_v29 = vmul.f32 %v3333_v51, %v3369_v49 }
  0xd8   : > { %v1215_v59 = vadd.f32 %v1199_v5, %v1183_v7  ;;  %v1487_v32 = vmul.f32 %v3320_v53, %v3386_v52  ;;  %v1886_v33 = vadd.f32 %v5108_v41, %v1854_v38  ;;  %v1503_v20 = vmul.f32 %v3333_v51, %v3362_v26 }
  0xd9   : > { %v1327_v37 = vsub.f32 %v1295_v58, %v1311_v8  ;;  %v1407_v19 = vsub.f32 %v1375_v63, %v1391_v0  ;;  %v1135_v22 = vadd.f32 %v1119_v48, %v1103_v43  ;;  %v1535_v11 = vmul.f32 %v3328_v44, %v3369_v49  ;;  %v3437_v48 = vld [vmem:[%s2854_s9 + $0xb0] sm:$0xff]  ;;  %v3457_v58 = vld [vmem:[%s2854_s9 + $0xc8] sm:$0xff] }
  0xda   : > { %v1599_v42 = vmul.f32 %v799_v40, %v799_v40  ;;  %v576_v50 = vadd.f32 %v5109_v30, %v544_v34  ;;  %v1918_v60 = vadd.f32 %v5110_v28, %v1886_v33  ;;  %v1998_v53 = vmul.f32 %v3249_v4, %v3249_v4  ;;  %v3431_v34 = vld [vmem:[%s2854_s9 + $0xa8] sm:$0xff]  ;;  %v3488_v28 = vld [vmem:[%s2854_s9 + $0xd8] sm:$0xff] }
  0xdb   : > { %v1247_v46 = vadd.f32 %v1231_v39, %v1215_v59  ;;  %v1519_v36 = vsub.f32 %v1487_v32, %v1503_v20  ;;  %v1439_v54 = vadd.f32 %v1423_v29, %v1407_v19  ;;  %v1455_v51 = vmul.f32 %v3324_v62, %v3386_v52  ;;  %v3454_v39 = vld [vmem:[%s2854_s9 + $0xc0] sm:$0xff] }
  0xdc   : > { %v1615_v21 = vmul.f32 %v911_v17, %v911_v17  ;;  %v1647_v44 = vmul.f32 %v1023_v2, %v1023_v2  ;;  %v1950_v16 = vadd.f32 %v5111_v1, %v1918_v60  ;;  %v1359_v56 = vadd.f32 %v1343_v18, %v1327_v37  ;;  %v5112_v17 = vld [vmem:[#allocation38_spill] sm:$0xff]  ;;  %v3466_v37 = vld [vmem:[%s2854_s9 + $0xd0] sm:$0xff]  ;;  %v3515_v1 = vld [vmem:[%s2854_s9 + $0xe8] sm:$0xff] }
  0xdd   : > { %v1567_v61 = vmul.f32 %v3324_v62, %v3372_v45  ;;  %v513_v4 = vmul.f32 %v3420_v27, %v3420_v27  ;;  %v1551_v47 = vsub.f32 %v1519_v36, %v1535_v11  ;;  %v1679_v9 = vmul.f32 %v1135_v22, %v1135_v22 }
  0xde   : > { %v1631_v40 = vadd.f32 %v1615_v21, %v1599_v42  ;;  %v608_v13 = vadd.f32 %v3306_v55, %v576_v50  ;;  %v1982_v14 = vadd.f32 %v5112_v17, %v1950_v16  ;;  %v2030_v5 = vmul.f32 %v3252_v10, %v3252_v10  ;;  %v320_v50 = vld [vmem:[%s2846_s22 + $0x80] sm:$0xff]  ;;  %v5115_v17 = vld [vmem:[#allocation36_spill] sm:$0xff] }
  0xdf   : > { %v1711_v62 = vmul.f32 %v1247_v46, %v1247_v46  ;;  %v1471_v2 = vsub.f32 %v1439_v54, %v1455_v51  ;;  %v529_v15 = vmul.f32 %v3431_v34, %v3431_v34  ;;  %v2062_v55 = vmul.f32 %v3255_v12, %v3255_v12  ;;  %v368_v46 = vld [vmem:[%s2846_s22 + $0x98] sm:$0xff] }
  0xe0   : > { %v1663_v3 = vadd.f32 %v1647_v44, %v1631_v40  ;;  %2399 = vrsqrt.f32 %v608_v13  ;;  %v2014_v43 = vadd.f32 %v1998_v53, %v1982_v14  ;;  %v1743_v7 = vmul.f32 %v1359_v56, %v1359_v56  ;;  %v352_v53 = vld [vmem:[%s2846_s22 + $0x90] sm:$0xff] }
  0xe1   : > { %v561_v8 = vmul.f32 %v3437_v48, %v3437_v48  ;;  %v1583_v10 = vadd.f32 %v1567_v61, %v1551_v47  ;;  %v545_v6 = vadd.f32 %v529_v15, %v513_v4  ;;  %v593_v38 = vmul.f32 %v3443_v35, %v3443_v35  ;;  %v5113_v47 = vld [vmem:[#allocation34_spill] sm:$0xff] }
  0xe2   : > { %v1695_v63 = vadd.f32 %v1679_v9, %v1663_v3  ;;  %v2046_v0 = vadd.f32 %v2030_v5, %v2014_v43  ;;  %v1839_v59 = vmul.f32 %v3310_v31, %v3310_v31  ;;  %v1775_v18 = vmul.f32 %v1471_v2, %v1471_v2  ;;  %v5114_v9 = vld [vmem:[#allocation35_spill] sm:$0xff] }
  0xe3   : > { %v1871_v29 = vmul.f32 %v3313_v24, %v3313_v24  ;;  %v577_v32 = vadd.f32 %v561_v8, %v545_v6  ;;  %v1903_v33 = vmul.f32 %v3316_v57, %v3316_v57  ;;  %v514_v31 = vmul.f32 %v3454_v39, %v3454_v39 }
  0xe4   : > { %v1727_v12 = vadd.f32 %v1711_v62, %v1695_v63  ;;  %v2078_v41 = vadd.f32 %v2062_v55, %v2046_v0  ;;  %v530_v19 = vmul.f32 %v3457_v58, %v3457_v58  ;;  %v1807_v22 = vmul.f32 %v1583_v10, %v1583_v10 }
  0xe5   : > { %v1935_v24 = vmul.f32 %v3336_v25, %v3336_v25  ;;  %v609_v11 = vadd.f32 %v593_v38, %v577_v32  ;;  %v3476_v57 = vmul.f32 %v3362_v26, %v3362_v26  ;;  %v3480_v42 = vmul.f32 %v3369_v49, %v3369_v49  ;;  %v336_v26 = vld [vmem:[%s2846_s22 + $0x88] sm:$0xff] }
  0xe6   : > { %v1759_v20 = vadd.f32 %v1743_v7, %v1727_v12  ;;  %v3484_v30 = vmul.f32 %v3372_v45, %v3372_v45  ;;  %v3492_v25 = vmul.f32 %v3386_v52, %v3386_v52  ;;  %v546_v36 = vadd.f32 %v530_v19, %v514_v31  ;;  %2126 = vst [vmem:[%s3265_s16 + $0x10] sm:$0xff] %v2078_v41  ;;  %v3501_v45 = vld [vmem:[%s2931_s18 + $0x80] sm:$0xff]  ;;  %v3546_v19 = vld [vmem:[%s2931_s18 + $0x88] sm:$0xff] }
  0xe7   : > { %v562_v49 = vmul.f32 %v3466_v37, %v3466_v37  ;;  %v3503_v54 = vmul.f32 %v320_v50, %v320_v50  ;;  %v3505_v51 = vmul.f32 %v336_v26, %v336_v26  ;;  %v3507_v21 = vmul.f32 %v352_v53, %v352_v53  ;;  %v3512_v52 = vld [vmem:[%s2854_s9 + $0xe0] sm:$0xff] }
  0xe8   : > { %v1791_v60 = vadd.f32 %v1775_v18, %v1759_v20  ;;  %v3509_v44 = vmul.f32 %v368_v46, %v368_v46  ;;  %v3519_v61 = vmul.f32 %v3501_v45, %v3501_v45  ;;  %2401 = vrsqrt.f32 %v609_v11  ;;  %v3549_v20 = vld [vmem:[%s2931_s18 + $0x90] sm:$0xff] }
  0xe9   : > { %v594_v4 = vmul.f32 %v3488_v28, %v3488_v28  ;;  %v578_v2 = vadd.f32 %v562_v49, %v546_v36  ;;  %v3533_v3 = vmul.f32 %v3512_v52, %v3512_v52  ;;  %v3537_v15 = vmul.f32 %v3515_v1, %v3515_v1 }
  0xea   : > { %v2400_v16 = vpop.eup %2399  ;;  %v1823_v56 = vadd.f32 %v1807_v22, %v1791_v60 }
  0xeb   : > { %v640_v40 = vmul.f32 %v2400_v16, %v5113_v47  ;;  %v3525_v13 = vmul.f32 %v2400_v16, %v5114_v9  ;;  %v3528_v14 = vmul.f32 %v2400_v16, %v5115_v17  ;;  %v688_v5 = vmul.f32 %v2400_v16, %v3297_v23 }
  0xec   : > { %v1855_v62 = vadd.f32 %v1839_v59, %v1823_v56  ;;  %v3553_v56 = vadd.f32 %v594_v4, %v578_v2 }
  0xed   : > { %v704_v43 = vmul.f32 %v640_v40, %v320_v50  ;;  %v720_v55 = vmul.f32 %v3525_v13, %v336_v26  ;;  %v752_v7 = vmul.f32 %v3528_v14, %v352_v53  ;;  %v784_v8 = vmul.f32 %v688_v5, %v368_v46 }
  0xee   : > { %v1887_v10 = vadd.f32 %v1871_v29, %v1855_v62  ;;  %v816_v23 = vmul.f32 %v3525_v13, %v320_v50  ;;  %v832_v63 = vmul.f32 %v640_v40, %v336_v26  ;;  %v864_v6 = vmul.f32 %v688_v5, %v352_v53 }
  0xef   : > { %v736_v38 = vsub.f32 %v704_v43, %v720_v55  ;;  %v896_v0 = vmul.f32 %v3528_v14, %v368_v46  ;;  %v928_v59 = vmul.f32 %v3528_v14, %v320_v50  ;;  %v944_v12 = vmul.f32 %v688_v5, %v336_v26  ;;  %v3558_v55 = vld [vmem:[%s2931_s18 + $0x98] sm:$0xff] }
  0xf0   : > { %v1919_v18 = vadd.f32 %v1903_v33, %v1887_v10  ;;  %v848_v32 = vadd.f32 %v832_v63, %v816_v23  ;;  %v976_v41 = vmul.f32 %v640_v40, %v352_v53  ;;  %v1008_v31 = vmul.f32 %v3525_v13, %v368_v46 }
  0xf1   : > { %v768_v29 = vsub.f32 %v736_v38, %v752_v7  ;;  %v960_v22 = vsub.f32 %v928_v59, %v944_v12  ;;  %v1040_v11 = vmul.f32 %v688_v5, %v320_v50  ;;  %v1056_v60 = vmul.f32 %v3528_v14, %v336_v26 }
  0xf2   : > { %v1951_v36 = vadd.f32 %v1935_v24, %v1919_v18  ;;  %v880_v49 = vadd.f32 %v864_v6, %v848_v32  ;;  %v1088_v16 = vmul.f32 %v3525_v13, %v352_v53  ;;  %v1120_v9 = vmul.f32 %v640_v40, %v368_v46  ;;  %v2402_v62 = vpop.eup %2401 }
  0xf3   : > { %v992_v33 = vadd.f32 %v976_v41, %v960_v22  ;;  %v1072_v47 = vadd.f32 %v1056_v60, %v1040_v11  ;;  %v1152_v17 = vmul.f32 %v640_v40, %v3501_v45  ;;  %v800_v7 = vsub.f32 %v768_v29, %v784_v8 }
  0xf4   : > { %v1983_v43 = vadd.f32 %v3476_v57, %v1951_v36  ;;  %v1168_v50 = vmul.f32 %v3525_v13, %v3546_v19  ;;  %v1200_v24 = vmul.f32 %v3528_v14, %v3549_v20  ;;  %v912_v26 = vsub.f32 %v880_v49, %v896_v0 }
  0xf5   : > { %v1024_v53 = vadd.f32 %v1008_v31, %v992_v33  ;;  %v1104_v4 = vsub.f32 %v1072_v47, %v1088_v16  ;;  %v1264_v2 = vmul.f32 %v640_v40, %v3546_v19  ;;  %v1280_v57 = vmul.f32 %v3525_v13, %v3501_v45 }
  0xf6   : > { %v2015_v46 = vadd.f32 %v3480_v42, %v1983_v43  ;;  %v1184_v10 = vadd.f32 %v1168_v50, %v1152_v17  ;;  %v1312_v23 = vmul.f32 %v688_v5, %v3549_v20  ;;  %v1232_v8 = vmul.f32 %v688_v5, %v3558_v55  ;;  %v3598_v50 = vld [vmem:[%s2846_s22 + $0xb0] sm:$0xff] }
  0xf7   : > { %v1344_v63 = vmul.f32 %v3528_v14, %v3558_v55  ;;  %v1376_v6 = vmul.f32 %v640_v40, %v3549_v20  ;;  %v1392_v38 = vmul.f32 %v3528_v14, %v3501_v45  ;;  %v1296_v42 = vsub.f32 %v1264_v2, %v1280_v57 }
  0xf8   : > { %v2047_v0 = vadd.f32 %v3484_v30, %v2015_v46  ;;  %v1216_v59 = vadd.f32 %v1200_v24, %v1184_v10  ;;  %v1424_v12 = vmul.f32 %v688_v5, %v3546_v19  ;;  %v1456_v32 = vmul.f32 %v3525_v13, %v3558_v55 }
  0xf9   : > { %v1408_v18 = vsub.f32 %v1376_v6, %v1392_v38  ;;  %v1488_v41 = vmul.f32 %v640_v40, %v3558_v55  ;;  %v1504_v31 = vmul.f32 %v688_v5, %v3501_v45  ;;  %v1136_v22 = vadd.f32 %v1120_v9, %v1104_v4  ;;  %v3587_v5 = vld [vmem:[%s2846_s22 + $0xa0] sm:$0xff]  ;;  %v3590_v9 = vld [vmem:[%s2846_s22 + $0xa8] sm:$0xff]  ;;  %v3605_v4 = vld [vmem:[%s2846_s22 + $0xb8] sm:$0xff] }
  0xfa   : > { %v2079_v29 = vadd.f32 %v3492_v25, %v2047_v0  ;;  %v1328_v11 = vsub.f32 %v1296_v42, %v1312_v23  ;;  %v1536_v30 = vmul.f32 %v3528_v14, %v3546_v19  ;;  %v1248_v60 = vadd.f32 %v1232_v8, %v1216_v59  ;;  %v3622_v6 = vld [vmem:[%s2931_s18 + $0xa0] sm:$0xff] }
  0xfb   : > { %v1440_v36 = vadd.f32 %v1424_v12, %v1408_v18  ;;  %v1520_v49 = vsub.f32 %v1488_v41, %v1504_v31  ;;  %v1600_v16 = vmul.f32 %v800_v7, %v800_v7  ;;  %v1616_v47 = vmul.f32 %v912_v26, %v912_v26  ;;  %v3629_v18 = vld [vmem:[%s2931_s18 + $0xa8] sm:$0xff] }
  0xfc   : > { %v1360_v33 = vadd.f32 %v1344_v63, %v1328_v11  ;;  %v1648_v40 = vmul.f32 %v1024_v53, %v1024_v53  ;;  %v1568_v25 = vmul.f32 %v3525_v13, %v3549_v20  ;;  %v3594_v14 = vadd.f32 %v3537_v15, %v3533_v3  ;;  %2127 = vst [vmem:[%s3265_s16 + $0x18] sm:$0xff] %v2079_v29  ;;  %v3635_v29 = vld [vmem:[%s2931_s18 + $0xb0] sm:$0xff] }
  0xfd   : > { %v1472_v17 = vsub.f32 %v1440_v36, %v1456_v32  ;;  %v1552_v45 = vsub.f32 %v1520_v49, %v1536_v30  ;;  %v1632_v43 = vadd.f32 %v1616_v47, %v1600_v16  ;;  %v1680_v7 = vmul.f32 %v1136_v22, %v1136_v22  ;;  %v3645_v47 = vld [vmem:[%s2931_s18 + $0xb8] sm:$0xff] }
  0xfe   : > { %v641_v24 = vmul.f32 %v2402_v62, %v3420_v27  ;;  %v3602_v26 = vmul.f32 %v2402_v62, %v3431_v34  ;;  %v1712_v53 = vmul.f32 %v1248_v60, %v1248_v60  ;;  %v1744_v13 = vmul.f32 %v1360_v33, %v1360_v33 }
  0xff   : > { %v3608_v2 = vmul.f32 %v2402_v62, %v3437_v48  ;;  %v689_v3 = vmul.f32 %v2402_v62, %v3443_v35  ;;  %v1664_v15 = vadd.f32 %v1648_v40, %v1632_v43  ;;  %v1584_v34 = vadd.f32 %v1568_v25, %v1552_v45 }
 0x100   : > { %v705_v46 = vmul.f32 %v641_v24, %v3587_v5  ;;  %v721_v10 = vmul.f32 %v3602_v26, %v3590_v9  ;;  %v817_v27 = vmul.f32 %v3602_v26, %v3587_v5  ;;  %v1776_v57 = vmul.f32 %v1472_v17, %v1472_v17 }
 0x101   : > { %v753_v23 = vmul.f32 %v3608_v2, %v3598_v50  ;;  %v833_v48 = vmul.f32 %v641_v24, %v3590_v9  ;;  %v1696_v8 = vadd.f32 %v1680_v7, %v1664_v15  ;;  %v785_v62 = vmul.f32 %v689_v3, %v3605_v4 }
 0x102   : > { %v737_v35 = vsub.f32 %v705_v46, %v721_v10  ;;  %v865_v63 = vmul.f32 %v689_v3, %v3598_v50  ;;  %v929_v0 = vmul.f32 %v3608_v2, %v3587_v5  ;;  %v945_v59 = vmul.f32 %v689_v3, %v3590_v9 }
 0x103   : > { %v849_v38 = vadd.f32 %v833_v48, %v817_v27  ;;  %v977_v42 = vmul.f32 %v641_v24, %v3598_v50  ;;  %v1728_v12 = vadd.f32 %v1712_v53, %v1696_v8  ;;  %v897_v41 = vmul.f32 %v3608_v2, %v3605_v4 }
 0x104   : > { %v769_v32 = vsub.f32 %v737_v35, %v753_v23  ;;  %v1041_v31 = vmul.f32 %v689_v3, %v3587_v5  ;;  %v961_v11 = vsub.f32 %v929_v0, %v945_v59  ;;  %v1057_v30 = vmul.f32 %v3608_v2, %v3590_v9 }
 0x105   : > { %v881_v22 = vadd.f32 %v865_v63, %v849_v38  ;;  %v1089_v60 = vmul.f32 %v3602_v26, %v3598_v50  ;;  %v1760_v36 = vadd.f32 %v1744_v13, %v1728_v12  ;;  %v1808_v49 = vmul.f32 %v1584_v34, %v1584_v34 }
 0x106   : > { %v1009_v16 = vmul.f32 %v3602_v26, %v3605_v4  ;;  %v1153_v33 = vmul.f32 %v641_v24, %v3622_v6  ;;  %v801_v40 = vsub.f32 %v769_v32, %v785_v62  ;;  %v993_v17 = vadd.f32 %v977_v42, %v961_v11 }
 0x107   : > { %v1073_v45 = vadd.f32 %v1057_v30, %v1041_v31  ;;  %v1169_v25 = vmul.f32 %v3602_v26, %v3629_v18  ;;  %v1792_v43 = vadd.f32 %v1776_v57, %v1760_v36  ;;  %v1121_v7 = vmul.f32 %v641_v24, %v3605_v4 }
 0x108   : > { %v1201_v53 = vmul.f32 %v3608_v2, %v3635_v29  ;;  %v1265_v13 = vmul.f32 %v641_v24, %v3629_v18  ;;  %v913_v15 = vsub.f32 %v881_v22, %v897_v41  ;;  %v1281_v27 = vmul.f32 %v3602_v26, %v3622_v6  ;;  %v3667_v22 = vld [vmem:[%s2854_s9 + $0xf0] sm:$0xff] }
 0x109   : > { %v1105_v46 = vsub.f32 %v1073_v45, %v1089_v60  ;;  %v1185_v10 = vadd.f32 %v1169_v25, %v1153_v33  ;;  %v1824_v34 = vadd.f32 %v1808_v49, %v1792_v43  ;;  %v1233_v23 = vmul.f32 %v689_v3, %v3645_v47 }
 0x10a   : > { %v1313_v48 = vmul.f32 %v689_v3, %v3635_v29  ;;  %v1377_v57 = vmul.f32 %v641_v24, %v3635_v29  ;;  %v1025_v8 = vadd.f32 %v1009_v16, %v993_v17  ;;  %v1297_v62 = vsub.f32 %v1265_v13, %v1281_v27 }
 0x10b   : > { %v1217_v35 = vadd.f32 %v1201_v53, %v1185_v10  ;;  %v1393_v63 = vmul.f32 %v3608_v2, %v3622_v6  ;;  %v1856_v38 = vadd.f32 %v3503_v54, %v1824_v34  ;;  %v1345_v0 = vmul.f32 %v3608_v2, %v3645_v47  ;;  %v3700_v34 = vld [vmem:[%s2854_s9 + $0x108] sm:$0xff] }
 0x10c   : > { %v1425_v59 = vmul.f32 %v689_v3, %v3629_v18  ;;  %v1489_v42 = vmul.f32 %v641_v24, %v3645_v47  ;;  %v1137_v12 = vadd.f32 %v1121_v7, %v1105_v46  ;;  %v1329_v32 = vsub.f32 %v1297_v62, %v1313_v48 }
 0x10d   : > { %v1409_v41 = vsub.f32 %v1377_v57, %v1393_v63  ;;  %v1505_v31 = vmul.f32 %v689_v3, %v3622_v6  ;;  %v1888_v11 = vadd.f32 %v3505_v51, %v1856_v38  ;;  %v1457_v54 = vmul.f32 %v3602_v26, %v3645_v47  ;;  %v3705_v57 = vld [vmem:[%s2854_s9 + $0x110] sm:$0xff] }
 0x10e   : > { %v1537_v30 = vmul.f32 %v3608_v2, %v3629_v18  ;;  %v1601_v60 = vmul.f32 %v801_v40, %v801_v40  ;;  %v1249_v36 = vadd.f32 %v1233_v23, %v1217_v35  ;;  %v1617_v16 = vmul.f32 %v913_v15, %v913_v15  ;;  %v3680_v40 = vld [vmem:[%s2854_s9 + $0xf8] sm:$0xff] }
 0x10f   : > { %v1441_v49 = vadd.f32 %v1425_v59, %v1409_v41  ;;  %v1521_v24 = vsub.f32 %v1489_v42, %v1505_v31  ;;  %v1920_v33 = vadd.f32 %v3507_v21, %v1888_v11  ;;  %v1569_v3 = vmul.f32 %v3602_v26, %v3635_v29  ;;  %v3734_v41 = vld [vmem:[%s2854_s9 + $0x118] sm:$0xff] }
 0x110   : > { %v1649_v17 = vmul.f32 %v1025_v8, %v1025_v8  ;;  %v563_v51 = vmul.f32 %v3667_v22, %v3667_v22  ;;  %v1361_v45 = vadd.f32 %v1345_v0, %v1329_v32  ;;  %v1633_v43 = vadd.f32 %v1617_v16, %v1601_v60  ;;  %v338_v32 = vld [vmem:[%s2846_s22 + $0xc8] sm:$0xff]  ;;  %v3743_v60 = vld [vmem:[%s2931_s18 + $0xc0] sm:$0xff] }
 0x111   : > { %v1553_v25 = vsub.f32 %v1521_v24, %v1537_v30  ;;  %v1681_v2 = vmul.f32 %v1137_v12, %v1137_v12  ;;  %v1952_v7 = vadd.f32 %v3509_v44, %v1920_v33  ;;  %v2000_v21 = vmul.f32 %v3546_v19, %v3546_v19  ;;  %v322_v12 = vld [vmem:[%s2846_s22 + $0xc0] sm:$0xff]  ;;  %v370_v30 = vld [vmem:[%s2846_s22 + $0xd8] sm:$0xff] }
 0x112   : > { %v2032_v26 = vmul.f32 %v3549_v20, %v3549_v20  ;;  %2403 = vrsqrt.f32 %v3553_v56  ;;  %v2064_v53 = vmul.f32 %v3558_v55, %v3558_v55  ;;  %v1473_v13 = vsub.f32 %v1441_v49, %v1457_v54  ;;  %v3697_v20 = vld [vmem:[%s2854_s9 + $0x100] sm:$0xff]  ;;  %v354_v54 = vld [vmem:[%s2846_s22 + $0xd0] sm:$0xff] }
 0x113   : > { %v1665_v15 = vadd.f32 %v1649_v17, %v1633_v43  ;;  %v1713_v46 = vmul.f32 %v1249_v36, %v1249_v36  ;;  %v1984_v10 = vadd.f32 %v3519_v61, %v1952_v7  ;;  %v1841_v44 = vmul.f32 %v3587_v5, %v3587_v5  ;;  %v3764_v17 = vld [vmem:[%s2854_s9 + $0x130] sm:$0xff] }
 0x114   : > { %v579_v27 = vadd.f32 %v563_v51, %v3594_v14  ;;  %v595_v19 = vmul.f32 %v3680_v40, %v3680_v40  ;;  %v1585_v56 = vadd.f32 %v1569_v3, %v1553_v25  ;;  %v1745_v55 = vmul.f32 %v1361_v45, %v1361_v45  ;;  %v3761_v3 = vld [vmem:[%s2854_s9 + $0x128] sm:$0xff] }
 0x115   : > { %v1697_v23 = vadd.f32 %v1681_v2, %v1665_v15  ;;  %v1873_v48 = vmul.f32 %v3590_v9, %v3590_v9  ;;  %v2016_v61 = vadd.f32 %v2000_v21, %v1984_v10  ;;  %v1905_v5 = vmul.f32 %v3598_v50, %v3598_v50 }
 0x116   : > { %v3711_v14 = vmul.f32 %v3605_v4, %v3605_v4  ;;  %v3715_v8 = vmul.f32 %v3622_v6, %v3622_v6  ;;  %v1777_v62 = vmul.f32 %v1473_v13, %v1473_v13  ;;  %v516_v9 = vmul.f32 %v3697_v20, %v3697_v20 }
 0x117   : > { %v1729_v35 = vadd.f32 %v1713_v46, %v1697_v23  ;;  %v532_v63 = vmul.f32 %v3700_v34, %v3700_v34  ;;  %v2048_v50 = vadd.f32 %v2032_v26, %v2016_v61  ;;  %v3723_v4 = vmul.f32 %v3629_v18, %v3629_v18 }
 0x118   : > { %v611_v38 = vadd.f32 %v595_v19, %v579_v27  ;;  %v564_v6 = vmul.f32 %v3705_v57, %v3705_v57  ;;  %v1809_v59 = vmul.f32 %v1585_v56, %v1585_v56  ;;  %v3729_v42 = vmul.f32 %v3635_v29, %v3635_v29 }
 0x119   : > { %v1761_v0 = vadd.f32 %v1745_v55, %v1729_v35  ;;  %v548_v31 = vadd.f32 %v532_v63, %v516_v9  ;;  %v2080_v18 = vadd.f32 %v2064_v53, %v2048_v50  ;;  %v3738_v11 = vmul.f32 %v3645_v47, %v3645_v47  ;;  %v3758_v47 = vld [vmem:[%s2854_s9 + $0x120] sm:$0xff]  ;;  %v3800_v50 = vld [vmem:[%s2931_s18 + $0xc8] sm:$0xff] }
 0x11a   : > { %v3745_v36 = vmul.f32 %v322_v12, %v322_v12  ;;  %v3747_v29 = vmul.f32 %v338_v32, %v338_v32  ;;  %v3749_v24 = vmul.f32 %v354_v54, %v354_v54  ;;  %v3751_v16 = vmul.f32 %v370_v30, %v370_v30 }
 0x11b   : > { %v1793_v49 = vadd.f32 %v1777_v62, %v1761_v0  ;;  %v3755_v33 = vmul.f32 %v3743_v60, %v3743_v60  ;;  %2405 = vrsqrt.f32 %v611_v38  ;;  %v3766_v45 = vadd.f32 %v564_v6, %v548_v31  ;;  %2128 = vst [vmem:[%s3265_s16 + $0x20] sm:$0xff] %v2080_v18  ;;  %v3803_v38 = vld [vmem:[%s2931_s18 + $0xd0] sm:$0xff] }
 0x11c   : > { %v2404_v51 = vpop.eup %2403  ;;  %v3770_v25 = vmul.f32 %v3734_v41, %v3734_v41  ;;  %v3783_v53 = vmul.f32 %v3758_v47, %v3758_v47  ;;  %v3787_v13 = vmul.f32 %v3761_v3, %v3761_v3 }
 0x11d   : > { %v1825_v43 = vadd.f32 %v1809_v59, %v1793_v49  ;;  %v642_v2 = vmul.f32 %v2404_v51, %v3454_v39  ;;  %v3774_v7 = vmul.f32 %v2404_v51, %v3457_v58  ;;  %v3777_v21 = vmul.f32 %v2404_v51, %v3466_v37 }
 0x11e   : > { %v690_v26 = vmul.f32 %v2404_v51, %v3488_v28  ;;  %v3791_v39 = vmul.f32 %v3764_v17, %v3764_v17 }
 0x11f   : > { %v1857_v58 = vadd.f32 %v1841_v44, %v1825_v43  ;;  %v706_v15 = vmul.f32 %v642_v2, %v322_v12  ;;  %v722_v37 = vmul.f32 %v3774_v7, %v338_v32  ;;  %v754_v28 = vmul.f32 %v3777_v21, %v354_v54 }
 0x120   : > { %v786_v46 = vmul.f32 %v690_v26, %v370_v30  ;;  %v818_v10 = vmul.f32 %v3774_v7, %v322_v12  ;;  %v834_v27 = vmul.f32 %v642_v2, %v338_v32  ;;  %v866_v19 = vmul.f32 %v690_v26, %v354_v54 }
 0x121   : > { %v1889_v56 = vadd.f32 %v1873_v48, %v1857_v58  ;;  %v738_v23 = vsub.f32 %v706_v15, %v722_v37  ;;  %v898_v55 = vmul.f32 %v3777_v21, %v370_v30  ;;  %v930_v61 = vmul.f32 %v3777_v21, %v322_v12  ;;  %v3807_v48 = vld [vmem:[%s2931_s18 + $0xd8] sm:$0xff] }
 0x122   : > { %v850_v44 = vadd.f32 %v834_v27, %v818_v10  ;;  %v946_v35 = vmul.f32 %v690_v26, %v338_v32  ;;  %v978_v62 = vmul.f32 %v642_v2, %v354_v54  ;;  %v1010_v9 = vmul.f32 %v3774_v7, %v370_v30 }
 0x123   : > { %v1921_v63 = vadd.f32 %v1905_v5, %v1889_v56  ;;  %v770_v6 = vsub.f32 %v738_v23, %v754_v28  ;;  %v1042_v0 = vmul.f32 %v690_v26, %v322_v12  ;;  %v1058_v59 = vmul.f32 %v3777_v21, %v338_v32 }
 0x124   : > { %v882_v31 = vadd.f32 %v866_v19, %v850_v44  ;;  %v962_v18 = vsub.f32 %v930_v61, %v946_v35  ;;  %v1090_v49 = vmul.f32 %v3774_v7, %v354_v54  ;;  %v1122_v51 = vmul.f32 %v642_v2, %v370_v30 }
 0x125   : > { %v1953_v43 = vadd.f32 %v3711_v14, %v1921_v63  ;;  %v802_v58 = vsub.f32 %v770_v6, %v786_v46  ;;  %v1074_v15 = vadd.f32 %v1058_v59, %v1042_v0  ;;  %v1154_v5 = vmul.f32 %v642_v2, %v3743_v60  ;;  %v2406_v37 = vpop.eup %2405 }
 0x126   : > { %v914_v10 = vsub.f32 %v882_v31, %v898_v55  ;;  %v994_v27 = vadd.f32 %v978_v62, %v962_v18  ;;  %v1170_v12 = vmul.f32 %v3774_v7, %v3800_v50  ;;  %v1202_v32 = vmul.f32 %v3777_v21, %v3803_v38 }
 0x127   : > { %v1985_v28 = vadd.f32 %v3715_v8, %v1953_v43  ;;  %v1106_v19 = vsub.f32 %v1074_v15, %v1090_v49  ;;  %v1234_v54 = vmul.f32 %v690_v26, %v3807_v48  ;;  %v1266_v14 = vmul.f32 %v642_v2, %v3800_v50 }
 0x128   : > { %v1026_v30 = vadd.f32 %v1010_v9, %v994_v27  ;;  %v1186_v46 = vadd.f32 %v1170_v12, %v1154_v5  ;;  %v1282_v56 = vmul.f32 %v3774_v7, %v3743_v60  ;;  %v1314_v23 = vmul.f32 %v690_v26, %v3803_v38 }
 0x129   : > { %v2017_v55 = vadd.f32 %v3723_v4, %v1985_v28  ;;  %v1138_v61 = vadd.f32 %v1122_v51, %v1106_v19  ;;  %v1346_v44 = vmul.f32 %v3777_v21, %v3807_v48  ;;  %v1378_v8 = vmul.f32 %v642_v2, %v3803_v38  ;;  %v3840_v28 = vld [vmem:[%s2846_s22 + $0xe0] sm:$0xff]  ;;  %v3843_v19 = vld [vmem:[%s2846_s22 + $0xe8] sm:$0xff] }
 0x12a   : > { %v1218_v35 = vadd.f32 %v1202_v32, %v1186_v46  ;;  %v1298_v62 = vsub.f32 %v1266_v14, %v1282_v56  ;;  %v1394_v63 = vmul.f32 %v3777_v21, %v3743_v60  ;;  %v1426_v9 = vmul.f32 %v690_v26, %v3800_v50  ;;  %v3850_v14 = vld [vmem:[%s2846_s22 + $0xf0] sm:$0xff] }
 0x12b   : > { %v2049_v6 = vadd.f32 %v3729_v42, %v2017_v55  ;;  %v1458_v0 = vmul.f32 %v3774_v7, %v3807_v48  ;;  %v1490_v4 = vmul.f32 %v642_v2, %v3807_v48  ;;  %v1506_v59 = vmul.f32 %v690_v26, %v3743_v60 }
 0x12c   : > { %v1250_v31 = vadd.f32 %v1234_v54, %v1218_v35  ;;  %v1330_v18 = vsub.f32 %v1298_v62, %v1314_v23  ;;  %v1410_v49 = vsub.f32 %v1378_v8, %v1394_v63  ;;  %v1538_v51 = vmul.f32 %v3777_v21, %v3800_v50  ;;  %v3879_v62 = vld [vmem:[%s2931_s18 + $0xe0] sm:$0xff] }
 0x12d   : > { %v2081_v43 = vadd.f32 %v3738_v11, %v2049_v6  ;;  %v1522_v15 = vsub.f32 %v1490_v4, %v1506_v59  ;;  %v1570_v42 = vmul.f32 %v3774_v7, %v3803_v38  ;;  %v1602_v5 = vmul.f32 %v802_v58, %v802_v58  ;;  %v3887_v59 = vld [vmem:[%s2931_s18 + $0xe8] sm:$0xff] }
 0x12e   : > { %v1362_v2 = vadd.f32 %v1346_v44, %v1330_v18  ;;  %v1442_v27 = vadd.f32 %v1426_v9, %v1410_v49  ;;  %v1618_v60 = vmul.f32 %v914_v10, %v914_v10  ;;  %v1650_v26 = vmul.f32 %v1026_v30, %v1026_v30  ;;  %v3857_v30 = vld [vmem:[%s2846_s22 + $0xf8] sm:$0xff] }
 0x12f   : > { %v1554_v12 = vsub.f32 %v1522_v15, %v1538_v51  ;;  %v1682_v32 = vmul.f32 %v1138_v61, %v1138_v61  ;;  %v3847_v11 = vadd.f32 %v3770_v25, %v3766_v45  ;;  %v1714_v7 = vmul.f32 %v1250_v31, %v1250_v31  ;;  %2129 = vst [vmem:[%s3265_s16 + $0x28] sm:$0xff] %v2081_v43  ;;  %v3893_v51 = vld [vmem:[%s2931_s18 + $0xf0] sm:$0xff] }
 0x130   : > { %v1474_v21 = vsub.f32 %v1442_v27, %v1458_v0  ;;  %v1634_v54 = vadd.f32 %v1618_v60, %v1602_v5  ;;  %v3853_v58 = vmul.f32 %v2406_v37, %v3512_v52  ;;  %v3860_v46 = vmul.f32 %v2406_v37, %v3515_v1  ;;  %v3900_v27 = vld [vmem:[%s2931_s18 + $0xf8] sm:$0xff] }
 0x131   : > { %v1586_v10 = vadd.f32 %v1570_v42, %v1554_v12  ;;  %v3863_v56 = vmul.f32 %v2406_v37, %v3667_v22  ;;  %v691_v45 = vmul.f32 %v2406_v37, %v3680_v40  ;;  %v1746_v23 = vmul.f32 %v1362_v2, %v1362_v2 }
 0x132   : > { %v1666_v25 = vadd.f32 %v1650_v26, %v1634_v54  ;;  %v707_v55 = vmul.f32 %v3853_v58, %v3840_v28  ;;  %v835_v52 = vmul.f32 %v3853_v58, %v3843_v19  ;;  %v1778_v61 = vmul.f32 %v1474_v21, %v1474_v21 }
 0x133   : > { %v1810_v44 = vmul.f32 %v1586_v10, %v1586_v10  ;;  %v723_v1 = vmul.f32 %v3860_v46, %v3843_v19  ;;  %v755_v22 = vmul.f32 %v3863_v56, %v3850_v14  ;;  %v787_v40 = vmul.f32 %v691_v45, %v3857_v30 }
 0x134   : > { %v1698_v8 = vadd.f32 %v1682_v32, %v1666_v25  ;;  %v819_v37 = vmul.f32 %v3860_v46, %v3840_v28  ;;  %v867_v35 = vmul.f32 %v691_v45, %v3850_v14  ;;  %v931_v9 = vmul.f32 %v3863_v56, %v3840_v28 }
 0x135   : > { %v739_v63 = vsub.f32 %v707_v55, %v723_v1  ;;  %v947_v6 = vmul.f32 %v691_v45, %v3843_v19  ;;  %v979_v0 = vmul.f32 %v3853_v58, %v3850_v14  ;;  %v899_v18 = vmul.f32 %v3863_v56, %v3857_v30 }
 0x136   : > { %v1730_v4 = vadd.f32 %v1714_v7, %v1698_v8  ;;  %v851_v31 = vadd.f32 %v835_v52, %v819_v37  ;;  %v1043_v49 = vmul.f32 %v691_v45, %v3840_v28  ;;  %v1059_v42 = vmul.f32 %v3863_v56, %v3843_v19 }
 0x137   : > { %v771_v43 = vsub.f32 %v739_v63, %v755_v22  ;;  %v963_v15 = vsub.f32 %v931_v9, %v947_v6  ;;  %v1091_v5 = vmul.f32 %v3860_v46, %v3850_v14  ;;  %v1011_v26 = vmul.f32 %v3860_v46, %v3857_v30 }
 0x138   : > { %v1762_v2 = vadd.f32 %v1746_v23, %v1730_v4  ;;  %v883_v60 = vadd.f32 %v867_v35, %v851_v31  ;;  %v1155_v12 = vmul.f32 %v3853_v58, %v3879_v62  ;;  %v1075_v21 = vadd.f32 %v1059_v42, %v1043_v49 }
 0x139   : > { %v995_v32 = vadd.f32 %v979_v0, %v963_v15  ;;  %v1123_v54 = vmul.f32 %v3853_v58, %v3857_v30  ;;  %v1171_v7 = vmul.f32 %v3860_v46, %v3887_v59  ;;  %v803_v25 = vsub.f32 %v771_v43, %v787_v40 }
 0x13a   : > { %v1794_v10 = vadd.f32 %v1778_v61, %v1762_v2  ;;  %v915_v23 = vsub.f32 %v883_v60, %v899_v18  ;;  %v1203_v55 = vmul.f32 %v3863_v56, %v3893_v51  ;;  %v1107_v52 = vsub.f32 %v1075_v21, %v1091_v5 }
 0x13b   : > { %v1187_v1 = vadd.f32 %v1171_v7, %v1155_v12  ;;  %v1235_v22 = vmul.f32 %v691_v45, %v3900_v27  ;;  %v1267_v8 = vmul.f32 %v3853_v58, %v3887_v59  ;;  %v1027_v35 = vadd.f32 %v1011_v26, %v995_v32 }
 0x13c   : > { %v1826_v37 = vadd.f32 %v1810_v44, %v1794_v10  ;;  %v1283_v63 = vmul.f32 %v3860_v46, %v3879_v62  ;;  %v1315_v9 = vmul.f32 %v691_v45, %v3893_v51  ;;  %v1347_v40 = vmul.f32 %v3863_v56, %v3900_v27 }
 0x13d   : > { %v1219_v61 = vadd.f32 %v1203_v55, %v1187_v1  ;;  %v1379_v6 = vmul.f32 %v3853_v58, %v3893_v51  ;;  %v1395_v0 = vmul.f32 %v3863_v56, %v3879_v62  ;;  %v1139_v31 = vadd.f32 %v1123_v54, %v1107_v52 }
 0x13e   : > { %v1858_v4 = vadd.f32 %v3745_v36, %v1826_v37  ;;  %v1299_v44 = vsub.f32 %v1267_v8, %v1283_v63  ;;  %v1427_v18 = vmul.f32 %v691_v45, %v3887_v59  ;;  %v1459_v43 = vmul.f32 %v3860_v46, %v3900_v27  ;;  %v3960_v37 = vld [vmem:[%s2854_s9 + $0x148] sm:$0xff] }
 0x13f   : > { %v1411_v49 = vsub.f32 %v1379_v6, %v1395_v0  ;;  %v1491_v15 = vmul.f32 %v3853_v58, %v3900_v27  ;;  %v1507_v42 = vmul.f32 %v691_v45, %v3879_v62  ;;  %v1251_v2 = vadd.f32 %v1235_v22, %v1219_v61 }
 0x140   : > { %v1890_v5 = vadd.f32 %v3747_v29, %v1858_v4  ;;  %v1331_v60 = vsub.f32 %v1299_v44, %v1315_v9  ;;  %v1539_v36 = vmul.f32 %v3863_v56, %v3887_v59  ;;  %v1603_v32 = vmul.f32 %v803_v25, %v803_v25  ;;  %v3940_v56 = vld [vmem:[%s2854_s9 + $0x138] sm:$0xff]  ;;  %v3965_v9 = vld [vmem:[%s2854_s9 + $0x150] sm:$0xff] }
 0x141   : > { %v1443_v26 = vadd.f32 %v1427_v18, %v1411_v49  ;;  %v1523_v12 = vsub.f32 %v1491_v15, %v1507_v42  ;;  %v1619_v21 = vmul.f32 %v915_v23, %v915_v23  ;;  %v1571_v7 = vmul.f32 %v3860_v46, %v3893_v51  ;;  %v324_v49 = vld [vmem:[%s2846_s22 + $0x100] sm:$0xff]  ;;  %v3994_v15 = vld [vmem:[%s2854_s9 + $0x158] sm:$0xff] }
 0x142   : > { %v1922_v54 = vadd.f32 %v3749_v24, %v1890_v5  ;;  %v1651_v58 = vmul.f32 %v1027_v35, %v1027_v35  ;;  %v549_v45 = vadd.f32 %v3787_v13, %v3783_v53  ;;  %v1363_v29 = vadd.f32 %v1347_v40, %v1331_v60  ;;  %v372_v60 = vld [vmem:[%s2846_s22 + $0x118] sm:$0xff] }
 0x143   : > { %v1555_v10 = vsub.f32 %v1523_v12, %v1539_v36  ;;  %v1635_v55 = vadd.f32 %v1619_v21, %v1603_v32  ;;  %v1683_v52 = vmul.f32 %v1139_v31, %v1139_v31  ;;  %v2002_v24 = vmul.f32 %v3800_v50, %v3800_v50  ;;  %v4003_v36 = vld [vmem:[%s2931_s18 + $0x100] sm:$0xff] }
 0x144   : > { %v1954_v25 = vadd.f32 %v3751_v16, %v1922_v54  ;;  %v2034_v46 = vmul.f32 %v3803_v38, %v3803_v38  ;;  %2407 = vrsqrt.f32 %v3847_v11  ;;  %v2066_v53 = vmul.f32 %v3807_v48, %v3807_v48  ;;  %v3957_v38 = vld [vmem:[%s2854_s9 + $0x140] sm:$0xff] }
 0x145   : > { %v1475_v13 = vsub.f32 %v1443_v26, %v1459_v43  ;;  %v1667_v23 = vadd.f32 %v1651_v58, %v1635_v55  ;;  %v1715_v1 = vmul.f32 %v1251_v2, %v1251_v2  ;;  %v1843_v16 = vmul.f32 %v3840_v28, %v3840_v28  ;;  %v340_v43 = vld [vmem:[%s2846_s22 + $0x108] sm:$0xff]  ;;  %v356_v2 = vld [vmem:[%s2846_s22 + $0x110] sm:$0xff] }
 0x146   : > { %v1986_v22 = vadd.f32 %v3755_v33, %v1954_v25  ;;  %v581_v8 = vadd.f32 %v3791_v39, %v549_v45  ;;  %v597_v50 = vmul.f32 %v3940_v56, %v3940_v56  ;;  %v1587_v11 = vadd.f32 %v1571_v7, %v1555_v10  ;;  %v4021_v7 = vld [vmem:[%s2854_s9 + $0x168] sm:$0xff]  ;;  %v4024_v58 = vld [vmem:[%s2854_s9 + $0x170] sm:$0xff] }
 0x147   : > { %v1699_v35 = vadd.f32 %v1683_v52, %v1667_v23  ;;  %v1747_v48 = vmul.f32 %v1363_v29, %v1363_v29  ;;  %v1875_v63 = vmul.f32 %v3843_v19, %v3843_v19  ;;  %v1907_v39 = vmul.f32 %v3850_v14, %v3850_v14 }
 0x148   : > { %v2018_v33 = vadd.f32 %v2002_v24, %v1986_v22  ;;  %v3971_v28 = vmul.f32 %v3857_v30, %v3857_v30  ;;  %v3975_v61 = vmul.f32 %v3879_v62, %v3879_v62  ;;  %v1779_v6 = vmul.f32 %v1475_v13, %v1475_v13 }
 0x149   : > { %v1731_v40 = vadd.f32 %v1715_v1, %v1699_v35  ;;  %v518_v19 = vmul.f32 %v3957_v38, %v3957_v38  ;;  %v534_v0 = vmul.f32 %v3960_v37, %v3960_v37  ;;  %v3983_v30 = vmul.f32 %v3887_v59, %v3887_v59 }
 0x14a   : > { %v2050_v14 = vadd.f32 %v2034_v46, %v2018_v33  ;;  %v613_v4 = vadd.f32 %v597_v50, %v581_v8  ;;  %v566_v62 = vmul.f32 %v3965_v9, %v3965_v9  ;;  %v1811_v44 = vmul.f32 %v1587_v11, %v1587_v11 }
 0x14b   : > { %v1763_v31 = vadd.f32 %v1747_v48, %v1731_v40  ;;  %v3989_v18 = vmul.f32 %v3893_v51, %v3893_v51  ;;  %v550_v42 = vadd.f32 %v534_v0, %v518_v19  ;;  %v3998_v5 = vmul.f32 %v3900_v27, %v3900_v27  ;;  %v4018_v27 = vld [vmem:[%s2854_s9 + $0x160] sm:$0xff] }
 0x14c   : > { %v2082_v59 = vadd.f32 %v2066_v53, %v2050_v14  ;;  %v4005_v26 = vmul.f32 %v324_v49, %v324_v49  ;;  %v4007_v51 = vmul.f32 %v340_v43, %v340_v43  ;;  %v4009_v32 = vmul.f32 %v356_v2, %v356_v2  ;;  %v4060_v14 = vld [vmem:[%s2931_s18 + $0x108] sm:$0xff] }
 0x14d   : > { %v1795_v12 = vadd.f32 %v1779_v6, %v1763_v31  ;;  %v4011_v21 = vmul.f32 %v372_v60, %v372_v60  ;;  %v4015_v54 = vmul.f32 %v4003_v36, %v4003_v36  ;;  %2409 = vrsqrt.f32 %v613_v4  ;;  %v4063_v4 = vld [vmem:[%s2931_s18 + $0x110] sm:$0xff] }
 0x14e   : > { %v2408_v45 = vpop.eup %2407  ;;  %v4026_v29 = vadd.f32 %v566_v62, %v550_v42  ;;  %v4030_v10 = vmul.f32 %v3994_v15, %v3994_v15  ;;  %2130 = vst [vmem:[%s3265_s16 + $0x30] sm:$0xff] %v2082_v59  ;;  %v4043_v53 = vmul.f32 %v4018_v27, %v4018_v27  ;;  %v4047_v13 = vmul.f32 %v4021_v7, %v4021_v7 }
 0x14f   : > { %v1827_v55 = vadd.f32 %v1811_v44, %v1795_v12  ;;  %v644_v52 = vmul.f32 %v2408_v45, %v3697_v20  ;;  %v4034_v25 = vmul.f32 %v2408_v45, %v3700_v34  ;;  %v4037_v24 = vmul.f32 %v2408_v45, %v3705_v57 }
 0x150   : > { %v692_v46 = vmul.f32 %v2408_v45, %v3734_v41  ;;  %v4051_v20 = vmul.f32 %v4024_v58, %v4024_v58 }
 0x151   : > { %v1859_v34 = vadd.f32 %v1843_v16, %v1827_v55  ;;  %v708_v23 = vmul.f32 %v644_v52, %v324_v49  ;;  %v724_v57 = vmul.f32 %v4034_v25, %v340_v43  ;;  %v756_v41 = vmul.f32 %v4037_v24, %v356_v2 }
 0x152   : > { %v788_v1 = vmul.f32 %v692_v46, %v372_v60  ;;  %v820_v22 = vmul.f32 %v4034_v25, %v324_v49  ;;  %v836_v8 = vmul.f32 %v644_v52, %v340_v43  ;;  %v868_v50 = vmul.f32 %v692_v46, %v356_v2 }
 0x153   : > { %v1891_v11 = vadd.f32 %v1875_v63, %v1859_v34  ;;  %v740_v35 = vsub.f32 %v708_v23, %v724_v57  ;;  %v900_v48 = vmul.f32 %v4037_v24, %v372_v60  ;;  %v932_v33 = vmul.f32 %v4037_v24, %v324_v49  ;;  %v4067_v63 = vld [vmem:[%s2931_s18 + $0x118] sm:$0xff] }
 0x154   : > { %v852_v16 = vadd.f32 %v836_v8, %v820_v22  ;;  %v948_v40 = vmul.f32 %v692_v46, %v340_v43  ;;  %v980_v6 = vmul.f32 %v644_v52, %v356_v2  ;;  %v1012_v19 = vmul.f32 %v4034_v25, %v372_v60 }
 0x155   : > { %v1923_v0 = vadd.f32 %v1907_v39, %v1891_v11  ;;  %v772_v62 = vsub.f32 %v740_v35, %v756_v41  ;;  %v1044_v31 = vmul.f32 %v692_v46, %v324_v49  ;;  %v1060_v44 = vmul.f32 %v4037_v24, %v340_v43 }
 0x156   : > { %v884_v42 = vadd.f32 %v868_v50, %v852_v16  ;;  %v964_v59 = vsub.f32 %v932_v33, %v948_v40  ;;  %v1092_v12 = vmul.f32 %v4034_v25, %v356_v2  ;;  %v1124_v45 = vmul.f32 %v644_v52, %v372_v60 }
 0x157   : > { %v1955_v55 = vadd.f32 %v3971_v28, %v1923_v0  ;;  %v804_v34 = vsub.f32 %v772_v62, %v788_v1  ;;  %v1076_v23 = vadd.f32 %v1060_v44, %v1044_v31  ;;  %v1156_v39 = vmul.f32 %v644_v52, %v4003_v36  ;;  %v2410_v57 = vpop.eup %2409 }
 0x158   : > { %v916_v22 = vsub.f32 %v884_v42, %v900_v48  ;;  %v996_v8 = vadd.f32 %v980_v6, %v964_v59  ;;  %v1172_v49 = vmul.f32 %v4034_v25, %v4060_v14  ;;  %v1204_v43 = vmul.f32 %v4037_v24, %v4063_v4 }
 0x159   : > { %v1987_v41 = vadd.f32 %v3975_v61, %v1955_v55  ;;  %v1108_v50 = vsub.f32 %v1076_v23, %v1092_v12  ;;  %v1236_v2 = vmul.f32 %v692_v46, %v4067_v63  ;;  %v1268_v28 = vmul.f32 %v644_v52, %v4060_v14 }
 0x15a   : > { %v1028_v60 = vadd.f32 %v1012_v19, %v996_v8  ;;  %v1188_v1 = vadd.f32 %v1172_v49, %v1156_v39  ;;  %v1284_v11 = vmul.f32 %v4034_v25, %v4003_v36  ;;  %v1316_v35 = vmul.f32 %v692_v46, %v4063_v4 }
 0x15b   : > { %v2019_v48 = vadd.f32 %v3983_v30, %v1987_v41  ;;  %v1140_v33 = vadd.f32 %v1124_v45, %v1108_v50  ;;  %v1348_v16 = vmul.f32 %v4037_v24, %v4067_v63  ;;  %v1380_v61 = vmul.f32 %v644_v52, %v4063_v4  ;;  %v4100_v41 = vld [vmem:[%s2846_s22 + $0x120] sm:$0xff]  ;;  %v4103_v50 = vld [vmem:[%s2846_s22 + $0x128] sm:$0xff] }
 0x15c   : > { %v1220_v40 = vadd.f32 %v1204_v43, %v1188_v1  ;;  %v1300_v6 = vsub.f32 %v1268_v28, %v1284_v11  ;;  %v1396_v0 = vmul.f32 %v4037_v24, %v4003_v36  ;;  %v1428_v19 = vmul.f32 %v692_v46, %v4060_v14  ;;  %v4110_v28 = vld [vmem:[%s2846_s22 + $0x130] sm:$0xff] }
 0x15d   : > { %v2051_v62 = vadd.f32 %v3989_v18, %v2019_v48  ;;  %v1460_v31 = vmul.f32 %v4034_v25, %v4067_v63  ;;  %v1492_v30 = vmul.f32 %v644_v52, %v4067_v63  ;;  %v1508_v44 = vmul.f32 %v692_v46, %v4003_v36 }
 0x15e   : > { %v1252_v42 = vadd.f32 %v1236_v2, %v1220_v40  ;;  %v1332_v59 = vsub.f32 %v1300_v6, %v1316_v35  ;;  %v1412_v12 = vsub.f32 %v1380_v61, %v1396_v0  ;;  %v1540_v45 = vmul.f32 %v4037_v24, %v4060_v14  ;;  %v4139_v6 = vld [vmem:[%s2931_s18 + $0x120] sm:$0xff] }
 0x15f   : > { %v2083_v55 = vadd.f32 %v3998_v5, %v2051_v62  ;;  %v1524_v23 = vsub.f32 %v1492_v30, %v1508_v44  ;;  %v1572_v18 = vmul.f32 %v4034_v25, %v4063_v4  ;;  %v1604_v39 = vmul.f32 %v804_v34, %v804_v34  ;;  %v4147_v44 = vld [vmem:[%s2931_s18 + $0x128] sm:$0xff] }
 0x160   : > { %v1364_v52 = vadd.f32 %v1348_v16, %v1332_v59  ;;  %v1444_v8 = vadd.f32 %v1428_v19, %v1412_v12  ;;  %v1620_v36 = vmul.f32 %v916_v22, %v916_v22  ;;  %v1652_v46 = vmul.f32 %v1028_v60, %v1028_v60  ;;  %v4117_v60 = vld [vmem:[%s2846_s22 + $0x138] sm:$0xff] }
 0x161   : > { %v1556_v49 = vsub.f32 %v1524_v23, %v1540_v45  ;;  %v1684_v43 = vmul.f32 %v1140_v33, %v1140_v33  ;;  %v4107_v5 = vadd.f32 %v4030_v10, %v4026_v29  ;;  %v1716_v25 = vmul.f32 %v1252_v42, %v1252_v42  ;;  %2131 = vst [vmem:[%s3265_s16 + $0x38] sm:$0xff] %v2083_v55  ;;  %v4153_v45 = vld [vmem:[%s2931_s18 + $0x130] sm:$0xff] }
 0x162   : > { %v1476_v24 = vsub.f32 %v1444_v8, %v1460_v31  ;;  %v1636_v2 = vadd.f32 %v1620_v36, %v1604_v39  ;;  %v4113_v34 = vmul.f32 %v2410_v57, %v3758_v47  ;;  %v4120_v1 = vmul.f32 %v2410_v57, %v3761_v3  ;;  %v4160_v8 = vld [vmem:[%s2931_s18 + $0x138] sm:$0xff] }
 0x163   : > { %v1588_v22 = vadd.f32 %v1572_v18, %v1556_v49  ;;  %v4123_v11 = vmul.f32 %v2410_v57, %v3764_v17  ;;  %v693_v29 = vmul.f32 %v2410_v57, %v3940_v56  ;;  %v1748_v35 = vmul.f32 %v1364_v52, %v1364_v52 }
 0x164   : > { %v1668_v10 = vadd.f32 %v1652_v46, %v1636_v2  ;;  %v709_v48 = vmul.f32 %v4113_v34, %v4100_v41  ;;  %v837_v47 = vmul.f32 %v4113_v34, %v4103_v50  ;;  %v1780_v33 = vmul.f32 %v1476_v24, %v1476_v24 }
 0x165   : > { %v1812_v16 = vmul.f32 %v1588_v22, %v1588_v22  ;;  %v725_v3 = vmul.f32 %v4120_v1, %v4103_v50  ;;  %v757_v17 = vmul.f32 %v4123_v11, %v4110_v28  ;;  %v789_v56 = vmul.f32 %v693_v29, %v4117_v60 }
 0x166   : > { %v1700_v61 = vadd.f32 %v1684_v43, %v1668_v10  ;;  %v821_v57 = vmul.f32 %v4120_v1, %v4100_v41  ;;  %v869_v40 = vmul.f32 %v693_v29, %v4110_v28  ;;  %v933_v19 = vmul.f32 %v4123_v11, %v4100_v41 }
 0x167   : > { %v741_v0 = vsub.f32 %v709_v48, %v725_v3  ;;  %v949_v62 = vmul.f32 %v693_v29, %v4103_v50  ;;  %v981_v31 = vmul.f32 %v4113_v34, %v4110_v28  ;;  %v901_v59 = vmul.f32 %v4123_v11, %v4117_v60 }
 0x168   : > { %v1732_v30 = vadd.f32 %v1716_v25, %v1700_v61  ;;  %v853_v42 = vadd.f32 %v837_v47, %v821_v57  ;;  %v1045_v12 = vmul.f32 %v693_v29, %v4100_v41  ;;  %v1061_v18 = vmul.f32 %v4123_v11, %v4103_v50 }
 0x169   : > { %v773_v55 = vsub.f32 %v741_v0, %v757_v17  ;;  %v965_v23 = vsub.f32 %v933_v19, %v949_v62  ;;  %v1093_v39 = vmul.f32 %v4120_v1, %v4110_v28  ;;  %v1013_v46 = vmul.f32 %v4120_v1, %v4117_v60 }
 0x16a   : > { %v1764_v52 = vadd.f32 %v1748_v35, %v1732_v30  ;;  %v885_v36 = vadd.f32 %v869_v40, %v853_v42  ;;  %v1157_v49 = vmul.f32 %v4113_v34, %v4139_v6  ;;  %v1077_v24 = vadd.f32 %v1061_v18, %v1045_v12 }
 0x16b   : > { %v997_v43 = vadd.f32 %v981_v31, %v965_v23  ;;  %v1125_v2 = vmul.f32 %v4113_v34, %v4117_v60  ;;  %v1173_v25 = vmul.f32 %v4120_v1, %v4147_v44  ;;  %v805_v10 = vsub.f32 %v773_v55, %v789_v56 }
 0x16c   : > { %v1796_v22 = vadd.f32 %v1780_v33, %v1764_v52  ;;  %v917_v35 = vsub.f32 %v885_v36, %v901_v59  ;;  %v1205_v48 = vmul.f32 %v4123_v11, %v4153_v45  ;;  %v1109_v47 = vsub.f32 %v1077_v24, %v1093_v39 }
 0x16d   : > { %v1189_v3 = vadd.f32 %v1173_v25, %v1157_v49  ;;  %v1237_v17 = vmul.f32 %v693_v29, %v4160_v8  ;;  %v1269_v61 = vmul.f32 %v4113_v34, %v4147_v44  ;;  %v1029_v40 = vadd.f32 %v1013_v46, %v997_v43 }
 0x16e   : > { %v1828_v57 = vadd.f32 %v1812_v16, %v1796_v22  ;;  %v1285_v0 = vmul.f32 %v4120_v1, %v4139_v6  ;;  %v1317_v19 = vmul.f32 %v693_v29, %v4153_v45  ;;  %v1349_v56 = vmul.f32 %v4123_v11, %v4160_v8 }
 0x16f   : > { %v1221_v33 = vadd.f32 %v1205_v48, %v1189_v3  ;;  %v1381_v62 = vmul.f32 %v4113_v34, %v4153_v45  ;;  %v1397_v31 = vmul.f32 %v4123_v11, %v4139_v6  ;;  %v1141_v42 = vadd.f32 %v1125_v2, %v1109_v47 }
 0x170   : > { %v1860_v30 = vadd.f32 %v4005_v26, %v1828_v57  ;;  %v1301_v16 = vsub.f32 %v1269_v61, %v1285_v0  ;;  %v1429_v59 = vmul.f32 %v693_v29, %v4147_v44  ;;  %v1461_v55 = vmul.f32 %v4120_v1, %v4160_v8  ;;  %v4220_v57 = vld [vmem:[%s2854_s9 + $0x188] sm:$0xff] }
 0x171   : > { %v1413_v12 = vsub.f32 %v1381_v62, %v1397_v31  ;;  %v1493_v23 = vmul.f32 %v4113_v34, %v4160_v8  ;;  %v1509_v18 = vmul.f32 %v693_v29, %v4139_v6  ;;  %v1253_v52 = vadd.f32 %v1237_v17, %v1221_v33 }
 0x172   : > { %v1892_v39 = vadd.f32 %v4007_v51, %v1860_v30  ;;  %v1333_v36 = vsub.f32 %v1301_v16, %v1317_v19  ;;  %v1541_v26 = vmul.f32 %v4123_v11, %v4147_v44  ;;  %v1605_v43 = vmul.f32 %v805_v10, %v805_v10  ;;  %v4200_v11 = vld [vmem:[%s2854_s9 + $0x178] sm:$0xff]  ;;  %v4225_v19 = vld [vmem:[%s2854_s9 + $0x190] sm:$0xff] }
 0x173   : > { %v1445_v46 = vadd.f32 %v1429_v59, %v1413_v12  ;;  %v1525_v49 = vsub.f32 %v1493_v23, %v1509_v18  ;;  %v1621_v24 = vmul.f32 %v917_v35, %v917_v35  ;;  %v1573_v25 = vmul.f32 %v4120_v1, %v4153_v45  ;;  %v326_v12 = vld [vmem:[%s2846_s22 + $0x140] sm:$0xff]  ;;  %v4254_v23 = vld [vmem:[%s2854_s9 + $0x198] sm:$0xff] }
 0x174   : > { %v1924_v2 = vadd.f32 %v4009_v32, %v1892_v39  ;;  %v1653_v34 = vmul.f32 %v1029_v40, %v1029_v40  ;;  %v551_v29 = vadd.f32 %v4047_v13, %v4043_v53  ;;  %v1365_v51 = vadd.f32 %v1349_v56, %v1333_v36  ;;  %v374_v36 = vld [vmem:[%s2846_s22 + $0x158] sm:$0xff] }
 0x175   : > { %v1557_v22 = vsub.f32 %v1525_v49, %v1541_v26  ;;  %v1637_v48 = vadd.f32 %v1621_v24, %v1605_v43  ;;  %v1685_v47 = vmul.f32 %v1141_v42, %v1141_v42  ;;  %v2004_v32 = vmul.f32 %v4060_v14, %v4060_v14  ;;  %v4263_v26 = vld [vmem:[%s2931_s18 + $0x140] sm:$0xff] }
 0x176   : > { %v1956_v10 = vadd.f32 %v4011_v21, %v1924_v2  ;;  %v2036_v1 = vmul.f32 %v4063_v4, %v4063_v4  ;;  %2411 = vrsqrt.f32 %v4107_v5  ;;  %v2068_v53 = vmul.f32 %v4067_v63, %v4067_v63  ;;  %v4217_v4 = vld [vmem:[%s2854_s9 + $0x180] sm:$0xff] }
 0x177   : > { %v1477_v13 = vsub.f32 %v1445_v46, %v1461_v55  ;;  %v1669_v35 = vadd.f32 %v1653_v34, %v1637_v48  ;;  %v1717_v3 = vmul.f32 %v1253_v52, %v1253_v52  ;;  %v1845_v21 = vmul.f32 %v4100_v41, %v4100_v41  ;;  %v342_v55 = vld [vmem:[%s2846_s22 + $0x148] sm:$0xff]  ;;  %v358_v52 = vld [vmem:[%s2846_s22 + $0x150] sm:$0xff] }
 0x178   : > { %v1988_v17 = vadd.f32 %v4015_v54, %v1956_v10  ;;  %v583_v61 = vadd.f32 %v4051_v20, %v551_v29  ;;  %v599_v14 = vmul.f32 %v4200_v11, %v4200_v11  ;;  %v1589_v5 = vadd.f32 %v1573_v25, %v1557_v22  ;;  %v4281_v25 = vld [vmem:[%s2854_s9 + $0x1a8] sm:$0xff]  ;;  %v4284_v34 = vld [vmem:[%s2854_s9 + $0x1b0] sm:$0xff] }
 0x179   : > { %v1701_v40 = vadd.f32 %v1685_v47, %v1669_v35  ;;  %v1749_v63 = vmul.f32 %v1365_v51, %v1365_v51  ;;  %v1877_v0 = vmul.f32 %v4103_v50, %v4103_v50  ;;  %v1909_v20 = vmul.f32 %v4110_v28, %v4110_v28 }
 0x17a   : > { %v2020_v54 = vadd.f32 %v2004_v32, %v1988_v17  ;;  %v4231_v41 = vmul.f32 %v4117_v60, %v4117_v60  ;;  %v4235_v33 = vmul.f32 %v4139_v6, %v4139_v6  ;;  %v1781_v62 = vmul.f32 %v1477_v13, %v1477_v13 }
 0x17b   : > { %v1733_v56 = vadd.f32 %v1717_v3, %v1701_v40  ;;  %v520_v50 = vmul.f32 %v4217_v4, %v4217_v4  ;;  %v536_v31 = vmul.f32 %v4220_v57, %v4220_v57  ;;  %v4243_v60 = vmul.f32 %v4147_v44, %v4147_v44 }
 0x17c   : > { %v2052_v28 = vadd.f32 %v2036_v1, %v2020_v54  ;;  %v615_v30 = vadd.f32 %v599_v14, %v583_v61  ;;  %v568_v6 = vmul.f32 %v4225_v19, %v4225_v19  ;;  %v1813_v16 = vmul.f32 %v1589_v5, %v1589_v5 }
 0x17d   : > { %v1765_v42 = vadd.f32 %v1749_v63, %v1733_v56  ;;  %v4249_v59 = vmul.f32 %v4153_v45, %v4153_v45  ;;  %v552_v18 = vadd.f32 %v536_v31, %v520_v50  ;;  %v4258_v39 = vmul.f32 %v4160_v8, %v4160_v8  ;;  %v4278_v8 = vld [vmem:[%s2854_s9 + $0x1a0] sm:$0xff] }
 0x17e   : > { %v2084_v44 = vadd.f32 %v2068_v53, %v2052_v28  ;;  %v4265_v46 = vmul.f32 %v326_v12, %v326_v12  ;;  %v4267_v45 = vmul.f32 %v342_v55, %v342_v55  ;;  %v4269_v43 = vmul.f32 %v358_v52, %v358_v52  ;;  %v4320_v28 = vld [vmem:[%s2931_s18 + $0x148] sm:$0xff] }
 0x17f   : > { %v1797_v49 = vadd.f32 %v1781_v62, %v1765_v42  ;;  %v4271_v24 = vmul.f32 %v374_v36, %v374_v36  ;;  %v4275_v2 = vmul.f32 %v4263_v26, %v4263_v26  ;;  %2413 = vrsqrt.f32 %v615_v30  ;;  %v4323_v30 = vld [vmem:[%s2931_s18 + $0x150] sm:$0xff] }
 0x180   : > { %v2412_v29 = vpop.eup %2411  ;;  %v4286_v51 = vadd.f32 %v568_v6, %v552_v18  ;;  %v4290_v22 = vmul.f32 %v4254_v23, %v4254_v23  ;;  %2132 = vst [vmem:[%s3265_s16 + $0x40] sm:$0xff] %v2084_v44  ;;  %v4303_v53 = vmul.f32 %v4278_v8, %v4278_v8  ;;  %v4307_v13 = vmul.f32 %v4281_v25, %v4281_v25 }
 0x181   : > { %v1829_v48 = vadd.f32 %v1813_v16, %v1797_v49  ;;  %v646_v47 = vmul.f32 %v2412_v29, %v3957_v38  ;;  %v4294_v10 = vmul.f32 %v2412_v29, %v3960_v37  ;;  %v4297_v32 = vmul.f32 %v2412_v29, %v3965_v9 }
 0x182   : > { %v694_v1 = vmul.f32 %v2412_v29, %v3994_v15  ;;  %v4311_v38 = vmul.f32 %v4284_v34, %v4284_v34 }
 0x183   : > { %v1861_v37 = vadd.f32 %v1845_v21, %v1829_v48  ;;  %v710_v35 = vmul.f32 %v646_v47, %v326_v12  ;;  %v726_v9 = vmul.f32 %v4294_v10, %v342_v55  ;;  %v758_v15 = vmul.f32 %v4297_v32, %v358_v52 }
 0x184   : > { %v790_v3 = vmul.f32 %v694_v1, %v374_v36  ;;  %v822_v17 = vmul.f32 %v4294_v10, %v326_v12  ;;  %v838_v61 = vmul.f32 %v646_v47, %v342_v55  ;;  %v870_v14 = vmul.f32 %v694_v1, %v358_v52 }
 0x185   : > { %v1893_v5 = vadd.f32 %v1877_v0, %v1861_v37  ;;  %v742_v40 = vsub.f32 %v710_v35, %v726_v9  ;;  %v902_v63 = vmul.f32 %v4297_v32, %v374_v36  ;;  %v934_v54 = vmul.f32 %v4297_v32, %v326_v12  ;;  %v4327_v0 = vld [vmem:[%s2931_s18 + $0x158] sm:$0xff] }
 0x186   : > { %v854_v21 = vadd.f32 %v838_v61, %v822_v17  ;;  %v950_v56 = vmul.f32 %v694_v1, %v342_v55  ;;  %v982_v62 = vmul.f32 %v646_v47, %v358_v52  ;;  %v1014_v50 = vmul.f32 %v4294_v10, %v374_v36 }
 0x187   : > { %v1925_v31 = vadd.f32 %v1909_v20, %v1893_v5  ;;  %v774_v6 = vsub.f32 %v742_v40, %v758_v15  ;;  %v1046_v42 = vmul.f32 %v694_v1, %v326_v12  ;;  %v1062_v16 = vmul.f32 %v4297_v32, %v342_v55 }
 0x188   : > { %v886_v18 = vadd.f32 %v870_v14, %v854_v21  ;;  %v966_v44 = vsub.f32 %v934_v54, %v950_v56  ;;  %v1094_v49 = vmul.f32 %v4294_v10, %v358_v52  ;;  %v1126_v29 = vmul.f32 %v646_v47, %v374_v36 }
 0x189   : > { %v1957_v48 = vadd.f32 %v4231_v41, %v1925_v31  ;;  %v806_v37 = vsub.f32 %v774_v6, %v790_v3  ;;  %v1078_v35 = vadd.f32 %v1062_v16, %v1046_v42  ;;  %v1158_v20 = vmul.f32 %v646_v47, %v4263_v26  ;;  %v2414_v9 = vpop.eup %2413 }
 0x18a   : > { %v918_v17 = vsub.f32 %v886_v18, %v902_v63  ;;  %v998_v61 = vadd.f32 %v982_v62, %v966_v44  ;;  %v1174_v12 = vmul.f32 %v4294_v10, %v4320_v28  ;;  %v1206_v55 = vmul.f32 %v4297_v32, %v4323_v30 }
 0x18b   : > { %v1989_v15 = vadd.f32 %v4235_v33, %v1957_v48  ;;  %v1110_v14 = vsub.f32 %v1078_v35, %v1094_v49  ;;  %v1238_v52 = vmul.f32 %v694_v1, %v4327_v0  ;;  %v1270_v41 = vmul.f32 %v646_v47, %v4320_v28 }
 0x18c   : > { %v1030_v36 = vadd.f32 %v1014_v50, %v998_v61  ;;  %v1190_v3 = vadd.f32 %v1174_v12, %v1158_v20  ;;  %v1286_v5 = vmul.f32 %v4294_v10, %v4263_v26  ;;  %v1318_v40 = vmul.f32 %v694_v1, %v4323_v30 }
 0x18d   : > { %v2021_v63 = vadd.f32 %v4243_v60, %v1989_v15  ;;  %v1142_v54 = vadd.f32 %v1126_v29, %v1110_v14  ;;  %v1350_v21 = vmul.f32 %v4297_v32, %v4327_v0  ;;  %v1382_v33 = vmul.f32 %v646_v47, %v4323_v30  ;;  %v4360_v15 = vld [vmem:[%s2846_s22 + $0x160] sm:$0xff]  ;;  %v4363_v14 = vld [vmem:[%s2846_s22 + $0x168] sm:$0xff] }
 0x18e   : > { %v1222_v56 = vadd.f32 %v1206_v55, %v1190_v3  ;;  %v1302_v62 = vsub.f32 %v1270_v41, %v1286_v5  ;;  %v1398_v31 = vmul.f32 %v4297_v32, %v4263_v26  ;;  %v1430_v50 = vmul.f32 %v694_v1, %v4320_v28  ;;  %v4370_v41 = vld [vmem:[%s2846_s22 + $0x170] sm:$0xff] }
 0x18f   : > { %v2053_v6 = vadd.f32 %v4249_v59, %v2021_v63  ;;  %v1462_v42 = vmul.f32 %v4294_v10, %v4327_v0  ;;  %v1494_v60 = vmul.f32 %v646_v47, %v4327_v0  ;;  %v1510_v16 = vmul.f32 %v694_v1, %v4263_v26 }
 0x190   : > { %v1254_v18 = vadd.f32 %v1238_v52, %v1222_v56  ;;  %v1334_v44 = vsub.f32 %v1302_v62, %v1318_v40  ;;  %v1414_v49 = vsub.f32 %v1382_v33, %v1398_v31  ;;  %v1542_v29 = vmul.f32 %v4297_v32, %v4320_v28  ;;  %v4399_v62 = vld [vmem:[%s2931_s18 + $0x160] sm:$0xff] }
 0x191   : > { %v2085_v48 = vadd.f32 %v4258_v39, %v2053_v6  ;;  %v1526_v35 = vsub.f32 %v1494_v60, %v1510_v16  ;;  %v1574_v59 = vmul.f32 %v4294_v10, %v4323_v30  ;;  %v1606_v20 = vmul.f32 %v806_v37, %v806_v37  ;;  %v4407_v16 = vld [vmem:[%s2931_s18 + $0x168] sm:$0xff] }
 0x192   : > { %v1366_v47 = vadd.f32 %v1350_v21, %v1334_v44  ;;  %v1446_v61 = vadd.f32 %v1430_v50, %v1414_v49  ;;  %v1622_v26 = vmul.f32 %v918_v17, %v918_v17  ;;  %v1654_v1 = vmul.f32 %v1030_v36, %v1030_v36  ;;  %v4377_v36 = vld [vmem:[%s2846_s22 + $0x178] sm:$0xff] }
 0x193   : > { %v1558_v12 = vsub.f32 %v1526_v35, %v1542_v29  ;;  %v1686_v55 = vmul.f32 %v1142_v54, %v1142_v54  ;;  %v4367_v39 = vadd.f32 %v4290_v22, %v4286_v51  ;;  %v1718_v10 = vmul.f32 %v1254_v18, %v1254_v18  ;;  %2133 = vst [vmem:[%s3265_s16 + $0x48] sm:$0xff] %v2085_v48  ;;  %v4413_v29 = vld [vmem:[%s2931_s18 + $0x170] sm:$0xff] }
 0x194   : > { %v1478_v32 = vsub.f32 %v1446_v61, %v1462_v42  ;;  %v1638_v52 = vadd.f32 %v1622_v26, %v1606_v20  ;;  %v4373_v37 = vmul.f32 %v2414_v9, %v4018_v27  ;;  %v4380_v3 = vmul.f32 %v2414_v9, %v4021_v7  ;;  %v4420_v61 = vld [vmem:[%s2931_s18 + $0x178] sm:$0xff] }
 0x195   : > { %v1590_v17 = vadd.f32 %v1574_v59, %v1558_v12  ;;  %v4383_v5 = vmul.f32 %v2414_v9, %v4024_v58  ;;  %v695_v51 = vmul.f32 %v2414_v9, %v4200_v11  ;;  %v1750_v40 = vmul.f32 %v1366_v47, %v1366_v47 }
 0x196   : > { %v1670_v22 = vadd.f32 %v1654_v1, %v1638_v52  ;;  %v711_v63 = vmul.f32 %v4373_v37, %v4360_v15  ;;  %v839_v27 = vmul.f32 %v4373_v37, %v4363_v14  ;;  %v1782_v54 = vmul.f32 %v1478_v32, %v1478_v32 }
 0x197   : > { %v1814_v21 = vmul.f32 %v1590_v17, %v1590_v17  ;;  %v727_v7 = vmul.f32 %v4380_v3, %v4363_v14  ;;  %v759_v58 = vmul.f32 %v4383_v5, %v4370_v41  ;;  %v791_v11 = vmul.f32 %v695_v51, %v4377_v36 }
 0x198   : > { %v1702_v33 = vadd.f32 %v1686_v55, %v1670_v22  ;;  %v823_v9 = vmul.f32 %v4380_v3, %v4360_v15  ;;  %v871_v56 = vmul.f32 %v695_v51, %v4370_v41  ;;  %v935_v50 = vmul.f32 %v4383_v5, %v4360_v15 }
 0x199   : > { %v743_v31 = vsub.f32 %v711_v63, %v727_v7  ;;  %v951_v6 = vmul.f32 %v695_v51, %v4363_v14  ;;  %v983_v42 = vmul.f32 %v4373_v37, %v4370_v41  ;;  %v903_v44 = vmul.f32 %v4383_v5, %v4377_v36 }
 0x19a   : > { %v1734_v60 = vadd.f32 %v1718_v10, %v1702_v33  ;;  %v855_v18 = vadd.f32 %v839_v27, %v823_v9  ;;  %v1047_v49 = vmul.f32 %v695_v51, %v4360_v15  ;;  %v1063_v59 = vmul.f32 %v4383_v5, %v4363_v14 }
 0x19b   : > { %v775_v48 = vsub.f32 %v743_v31, %v759_v58  ;;  %v967_v35 = vsub.f32 %v935_v50, %v951_v6  ;;  %v1095_v20 = vmul.f32 %v4380_v3, %v4370_v41  ;;  %v1015_v1 = vmul.f32 %v4380_v3, %v4377_v36 }
 0x19c   : > { %v1766_v47 = vadd.f32 %v1750_v40, %v1734_v60  ;;  %v887_v26 = vadd.f32 %v871_v56, %v855_v18  ;;  %v1159_v12 = vmul.f32 %v4373_v37, %v4399_v62  ;;  %v1079_v32 = vadd.f32 %v1063_v59, %v1047_v49 }
 0x19d   : > { %v999_v55 = vadd.f32 %v983_v42, %v967_v35  ;;  %v1127_v52 = vmul.f32 %v4373_v37, %v4377_v36  ;;  %v1175_v10 = vmul.f32 %v4380_v3, %v4407_v16  ;;  %v807_v22 = vsub.f32 %v775_v48, %v791_v11 }
 0x19e   : > { %v1798_v17 = vadd.f32 %v1782_v54, %v1766_v47  ;;  %v919_v40 = vsub.f32 %v887_v26, %v903_v44  ;;  %v1207_v63 = vmul.f32 %v4383_v5, %v4413_v29  ;;  %v1111_v27 = vsub.f32 %v1079_v32, %v1095_v20 }
 0x19f   : > { %v1191_v7 = vadd.f32 %v1175_v10, %v1159_v12  ;;  %v1239_v58 = vmul.f32 %v695_v51, %v4420_v61  ;;  %v1271_v33 = vmul.f32 %v4373_v37, %v4407_v16  ;;  %v1031_v56 = vadd.f32 %v1015_v1, %v999_v55 }
 0x1a0   : > { %v1830_v9 = vadd.f32 %v1814_v21, %v1798_v17  ;;  %v1287_v31 = vmul.f32 %v4380_v3, %v4399_v62  ;;  %v1319_v50 = vmul.f32 %v695_v51, %v4413_v29  ;;  %v1351_v11 = vmul.f32 %v4383_v5, %v4420_v61 }
 0x1a1   : > { %v1223_v54 = vadd.f32 %v1207_v63, %v1191_v7  ;;  %v1383_v6 = vmul.f32 %v4373_v37, %v4413_v29  ;;  %v1399_v42 = vmul.f32 %v4383_v5, %v4399_v62  ;;  %v1143_v18 = vadd.f32 %v1127_v52, %v1111_v27 }
 0x1a2   : > { %v1862_v60 = vadd.f32 %v4265_v46, %v1830_v9  ;;  %v1303_v21 = vsub.f32 %v1271_v33, %v1287_v31  ;;  %v1431_v44 = vmul.f32 %v695_v51, %v4407_v16  ;;  %v1463_v48 = vmul.f32 %v4380_v3, %v4420_v61 }
 0x1a3   : > { %v1415_v49 = vsub.f32 %v1383_v6, %v1399_v42  ;;  %v1495_v35 = vmul.f32 %v4373_v37, %v4420_v61  ;;  %v1511_v59 = vmul.f32 %v695_v51, %v4399_v62  ;;  %v1255_v47 = vadd.f32 %v1239_v58, %v1223_v54  ;;  %v4491_v6 = vld [vmem:[%s2854_s9 + $0x1d0] sm:$0xff] }
 0x1a4   : > { %v1894_v20 = vadd.f32 %v4267_v45, %v1862_v60  ;;  %v1335_v26 = vsub.f32 %v1303_v21, %v1319_v50  ;;  %v1543_v46 = vmul.f32 %v4383_v5, %v4407_v16  ;;  %v1607_v55 = vmul.f32 %v807_v22, %v807_v22  ;;  %v4460_v5 = vld [vmem:[%s2854_s9 + $0x1b8] sm:$0xff] }
 0x1a5   : > { %v1447_v1 = vadd.f32 %v1431_v44, %v1415_v49  ;;  %v1527_v12 = vsub.f32 %v1495_v35, %v1511_v59  ;;  %v1623_v32 = vmul.f32 %v919_v40, %v919_v40  ;;  %v1575_v10 = vmul.f32 %v4380_v3, %v4413_v29  ;;  %v360_v59 = vld [vmem:[%s2846_s22 + $0x190] sm:$0xff] }
 0x1a6   : > { %v1926_v52 = vadd.f32 %v4269_v43, %v1894_v20  ;;  %v1655_v37 = vmul.f32 %v1031_v56, %v1031_v56  ;;  %v553_v51 = vadd.f32 %v4307_v13, %v4303_v53  ;;  %v1367_v45 = vadd.f32 %v1351_v11, %v1335_v26  ;;  %v376_v20 = vld [vmem:[%s2846_s22 + $0x198] sm:$0xff] }
 0x1a7   : > { %v1559_v17 = vsub.f32 %v1527_v12, %v1543_v46  ;;  %v1639_v63 = vadd.f32 %v1623_v32, %v1607_v55  ;;  %v1687_v27 = vmul.f32 %v1143_v18, %v1143_v18  ;;  %v2006_v43 = vmul.f32 %v4320_v28, %v4320_v28  ;;  %v4475_v28 = vld [vmem:[%s2854_s9 + $0x1c0] sm:$0xff] }
 0x1a8   : > { %v1958_v22 = vadd.f32 %v4271_v24, %v1926_v52  ;;  %2415 = vrsqrt.f32 %v4367_v39  ;;  %v2038_v3 = vmul.f32 %v4323_v30, %v4323_v30  ;;  %v1479_v40 = vsub.f32 %v1447_v1, %v1463_v48  ;;  %v4478_v39 = vld [vmem:[%s2854_s9 + $0x1c8] sm:$0xff]  ;;  %v4515_v48 = vld [vmem:[%s2854_s9 + $0x1d8] sm:$0xff]  ;;  %v4525_v1 = vld [vmem:[%s2931_s18 + $0x180] sm:$0xff] }
 0x1a9   : > { %v1671_v53 = vadd.f32 %v1655_v37, %v1639_v63  ;;  %v1719_v13 = vmul.f32 %v1255_v47, %v1255_v47  ;;  %v2070_v58 = vmul.f32 %v4327_v0, %v4327_v0  ;;  %v585_v33 = vadd.f32 %v4311_v38, %v553_v51  ;;  %v4534_v32 = vld [vmem:[%s2854_s9 + $0x1e0] sm:$0xff]  ;;  %v4537_v52 = vld [vmem:[%s2854_s9 + $0x1e8] sm:$0xff] }
 0x1aa   : > { %v1990_v7 = vadd.f32 %v4275_v2, %v1958_v22  ;;  %v601_v24 = vmul.f32 %v4460_v5, %v4460_v5  ;;  %v1591_v9 = vadd.f32 %v1575_v10, %v1559_v17  ;;  %v1751_v56 = vmul.f32 %v1367_v45, %v1367_v45 }
 0x1ab   : > { %v1703_v30 = vadd.f32 %v1687_v27, %v1671_v53  ;;  %v1847_v31 = vmul.f32 %v4360_v15, %v4360_v15  ;;  %v1879_v50 = vmul.f32 %v4363_v14, %v4363_v14  ;;  %v1911_v38 = vmul.f32 %v4370_v41, %v4370_v41 }
 0x1ac   : > { %v2022_v2 = vadd.f32 %v2006_v43, %v1990_v7  ;;  %v4488_v0 = vmul.f32 %v4377_v36, %v4377_v36  ;;  %v1783_v11 = vmul.f32 %v1479_v40, %v1479_v40  ;;  %v522_v15 = vmul.f32 %v4475_v28, %v4475_v28 }
 0x1ad   : > { %v1735_v54 = vadd.f32 %v1719_v13, %v1703_v30  ;;  %v538_v14 = vmul.f32 %v4478_v39, %v4478_v39  ;;  %v4499_v41 = vmul.f32 %v4399_v62, %v4399_v62  ;;  %v4503_v36 = vmul.f32 %v4407_v16, %v4407_v16  ;;  %v328_v62 = vld [vmem:[%s2846_s22 + $0x180] sm:$0xff]  ;;  %v344_v16 = vld [vmem:[%s2846_s22 + $0x188] sm:$0xff] }
 0x1ae   : > { %v2054_v42 = vadd.f32 %v2038_v3, %v2022_v2  ;;  %v617_v60 = vadd.f32 %v601_v24, %v585_v33  ;;  %v1815_v21 = vmul.f32 %v1591_v9, %v1591_v9  ;;  %v4507_v44 = vmul.f32 %v4413_v29, %v4413_v29 }
 0x1af   : > { %v1767_v18 = vadd.f32 %v1751_v56, %v1735_v54  ;;  %v4511_v49 = vmul.f32 %v4420_v61, %v4420_v61  ;;  %v4520_v47 = vmul.f32 %v328_v62, %v328_v62  ;;  %v554_v26 = vadd.f32 %v538_v14, %v522_v15  ;;  %v4573_v15 = vld [vmem:[%s2931_s18 + $0x188] sm:$0xff]  ;;  %v4576_v14 = vld [vmem:[%s2931_s18 + $0x190] sm:$0xff] }
 0x1b0   : > { %v2086_v35 = vadd.f32 %v2070_v58, %v2054_v42  ;;  %v570_v29 = vmul.f32 %v4491_v6, %v4491_v6  ;;  %v4527_v61 = vmul.f32 %v344_v16, %v344_v16  ;;  %v4529_v12 = vmul.f32 %v360_v59, %v360_v59 }
 0x1b1   : > { %v1799_v46 = vadd.f32 %v1783_v11, %v1767_v18  ;;  %v4531_v55 = vmul.f32 %v376_v20, %v376_v20  ;;  %v4541_v37 = vmul.f32 %v4525_v1, %v4525_v1  ;;  %2417 = vrsqrt.f32 %v617_v60 }
 0x1b2   : > { %v2416_v10 = vpop.eup %2415  ;;  %v4545_v51 = vmul.f32 %v4515_v48, %v4515_v48  ;;  %2134 = vst [vmem:[%s3265_s16 + $0x50] sm:$0xff] %v2086_v35  ;;  %v4556_v43 = vadd.f32 %v570_v29, %v554_v26  ;;  %v4560_v3 = vmul.f32 %v4534_v32, %v4534_v32  ;;  %v4564_v40 = vmul.f32 %v4537_v52, %v4537_v52 }
 0x1b3   : > { %v1831_v45 = vadd.f32 %v1815_v21, %v1799_v46  ;;  %v648_v17 = vmul.f32 %v2416_v10, %v4217_v4  ;;  %v4549_v63 = vmul.f32 %v2416_v10, %v4220_v57  ;;  %v4552_v27 = vmul.f32 %v2416_v10, %v4225_v19 }
 0x1b4   : > { %v696_v22 = vmul.f32 %v2416_v10, %v4254_v23 }
 0x1b5   : > { %v1863_v4 = vadd.f32 %v1847_v31, %v1831_v45  ;;  %v712_v53 = vmul.f32 %v648_v17, %v328_v62  ;;  %v728_v57 = vmul.f32 %v4549_v63, %v344_v16  ;;  %v760_v19 = vmul.f32 %v4552_v27, %v360_v59 }
 0x1b6   : > { %v792_v13 = vmul.f32 %v696_v22, %v376_v20  ;;  %v824_v23 = vmul.f32 %v4549_v63, %v328_v62  ;;  %v840_v7 = vmul.f32 %v648_v17, %v344_v16  ;;  %v872_v58 = vmul.f32 %v696_v22, %v360_v59 }
 0x1b7   : > { %v1895_v33 = vadd.f32 %v1879_v50, %v1863_v4  ;;  %v744_v24 = vsub.f32 %v712_v53, %v728_v57  ;;  %v904_v9 = vmul.f32 %v4552_v27, %v376_v20  ;;  %v936_v30 = vmul.f32 %v4552_v27, %v328_v62  ;;  %v4580_v50 = vld [vmem:[%s2931_s18 + $0x198] sm:$0xff] }
 0x1b8   : > { %v856_v56 = vadd.f32 %v840_v7, %v824_v23  ;;  %v952_v31 = vmul.f32 %v696_v22, %v344_v16  ;;  %v984_v2 = vmul.f32 %v648_v17, %v360_v59  ;;  %v1016_v54 = vmul.f32 %v4549_v63, %v376_v20 }
 0x1b9   : > { %v1927_v11 = vadd.f32 %v1911_v38, %v1895_v33  ;;  %v776_v42 = vsub.f32 %v744_v24, %v760_v19  ;;  %v1048_v60 = vmul.f32 %v696_v22, %v328_v62  ;;  %v1064_v18 = vmul.f32 %v4552_v27, %v344_v16 }
 0x1ba   : > { %v888_v21 = vadd.f32 %v872_v58, %v856_v56  ;;  %v968_v35 = vsub.f32 %v936_v30, %v952_v31  ;;  %v1096_v26 = vmul.f32 %v4549_v63, %v360_v59  ;;  %v1128_v29 = vmul.f32 %v648_v17, %v376_v20 }
 0x1bb   : > { %v1959_v46 = vadd.f32 %v4488_v0, %v1927_v11  ;;  %v808_v10 = vsub.f32 %v776_v42, %v792_v13  ;;  %v1080_v45 = vadd.f32 %v1064_v18, %v1048_v60  ;;  %v1160_v38 = vmul.f32 %v648_v17, %v4525_v1  ;;  %v2418_v4 = vpop.eup %2417 }
 0x1bc   : > { %v920_v53 = vsub.f32 %v888_v21, %v904_v9  ;;  %v1000_v57 = vadd.f32 %v984_v2, %v968_v35  ;;  %v1176_v62 = vmul.f32 %v4549_v63, %v4573_v15  ;;  %v1208_v16 = vmul.f32 %v4552_v27, %v4576_v14 }
 0x1bd   : > { %v1991_v19 = vadd.f32 %v4499_v41, %v1959_v46  ;;  %v1112_v23 = vsub.f32 %v1080_v45, %v1096_v26  ;;  %v1240_v59 = vmul.f32 %v696_v22, %v4580_v50  ;;  %v1272_v0 = vmul.f32 %v648_v17, %v4573_v15 }
 0x1be   : > { %v1032_v20 = vadd.f32 %v1016_v54, %v1000_v57  ;;  %v1192_v13 = vadd.f32 %v1176_v62, %v1160_v38  ;;  %v1288_v7 = vmul.f32 %v4549_v63, %v4525_v1  ;;  %v1320_v58 = vmul.f32 %v696_v22, %v4576_v14  ;;  %v4613_v62 = vld [vmem:[%s2846_s22 + $0x1a0] sm:$0xff] }
 0x1bf   : > { %v2023_v33 = vadd.f32 %v4503_v36, %v1991_v19  ;;  %v1144_v24 = vadd.f32 %v1128_v29, %v1112_v23  ;;  %v1352_v9 = vmul.f32 %v4552_v27, %v4580_v50  ;;  %v1384_v41 = vmul.f32 %v648_v17, %v4576_v14  ;;  %v4623_v23 = vld [vmem:[%s2846_s22 + $0x1b0] sm:$0xff] }
 0x1c0   : > { %v1224_v30 = vadd.f32 %v1208_v16, %v1192_v13  ;;  %v1304_v56 = vsub.f32 %v1272_v0, %v1288_v7  ;;  %v1400_v31 = vmul.f32 %v4552_v27, %v4525_v1  ;;  %v1432_v2 = vmul.f32 %v696_v22, %v4573_v15  ;;  %v4616_v16 = vld [vmem:[%s2846_s22 + $0x1a8] sm:$0xff] }
 0x1c1   : > { %v2055_v54 = vadd.f32 %v4507_v44, %v2023_v33  ;;  %v1464_v11 = vmul.f32 %v4549_v63, %v4580_v50  ;;  %v1496_v36 = vmul.f32 %v648_v17, %v4580_v50  ;;  %v1512_v42 = vmul.f32 %v696_v22, %v4525_v1 }
 0x1c2   : > { %v1256_v60 = vadd.f32 %v1240_v59, %v1224_v30  ;;  %v1336_v18 = vsub.f32 %v1304_v56, %v1320_v58  ;;  %v1416_v21 = vsub.f32 %v1384_v41, %v1400_v31  ;;  %v1544_v35 = vmul.f32 %v4552_v27, %v4573_v15  ;;  %v4630_v59 = vld [vmem:[%s2846_s22 + $0x1b8] sm:$0xff]  ;;  %v4652_v41 = vld [vmem:[%s2931_s18 + $0x1a0] sm:$0xff] }
 0x1c3   : > { %v2087_v26 = vadd.f32 %v4511_v49, %v2055_v54  ;;  %v1528_v29 = vsub.f32 %v1496_v36, %v1512_v42  ;;  %v1576_v44 = vmul.f32 %v4549_v63, %v4576_v14  ;;  %v1608_v46 = vmul.f32 %v808_v10, %v808_v10 }
 0x1c4   : > { %v1368_v17 = vadd.f32 %v1352_v9, %v1336_v18  ;;  %v1448_v45 = vadd.f32 %v1432_v2, %v1416_v21  ;;  %v1624_v1 = vmul.f32 %v920_v53, %v920_v53  ;;  %v1656_v22 = vmul.f32 %v1032_v20, %v1032_v20  ;;  %v4666_v18 = vld [vmem:[%s2931_s18 + $0x1b0] sm:$0xff] }
 0x1c5   : > { %v1560_v38 = vsub.f32 %v1528_v29, %v1544_v35  ;;  %v1688_v57 = vmul.f32 %v1144_v24, %v1144_v24  ;;  %v4620_v49 = vadd.f32 %v4545_v51, %v4556_v43  ;;  %v1720_v63 = vmul.f32 %v1256_v60, %v1256_v60  ;;  %2135 = vst [vmem:[%s3265_s16 + $0x58] sm:$0xff] %v2087_v26 }
 0x1c6   : > { %v1480_v27 = vsub.f32 %v1448_v45, %v1464_v11  ;;  %v1640_v19 = vadd.f32 %v1624_v1, %v1608_v46  ;;  %v4626_v10 = vmul.f32 %v2418_v4, %v4278_v8  ;;  %v4633_v0 = vmul.f32 %v2418_v4, %v4281_v25  ;;  %v4660_v11 = vld [vmem:[%s2931_s18 + $0x1a8] sm:$0xff]  ;;  %v4673_v46 = vld [vmem:[%s2931_s18 + $0x1b8] sm:$0xff] }
 0x1c7   : > { %v1592_v53 = vadd.f32 %v1576_v44, %v1560_v38  ;;  %v4636_v20 = vmul.f32 %v2418_v4, %v4284_v34  ;;  %v697_v51 = vmul.f32 %v2418_v4, %v4460_v5  ;;  %v1752_v13 = vmul.f32 %v1368_v17, %v1368_v17 }
 0x1c8   : > { %v1672_v43 = vadd.f32 %v1656_v22, %v1640_v19  ;;  %v713_v7 = vmul.f32 %v4626_v10, %v4613_v62  ;;  %v841_v8 = vmul.f32 %v4626_v10, %v4616_v16  ;;  %v1784_v58 = vmul.f32 %v1480_v27, %v1480_v27 }
 0x1c9   : > { %v1816_v33 = vmul.f32 %v1592_v53, %v1592_v53  ;;  %v729_v25 = vmul.f32 %v4633_v0, %v4616_v16  ;;  %v761_v34 = vmul.f32 %v4636_v20, %v4623_v23  ;;  %v793_v5 = vmul.f32 %v697_v51, %v4630_v59 }
 0x1ca   : > { %v1704_v24 = vadd.f32 %v1688_v57, %v1672_v43  ;;  %v825_v4 = vmul.f32 %v4633_v0, %v4613_v62  ;;  %v873_v9 = vmul.f32 %v697_v51, %v4623_v23  ;;  %v937_v56 = vmul.f32 %v4636_v20, %v4613_v62 }
 0x1cb   : > { %v745_v30 = vsub.f32 %v713_v7, %v729_v25  ;;  %v953_v31 = vmul.f32 %v697_v51, %v4616_v16  ;;  %v985_v2 = vmul.f32 %v4626_v10, %v4623_v23  ;;  %v905_v42 = vmul.f32 %v4636_v20, %v4630_v59 }
 0x1cc   : > { %v1736_v54 = vadd.f32 %v1720_v63, %v1704_v24  ;;  %v857_v36 = vadd.f32 %v841_v8, %v825_v4  ;;  %v1049_v60 = vmul.f32 %v697_v51, %v4613_v62  ;;  %v1065_v26 = vmul.f32 %v4636_v20, %v4616_v16 }
 0x1cd   : > { %v777_v21 = vsub.f32 %v745_v30, %v761_v34  ;;  %v969_v35 = vsub.f32 %v937_v56, %v953_v31  ;;  %v1097_v29 = vmul.f32 %v4633_v0, %v4623_v23  ;;  %v1017_v45 = vmul.f32 %v4633_v0, %v4630_v59 }
 0x1ce   : > { %v1768_v44 = vadd.f32 %v1752_v13, %v1736_v54  ;;  %v889_v17 = vadd.f32 %v873_v9, %v857_v36  ;;  %v1161_v1 = vmul.f32 %v4626_v10, %v4652_v41  ;;  %v1081_v38 = vadd.f32 %v1065_v26, %v1049_v60 }
 0x1cf   : > { %v1001_v22 = vadd.f32 %v985_v2, %v969_v35  ;;  %v1129_v57 = vmul.f32 %v4626_v10, %v4630_v59  ;;  %v1177_v27 = vmul.f32 %v4633_v0, %v4660_v11  ;;  %v809_v63 = vsub.f32 %v777_v21, %v793_v5 }
 0x1d0   : > { %v1800_v19 = vadd.f32 %v1784_v58, %v1768_v44  ;;  %v921_v53 = vsub.f32 %v889_v17, %v905_v42  ;;  %v1209_v43 = vmul.f32 %v4636_v20, %v4666_v18  ;;  %v1113_v13 = vsub.f32 %v1081_v38, %v1097_v29 }
 0x1d1   : > { %v1193_v7 = vadd.f32 %v1177_v27, %v1161_v1  ;;  %v1241_v8 = vmul.f32 %v697_v51, %v4673_v46  ;;  %v1273_v25 = vmul.f32 %v4626_v10, %v4660_v11  ;;  %v1033_v24 = vadd.f32 %v1017_v45, %v1001_v22  ;;  %v4708_v22 = vld [vmem:[%s2854_s9 + $0x1f0] sm:$0xff] }
 0x1d2   : > { %v1832_v34 = vadd.f32 %v1816_v33, %v1800_v19  ;;  %v1289_v4 = vmul.f32 %v4633_v0, %v4652_v41  ;;  %v1321_v9 = vmul.f32 %v697_v51, %v4666_v18  ;;  %v1353_v5 = vmul.f32 %v4636_v20, %v4673_v46 }
 0x1d3   : > { %v1225_v58 = vadd.f32 %v1209_v43, %v1193_v7  ;;  %v1385_v30 = vmul.f32 %v4626_v10, %v4666_v18  ;;  %v1401_v56 = vmul.f32 %v4636_v20, %v4652_v41  ;;  %v1145_v33 = vadd.f32 %v1129_v57, %v1113_v13  ;;  %v4722_v7 = vld [vmem:[%s2854_s9 + $0x1f8] sm:$0xff] }
 0x1d4   : > { %v1864_v31 = vadd.f32 %v4520_v47, %v1832_v34  ;;  %v1305_v2 = vsub.f32 %v1273_v25, %v1289_v4  ;;  %v1433_v54 = vmul.f32 %v697_v51, %v4660_v11  ;;  %v1465_v42 = vmul.f32 %v4633_v0, %v4673_v46 }
 0x1d5   : > { %v1417_v36 = vsub.f32 %v1385_v30, %v1401_v56  ;;  %v1497_v60 = vmul.f32 %v4626_v10, %v4673_v46  ;;  %v1513_v21 = vmul.f32 %v697_v51, %v4652_v41  ;;  %v1257_v26 = vadd.f32 %v1241_v8, %v1225_v58 }
 0x1d6   : > { %v1896_v35 = vadd.f32 %v4527_v61, %v1864_v31  ;;  %v1337_v29 = vsub.f32 %v1305_v2, %v1321_v9  ;;  %v1545_v47 = vmul.f32 %v4636_v20, %v4660_v11  ;;  %v1609_v45 = vmul.f32 %v809_v63, %v809_v63 }
 0x1d7   : > { %v1449_v44 = vadd.f32 %v1433_v54, %v1417_v36  ;;  %v1529_v17 = vsub.f32 %v1497_v60, %v1513_v21  ;;  %v1625_v1 = vmul.f32 %v921_v53, %v921_v53  ;;  %v2008_v10 = vmul.f32 %v4573_v15, %v4573_v15  ;;  %v330_v36 = vld [vmem:[%s2846_s22 + $0x1c0] sm:$0xff]  ;;  %v346_v60 = vld [vmem:[%s2846_s22 + $0x1c8] sm:$0xff]  ;;  %v362_v21 = vld [vmem:[%s2846_s22 + $0x1d0] sm:$0xff] }
 0x1d8   : > { %v1928_v38 = vadd.f32 %v4529_v12, %v1896_v35  ;;  %v1577_v61 = vmul.f32 %v4633_v0, %v4666_v18  ;;  %v1657_v51 = vmul.f32 %v1033_v24, %v1033_v24  ;;  %v1369_v57 = vadd.f32 %v1353_v5, %v1337_v29 }
 0x1d9   : > { %v1561_v27 = vsub.f32 %v1529_v17, %v1545_v47  ;;  %v1641_v19 = vadd.f32 %v1625_v1, %v1609_v45  ;;  %v1689_v20 = vmul.f32 %v1145_v33, %v1145_v33  ;;  %2419 = vrsqrt.f32 %v4620_v49 }
 0x1da   : > { %v1960_v43 = vadd.f32 %v4531_v55, %v1928_v38  ;;  %v555_v63 = vadd.f32 %v4564_v40, %v4560_v3  ;;  %v571_v12 = vmul.f32 %v4708_v22, %v4708_v22  ;;  %v1481_v53 = vsub.f32 %v1449_v44, %v1465_v42 }
 0x1db   : > { %v1673_v15 = vadd.f32 %v1657_v51, %v1641_v19  ;;  %v1721_v13 = vmul.f32 %v1257_v26, %v1257_v26  ;;  %v2040_v8 = vmul.f32 %v4576_v14, %v4576_v14  ;;  %v1593_v25 = vadd.f32 %v1577_v61, %v1561_v27 }
 0x1dc   : > { %v1992_v0 = vadd.f32 %v4541_v37, %v1960_v43  ;;  %v1753_v34 = vmul.f32 %v1369_v57, %v1369_v57  ;;  %v2072_v3 = vmul.f32 %v4580_v50, %v4580_v50  ;;  %v587_v40 = vadd.f32 %v571_v12, %v555_v63  ;;  %v4786_v57 = vld [vmem:[%s2931_s18 + $0x1c0] sm:$0xff]  ;;  %v4792_v12 = vld [vmem:[%s2931_s18 + $0x1c8] sm:$0xff] }
 0x1dd   : > { %v1705_v55 = vadd.f32 %v1689_v20, %v1673_v15  ;;  %v603_v24 = vmul.f32 %v4722_v7, %v4722_v7  ;;  %v1785_v9 = vmul.f32 %v1481_v53, %v1481_v53  ;;  %v1817_v5 = vmul.f32 %v1593_v25, %v1593_v25  ;;  %v4795_v53 = vld [vmem:[%s2931_s18 + $0x1d0] sm:$0xff] }
 0x1de   : > { %v2024_v49 = vadd.f32 %v2008_v10, %v1992_v0  ;;  %v1849_v14 = vmul.f32 %v4613_v62, %v4613_v62  ;;  %v1881_v50 = vmul.f32 %v4616_v16, %v4616_v16  ;;  %v1913_v56 = vmul.f32 %v4623_v23, %v4623_v23 }
 0x1df   : > { %v1737_v4 = vadd.f32 %v1721_v13, %v1705_v55  ;;  %v619_v31 = vadd.f32 %v603_v24, %v587_v40  ;;  %v1945_v2 = vmul.f32 %v4630_v59, %v4630_v59  ;;  %v1977_v54 = vmul.f32 %v4652_v41, %v4652_v41  ;;  %v4759_v41 = vld [vmem:[%s2846_s22 + $0x1d8] sm:$0xff] }
 0x1e0   : > { %v2056_v58 = vadd.f32 %v2040_v8, %v2024_v49  ;;  %v4743_v62 = vmul.f32 %v4660_v11, %v4660_v11  ;;  %v4748_v16 = vmul.f32 %v4666_v18, %v4666_v18  ;;  %v4752_v23 = vmul.f32 %v4673_v46, %v4673_v46  ;;  %v4799_v8 = vld [vmem:[%s2931_s18 + $0x1d8] sm:$0xff] }
 0x1e1   : > { %v1769_v37 = vadd.f32 %v1753_v34, %v1737_v4  ;;  %v4756_v59 = vmul.f32 %v330_v36, %v330_v36  ;;  %v4772_v29 = vmul.f32 %v346_v60, %v346_v60  ;;  %v4774_v47 = vmul.f32 %v362_v21, %v362_v21 }
 0x1e2   : > { %v2088_v30 = vadd.f32 %v2072_v3, %v2056_v58  ;;  %2421 = vrsqrt.f32 %v619_v31 }
 0x1e3   : > { %v1801_v33 = vadd.f32 %v1785_v9, %v1769_v37  ;;  %v2420_v42 = vpop.eup %2419 }
 0x1e4   : > { %v4762_v11 = vmul.f32 %v2420_v42, %v4475_v28  ;;  %v4765_v26 = vmul.f32 %v2420_v42, %v4478_v39  ;;  %v4768_v18 = vmul.f32 %v2420_v42, %v4491_v6  ;;  %2136 = vst [vmem:[%s3265_s16 + $0x60] sm:$0xff] %v2088_v30  ;;  %v698_v46 = vmul.f32 %v2420_v42, %v4515_v48 }
 0x1e5   : > { %v1833_v35 = vadd.f32 %v1817_v5, %v1801_v33 }
 0x1e6   : > { %v714_v17 = vmul.f32 %v4762_v11, %v330_v36  ;;  %v730_v28 = vmul.f32 %v4765_v26, %v346_v60  ;;  %v762_v39 = vmul.f32 %v4768_v18, %v362_v21  ;;  %v794_v6 = vmul.f32 %v698_v46, %v4759_v41 }
 0x1e7   : > { %v1865_v44 = vadd.f32 %v1849_v14, %v1833_v35  ;;  %v826_v45 = vmul.f32 %v4765_v26, %v330_v36  ;;  %v842_v48 = vmul.f32 %v4762_v11, %v346_v60  ;;  %v874_v1 = vmul.f32 %v698_v46, %v362_v21 }
 0x1e8   : > { %v746_v10 = vsub.f32 %v714_v17, %v730_v28  ;;  %v906_v61 = vmul.f32 %v4768_v18, %v4759_v41  ;;  %v938_v51 = vmul.f32 %v4768_v18, %v330_v36  ;;  %v954_v19 = vmul.f32 %v698_v46, %v346_v60 }
 0x1e9   : > { %v1897_v38 = vadd.f32 %v1881_v50, %v1865_v44  ;;  %v858_v27 = vadd.f32 %v842_v48, %v826_v45  ;;  %v986_v20 = vmul.f32 %v4762_v11, %v362_v21  ;;  %v1018_v43 = vmul.f32 %v4765_v26, %v4759_v41 }
 0x1ea   : > { %v778_v15 = vsub.f32 %v746_v10, %v762_v39  ;;  %v1050_v13 = vmul.f32 %v698_v46, %v330_v36  ;;  %v1066_v0 = vmul.f32 %v4768_v18, %v346_v60  ;;  %v970_v55 = vsub.f32 %v938_v51, %v954_v19 }
 0x1eb   : > { %v1929_v63 = vadd.f32 %v1913_v56, %v1897_v38  ;;  %v890_v25 = vadd.f32 %v874_v1, %v858_v27  ;;  %v1098_v34 = vmul.f32 %v4765_v26, %v362_v21  ;;  %v1130_v49 = vmul.f32 %v4762_v11, %v4759_v41 }
 0x1ec   : > { %v810_v40 = vsub.f32 %v778_v15, %v794_v6  ;;  %v1082_v24 = vadd.f32 %v1066_v0, %v1050_v13  ;;  %v1162_v4 = vmul.f32 %v4762_v11, %v4786_v57  ;;  %v1002_v58 = vadd.f32 %v986_v20, %v970_v55  ;;  %v2422_v31 = vpop.eup %2421  ;;  %v4846_v55 = vld [vmem:[%s2846_s22 + $0x1f0] sm:$0xff] }
 0x1ed   : > { %v1961_v3 = vadd.f32 %v1945_v2, %v1929_v63  ;;  %v922_v9 = vsub.f32 %v890_v25, %v906_v61  ;;  %v1178_v37 = vmul.f32 %v4765_v26, %v4792_v12  ;;  %v1210_v5 = vmul.f32 %v4768_v18, %v4795_v53 }
 0x1ee   : > { %v1114_v30 = vsub.f32 %v1082_v24, %v1098_v34  ;;  %v1242_v50 = vmul.f32 %v698_v46, %v4799_v8  ;;  %v1274_v56 = vmul.f32 %v4762_v11, %v4792_v12  ;;  %v1034_v33 = vadd.f32 %v1018_v43, %v1002_v58 }
 0x1ef   : > { %v1993_v14 = vadd.f32 %v1977_v54, %v1961_v3  ;;  %v1194_v2 = vadd.f32 %v1178_v37, %v1162_v4  ;;  %v1290_v36 = vmul.f32 %v4765_v26, %v4786_v57  ;;  %v1322_v42 = vmul.f32 %v698_v46, %v4795_v53  ;;  %v4853_v3 = vld [vmem:[%s2846_s22 + $0x1f8] sm:$0xff] }
 0x1f0   : > { %v1146_v21 = vadd.f32 %v1130_v49, %v1114_v30  ;;  %v1354_v54 = vmul.f32 %v4768_v18, %v4799_v8  ;;  %v1386_v35 = vmul.f32 %v4762_v11, %v4795_v53  ;;  %v1402_v28 = vmul.f32 %v4768_v18, %v4786_v57 }
 0x1f1   : > { %v2025_v60 = vadd.f32 %v4743_v62, %v1993_v14  ;;  %v1226_v44 = vadd.f32 %v1210_v5, %v1194_v2  ;;  %v1306_v17 = vsub.f32 %v1274_v56, %v1290_v36  ;;  %v1434_v39 = vmul.f32 %v698_v46, %v4792_v12  ;;  %v4875_v56 = vld [vmem:[%s2931_s18 + $0x1e0] sm:$0xff] }
 0x1f2   : > { %v1466_v45 = vmul.f32 %v4765_v26, %v4799_v8  ;;  %v1498_v62 = vmul.f32 %v4762_v11, %v4799_v8  ;;  %v1514_v48 = vmul.f32 %v698_v46, %v4786_v57  ;;  %v1418_v10 = vsub.f32 %v1386_v35, %v1402_v28 }
 0x1f3   : > { %v2057_v6 = vadd.f32 %v4748_v16, %v2025_v60  ;;  %v1258_v1 = vadd.f32 %v1242_v50, %v1226_v44  ;;  %v1338_v38 = vsub.f32 %v1306_v17, %v1322_v42  ;;  %v1546_v61 = vmul.f32 %v4768_v18, %v4792_v12  ;;  %v4840_v18 = vld [vmem:[%s2846_s22 + $0x1e0] sm:$0xff]  ;;  %v4883_v60 = vld [vmem:[%s2931_s18 + $0x1e8] sm:$0xff]  ;;  %v4889_v44 = vld [vmem:[%s2931_s18 + $0x1f0] sm:$0xff] }
 0x1f4   : > { %v1530_v16 = vsub.f32 %v1498_v62, %v1514_v48  ;;  %v1578_v27 = vmul.f32 %v4765_v26, %v4795_v53  ;;  %v1610_v19 = vmul.f32 %v810_v40, %v810_v40  ;;  %v1450_v46 = vadd.f32 %v1434_v39, %v1418_v10  ;;  %v4896_v62 = vld [vmem:[%s2931_s18 + $0x1f8] sm:$0xff] }
 0x1f5   : > { %v2089_v51 = vadd.f32 %v4752_v23, %v2057_v6  ;;  %v1370_v11 = vadd.f32 %v1354_v54, %v1338_v38  ;;  %v1626_v20 = vmul.f32 %v922_v9, %v922_v9  ;;  %v1658_v43 = vmul.f32 %v1034_v33, %v1034_v33  ;;  %v4843_v23 = vld [vmem:[%s2846_s22 + $0x1e8] sm:$0xff] }
 0x1f6   : > { %v1562_v63 = vsub.f32 %v1530_v16, %v1546_v61  ;;  %v1690_v15 = vmul.f32 %v1146_v21, %v1146_v21  ;;  %v4837_v13 = vmul.f32 %v4759_v41, %v4759_v41  ;;  %v1482_v0 = vsub.f32 %v1450_v46, %v1466_v45 }
 0x1f7   : > { %v1642_v25 = vadd.f32 %v1626_v20, %v1610_v19  ;;  %v1722_v26 = vmul.f32 %v1258_v1, %v1258_v1  ;;  %v4849_v34 = vmul.f32 %v2422_v31, %v4534_v32  ;;  %2137 = vst [vmem:[%s3265_s16 + $0x68] sm:$0xff] %v2089_v51  ;;  %v4856_v41 = vmul.f32 %v2422_v31, %v4537_v52 }
 0x1f8   : > { %v1594_v49 = vadd.f32 %v1578_v27, %v1562_v63  ;;  %v4859_v40 = vmul.f32 %v2422_v31, %v4708_v22  ;;  %v699_v24 = vmul.f32 %v2422_v31, %v4722_v7  ;;  %v1754_v9 = vmul.f32 %v1370_v11, %v1370_v11 }
 0x1f9   : > { %v1674_v4 = vadd.f32 %v1658_v43, %v1642_v25  ;;  %v715_v58 = vmul.f32 %v4849_v34, %v4840_v18  ;;  %v843_v32 = vmul.f32 %v4849_v34, %v4843_v23  ;;  %v1786_v37 = vmul.f32 %v1482_v0, %v1482_v0 }
 0x1fa   : > { %v1818_v5 = vmul.f32 %v1594_v49, %v1594_v49  ;;  %v731_v52 = vmul.f32 %v4856_v41, %v4843_v23  ;;  %v763_v22 = vmul.f32 %v4859_v40, %v4846_v55  ;;  %v795_v7 = vmul.f32 %v699_v24, %v4853_v3 }
 0x1fb   : > { %v1706_v14 = vadd.f32 %v1690_v15, %v1674_v4  ;;  %v827_v30 = vmul.f32 %v4856_v41, %v4840_v18  ;;  %v875_v50 = vmul.f32 %v699_v24, %v4846_v55  ;;  %v939_v33 = vmul.f32 %v4859_v40, %v4840_v18 }
 0x1fc   : > { %v747_v31 = vsub.f32 %v715_v58, %v731_v52  ;;  %v955_v2 = vmul.f32 %v699_v24, %v4843_v23  ;;  %v987_v36 = vmul.f32 %v4849_v34, %v4846_v55  ;;  %v907_v54 = vmul.f32 %v4859_v40, %v4853_v3 }
 0x1fd   : > { %v1738_v42 = vadd.f32 %v1722_v26, %v1706_v14  ;;  %v859_v21 = vadd.f32 %v843_v32, %v827_v30  ;;  %v1051_v35 = vmul.f32 %v699_v24, %v4840_v18  ;;  %v1067_v39 = vmul.f32 %v4859_v40, %v4843_v23 }
 0x1fe   : > { %v779_v17 = vsub.f32 %v747_v31, %v763_v22  ;;  %v971_v28 = vsub.f32 %v939_v33, %v955_v2  ;;  %v1099_v6 = vmul.f32 %v4856_v41, %v4846_v55  ;;  %v1019_v1 = vmul.f32 %v4856_v41, %v4853_v3 }
 0x1ff   : > { %v1770_v45 = vadd.f32 %v1754_v9, %v1738_v42  ;;  %v891_v48 = vadd.f32 %v875_v50, %v859_v21  ;;  %v1163_v38 = vmul.f32 %v4849_v34, %v4875_v56  ;;  %v1083_v61 = vadd.f32 %v1067_v39, %v1051_v35 }
 0x200   : > { %v1003_v10 = vadd.f32 %v987_v36, %v971_v28  ;;  %v1131_v51 = vmul.f32 %v4849_v34, %v4853_v3  ;;  %v1179_v16 = vmul.f32 %v4856_v41, %v4883_v60  ;;  %v811_v19 = vsub.f32 %v779_v17, %v795_v7 }
 0x201   : > { %v1802_v27 = vadd.f32 %v1786_v37, %v1770_v45  ;;  %v923_v11 = vsub.f32 %v891_v48, %v907_v54  ;;  %v1211_v46 = vmul.f32 %v4859_v40, %v4889_v44  ;;  %v1115_v20 = vsub.f32 %v1083_v61, %v1099_v6 }
 0x202   : > { %v1195_v43 = vadd.f32 %v1179_v16, %v1163_v38  ;;  %v1243_v63 = vmul.f32 %v699_v24, %v4896_v62  ;;  %v1275_v15 = vmul.f32 %v4849_v34, %v4883_v60  ;;  %v1035_v25 = vadd.f32 %v1019_v1, %v1003_v10 }
 0x203   : > { %v1834_v0 = vadd.f32 %v1818_v5, %v1802_v27  ;;  %v1291_v26 = vmul.f32 %v4856_v41, %v4875_v56  ;;  %v1323_v49 = vmul.f32 %v699_v24, %v4889_v44  ;;  %v1355_v9 = vmul.f32 %v4859_v40, %v4896_v62 }
 0x204   : > { %v1227_v4 = vadd.f32 %v1211_v46, %v1195_v43  ;;  %v1387_v58 = vmul.f32 %v4849_v34, %v4889_v44  ;;  %v1403_v32 = vmul.f32 %v4859_v40, %v4875_v56  ;;  %v1147_v52 = vadd.f32 %v1131_v51, %v1115_v20 }
 0x205   : > { %v1866_v37 = vadd.f32 %v4756_v59, %v1834_v0  ;;  %v1307_v5 = vsub.f32 %v1275_v15, %v1291_v26  ;;  %v1435_v22 = vmul.f32 %v699_v24, %v4883_v60  ;;  %v1467_v7 = vmul.f32 %v4856_v41, %v4896_v62 }
 0x206   : > { %v1419_v14 = vsub.f32 %v1387_v58, %v1403_v32  ;;  %v1499_v30 = vmul.f32 %v4849_v34, %v4896_v62  ;;  %v1515_v50 = vmul.f32 %v699_v24, %v4875_v56  ;;  %v1259_v33 = vadd.f32 %v1243_v63, %v1227_v4 }
 0x207   : > { %v1898_v31 = vadd.f32 %v4772_v29, %v1866_v37  ;;  %v1339_v2 = vsub.f32 %v1307_v5, %v1323_v49  ;;  %v1547_v59 = vmul.f32 %v4859_v40, %v4883_v60  ;;  %v1611_v21 = vmul.f32 %v811_v19, %v811_v19 }
 0x208   : > { %v1451_v36 = vadd.f32 %v1435_v22, %v1419_v14  ;;  %v1531_v42 = vsub.f32 %v1499_v30, %v1515_v50  ;;  %v1627_v54 = vmul.f32 %v923_v11, %v923_v11  ;;  %v1978_v17 = vmul.f32 %v4786_v57, %v4786_v57 }
 0x209   : > { %v1930_v35 = vadd.f32 %v4774_v47, %v1898_v31  ;;  %v1579_v34 = vmul.f32 %v4856_v41, %v4889_v44  ;;  %v1659_v24 = vmul.f32 %v1035_v25, %v1035_v25  ;;  %v1371_v28 = vadd.f32 %v1355_v9, %v1339_v2 }
 0x20a   : > { %v1563_v29 = vsub.f32 %v1531_v42, %v1547_v59  ;;  %v1643_v39 = vadd.f32 %v1627_v54, %v1611_v21  ;;  %v1691_v6 = vmul.f32 %v1147_v52, %v1147_v52  ;;  %v2010_v40 = vmul.f32 %v4792_v12, %v4792_v12 }
 0x20b   : > { %v1962_v45 = vadd.f32 %v4837_v13, %v1930_v35  ;;  %v1483_v48 = vsub.f32 %v1451_v36, %v1467_v7  ;;  %v1723_v38 = vmul.f32 %v1259_v33, %v1259_v33  ;;  %v2042_v57 = vmul.f32 %v4795_v53, %v4795_v53 }
 0x20c   : > { %v1675_v1 = vadd.f32 %v1659_v24, %v1643_v39  ;;  %v1595_v10 = vadd.f32 %v1579_v34, %v1563_v29  ;;  %v1755_v61 = vmul.f32 %v1371_v28, %v1371_v28  ;;  %v2074_v16 = vmul.f32 %v4799_v8, %v4799_v8 }
 0x20d   : > { %v1994_v47 = vadd.f32 %v1978_v17, %v1962_v45  ;;  %v1787_v13 = vmul.f32 %v1483_v48, %v1483_v48  ;;  %v1851_v43 = vmul.f32 %v4840_v18, %v4840_v18  ;;  %v1883_v53 = vmul.f32 %v4843_v23, %v4843_v23 }
 0x20e   : > { %v1707_v41 = vadd.f32 %v1691_v6, %v1675_v1  ;;  %v1819_v12 = vmul.f32 %v1595_v10, %v1595_v10  ;;  %v1915_v8 = vmul.f32 %v4846_v55, %v4846_v55  ;;  %v1947_v25 = vmul.f32 %v4853_v3, %v4853_v3 }
 0x20f   : > { %v2026_v51 = vadd.f32 %v2010_v40, %v1994_v47  ;;  %v1979_v18 = vmul.f32 %v4875_v56, %v4875_v56  ;;  %v2011_v23 = vmul.f32 %v4883_v60, %v4883_v60  ;;  %v2043_v9 = vmul.f32 %v4889_v44, %v4889_v44 }
 0x210   : > { %v1739_v27 = vadd.f32 %v1723_v38, %v1707_v41  ;;  %v2075_v58 = vmul.f32 %v4896_v62, %v4896_v62 }
 0x211   : > { %v2058_v19 = vadd.f32 %v2042_v57, %v2026_v51 }
 0x212   : > { %v1771_v11 = vadd.f32 %v1755_v61, %v1739_v27 }
 0x213   : > { %v2090_v46 = vadd.f32 %v2074_v16, %v2058_v19 }
 0x214   : > { %v1803_v20 = vadd.f32 %v1787_v13, %v1771_v11 }
 0x215   : > { %2138 = vst [vmem:[%s3265_s16 + $0x70] sm:$0xff] %v2090_v46 }
 0x216   : > { %v1835_v63 = vadd.f32 %v1819_v12, %v1803_v20 }
 0x218   : > { %v1867_v15 = vadd.f32 %v1851_v43, %v1835_v63 }
 0x21a   : > { %v1899_v0 = vadd.f32 %v1883_v53, %v1867_v15 }
 0x21c   : > { %v1931_v26 = vadd.f32 %v1915_v8, %v1899_v0 }
 0x21e   : > { %v1963_v49 = vadd.f32 %v1947_v25, %v1931_v26 }
 0x220   : > { %v1995_v4 = vadd.f32 %v1979_v18, %v1963_v49 }
 0x222   : > { %v2027_v55 = vadd.f32 %v2011_v23, %v1995_v4 }
 0x224   : > { %v2059_v32 = vadd.f32 %v2043_v9, %v2027_v55 }
 0x226   : > { %v2091_v3 = vadd.f32 %v2075_v58, %v2059_v32 }
 0x228   : > { %2139 = vst [vmem:[%s3265_s16 + $0x78] sm:$0xff] %v2091_v3 }
 0x229   : > { %2526 = shalt.err (!%p2523_p13)
}
 0x22a   : > { %s2527_s29 = scalar_lea.hbm %s4964_s6, 2048  ;;  %s2531_s4 = scalar_lea.hbm %s5019_s3, 4096 }
 0x22b   : > { %p2528_p11 = scmp.ne.s32.totalorder %s4964_s6, %s2527_s29  ;;  %p2532_p7 = scmp.lt.u32.totalorder %s4964_s6, %s5019_s3 }
 0x22c   : > { %p2533_p4 = scmp.lt.u32.totalorder %s2531_s4, %s2527_s29  ;;  %p2535_p0 = scmp.lt.u32.totalorder %s2527_s29, %s4964_s6 }
 0x22d   : > { %p2529_p2 = pnand %p2528_p11, %p5116_p10 }
 0x22e   : > { %p2534_p3 = por %p2533_p4, %p2532_p7 }
 0x22f   : > { %p2530_p5 = pneg %p2529_p2 }
 0x230   : > { %p2536_p8 = por %p2535_p0, %p2534_p3 }
 0x232   : > { %p2537_p9 = pnand %p2536_p8, %p2530_p5 }
 0x234   : > { %2540 = shalt.err (!%p2537_p9)
}
 0x235   : > { %s2607_s19 = smov 128   ;;  %s2608_s9 = smov 8  }
 0x236   : > { %2320 = dma.vmem_to_hbm [thread:$0]  (%p5116_p10), %s4966_s5, 2048, %s4964_s6, %s2141_s8, %s2607_s19, %s2607_s19, %s2608_s9  }
 0x237 PF: > { %s2169_s18 = sand.u32 1, %s2579_s12   ;;  %p5117_p12 = scmp.ne.s32.totalorder %s5048_s27, 0 }
 0x238   : > { %p5118_p1 = scmp.ge.s32.totalorder %s2599_s17, 2  ;;  %s2170_s24 = scalar_lea.sflag [#allocation4], %s2169_s18 }
 0x23a   : > { %p2333_p6 = pnand %p5118_p1, %p5117_p12 }
 0x23c   : > { %2574 = dma.done.wait (!%p2333_p6), %s2170_s24, 2048  }
 0x23d   : > { %2576 = vsyncadd (!%p2333_p6), %s2170_s24, 4294965248  ;;  %s22_s17 = sadd.s32 1, %s2599_s17   ;;  %s5119_s16 = sld [smem:[#allocation14_spill]] }
 0x23e   : > { %p19_p13 = scmp.ge.s32.totalorder %s22_s17, 4   ;;  %s5120_s15 = sld [smem:[#allocation12_spill]] }
 0x23f   : > { %s5121_s25 = sld [smem:[#allocation13_spill]]  ;;  %s5122_s12 = smov %s2583_s13 }
 0x240   : > { %s5123_s13 = smov %s2587_s14  ;;  %21 = sbr.rel (!%p19_p13) target bundleno = 10 (0xa), region = 105 }
 0x243   : > { %s5124_s14 = smov %s5119_s16 }
 0x245   : > { %s5125_s16 = smov %s5121_s25 }
 0x247   :  { %2175 = vsyncpa [#allocation3], 1 }
 0x248   :  { %2177 = vsyncpa [#allocation3 + $0x1], 1 }
 0x249   :  { %2178 = vsyncpa [#allocation6], 1 }
 0x24a   :  { %2180 = vsyncpa [#allocation6 + $0x1], 1 }
 0x24b   :  { %2181 = vsyncpa [#allocation4], 1 }
 0x24c   :  { %2183 = vsyncpa [#allocation4 + $0x1], 1 }

</bundles_post_ra>
